<compile_context>
chip_gen: v6e
topology: v6e:2x2x1
jax: 0.10.0
libtpu: 0.0.40
codegen_flags: <defaults>
</compile_context>

<pallas_src>
import functools
import numpy as np
import jax
import jax.numpy as jnp
from jax.experimental import pallas as pl
from jax.experimental.pallas import tpu as pltpu

# ---- model hyper-parameters (small demo config; torch defaults are 100/100/5) --------
HIDDEN = 16        # GNN latent width ("hidden" arg of GNN)
MLP_HIDDEN = 32    # internal width of every MLP
N_MESSAGES = 2     # number of MetaLayer blocks
N_OUT = 2          # predictor output width
LN_EPS = 1e-5
LOG10 = float(np.log(10.0))

_VMEM = pl.BlockSpec(memory_space=pltpu.MemorySpace.VMEM)
# Above the default scoped limits (16 MiB v5e / 32 MiB v6e,v7x) and below physical VMEM
# on every generation (128/128/64 MiB).  Size to masks+activations+weights for big graphs.
_VMEM_LIMIT = 48 * 1024 * 1024
_CPARAMS = pltpu.CompilerParams(vmem_limit_bytes=_VMEM_LIMIT)


def _rup8(x):
    return -(-x // 8) * 8


# =============================== static MLP layout ====================================
def _mlp_layout(hidden, n_out_dec, n_blocks):
    """Packed order + per-MLP (n_in, n_out, layer_norm, k_pad) metadata + padded dims."""
    order = ["node_enc", "edge_enc", "decoder"]
    meta = {
        "node_enc": (1, hidden, True),       # x[:, [3]]        -> hidden, LN
        "edge_enc": (3, hidden, True),       # pos[row]-pos[col]-> hidden, LN
        "decoder":  (hidden, n_out_dec, False),
    }
    for b in range(n_blocks):
        for part, n_in in (("edge", 4 * hidden), ("node1", 2 * hidden),
                           ("node2", 3 * hidden), ("global", 2 * hidden)):
            name = f"blk{b}_{part}"
            order.append(name)
            meta[name] = (n_in, hidden, True)
    meta = {k: (v[0], v[1], v[2], _rup8(v[0])) for k, v in meta.items()}
    K0 = max(v[3] for v in meta.values())              # stacked-w0 row count
    NOUT_PAD = _rup8(max(v[1] for v in meta.values()))  # stacked-w3 column count
    return order, meta, K0, NOUT_PAD


# ================================ in-kernel helpers ====================================
def _make_mlp_runner(order, meta, NOUT_PAD, wrefs):
    (w0_ref, b0_ref, w1_ref, b1_ref, w2_ref, b2_ref, w3_ref, b3_ref, g_ref, be_ref) = wrefs
    idx = {n: i for i, n in enumerate(order)}
    f32, bf16 = jnp.float32, jnp.bfloat16

    def run_mlp(name, act):
        """4-layer MLP (+ optional LayerNorm) on packed, VMEM-resident bf16 weights."""
        i = idx[name]
        n_in, n_out, has_ln, k_pad = meta[name]
        rows = act.shape[0]
        if act.shape[1] < k_pad:      # only the two tiny encoders (1 -> 8, 3 -> 8)
            act = jnp.concatenate(
                [act, jnp.zeros((rows, k_pad - act.shape[1]), f32)], axis=1)
        w0 = w0_ref[i][:k_pad, :]     # static slice: true K, no pad-to-K0 concat
        h = jnp.dot(act.astype(bf16), w0, preferred_element_type=f32) + b0_ref[i]
        h = jnp.maximum(h, 0.0)
        h = jnp.dot(h.astype(bf16), w1_ref[i], preferred_element_type=f32) + b1_ref[i]
        h = jnp.maximum(h, 0.0)
        h = jnp.dot(h.astype(bf16), w2_ref[i], preferred_element_type=f32) + b2_ref[i]
        h = jnp.maximum(h, 0.0)
        y = jnp.dot(h.astype(bf16), w3_ref[i], preferred_element_type=f32) + b3_ref[i]
        if n_out < NOUT_PAD:
            y = y[:, :n_out]
        if has_ln:                    # two-pass (centered) variance, f32 epilogue
            gam, bet = g_ref[i], be_ref[i]
            if n_out < NOUT_PAD:
                gam, bet = gam[:, :n_out], bet[:, :n_out]
            inv_n = 1.0 / n_out
            mu = jnp.sum(y, axis=-1, keepdims=True) * inv_n
            d = y - mu
            var = jnp.sum(d * d, axis=-1, keepdims=True) * inv_n
            y = d * jax.lax.rsqrt(var + LN_EPS) * gam + bet
        return y

    return run_mlp


def _run_snr(act, srefs):
    """snr MLP(3 -> 2), f32 (tiny), fused into the allocator kernel."""
    sw0, sb0, sw1, sb1, sw2, sb2, sw3, sb3 = srefs
    f32 = jnp.float32
    h = jnp.maximum(jnp.dot(act, sw0[...], preferred_element_type=f32) + sb0[...], 0.0)
    h = jnp.maximum(jnp.dot(h, sw1[...], preferred_element_type=f32) + sb1[...], 0.0)
    h = jnp.maximum(jnp.dot(h, sw2[...], preferred_element_type=f32) + sb2[...], 0.0)
    return jnp.dot(h, sw3[...], preferred_element_type=f32) + sb3[...]


def _run_gnn(run_mlp, node_feat, pos, row, col, col_t, bat, bat_t, ebat, dims, decode_on):
    """Full GNN pass (encoders, MetaLayer blocks, decoder); everything stays in VMEM."""
    N, E, G, hidden, n_blocks = dims
    f32, bf16 = jnp.float32, jnp.bfloat16

    # one-hot gather / scatter matrices: f32 compares (v5e-safe VPU), cast to bf16 masks
    iota_en = jax.lax.broadcasted_iota(jnp.int32, (E, N), 1)
    g_row_f = jnp.where(row == iota_en, 1.0, 0.0)
    g_col_f = jnp.where(col == iota_en, 1.0, 0.0)
    g_row = g_row_f.astype(bf16)                              # (E,N): x[row]
    g_col = g_col_f.astype(bf16)                              # (E,N): x[col]
    g_dpos = (g_row_f - g_col_f).astype(bf16)                 # (E,N): pos[row]-pos[col]
    iota_ne = jax.lax.broadcasted_iota(jnp.int32, (N, E), 0)
    s_col = jnp.where(col_t == iota_ne, 1.0, 0.0).astype(bf16)   # (N,E): scatter_sum(.,col)
    iota_ng = jax.lax.broadcasted_iota(jnp.int32, (N, G), 1)
    g_bat = jnp.where(bat == iota_ng, 1.0, 0.0).astype(bf16)     # (N,G): u[batch]
    iota_gn = jax.lax.broadcasted_iota(jnp.int32, (G, N), 0)
    s_bat = jnp.where(bat_t == iota_gn, 1.0, 0.0).astype(bf16)   # (G,N): scatter_sum(.,batch)
    iota_eg = jax.lax.broadcasted_iota(jnp.int32, (E, G), 1)
    g_ebat = jnp.where(ebat == iota_eg, 1.0, 0.0).astype(bf16)   # (E,G): u[batch[row]] direct

    d_pos = jnp.dot(g_dpos, pos.astype(bf16), preferred_element_type=f32)   # one matmul

    x = run_mlp("node_enc", node_feat)            # (N, H)
    e = run_mlp("edge_enc", d_pos)                # (E, H)
    u = jnp.zeros((G, hidden), f32)

    for b in range(n_blocks):
        xb, ub = x.astype(bf16), u.astype(bf16)
        x_row = jnp.dot(g_row, xb, preferred_element_type=f32)      # x[row]        (E,H)
        x_col = jnp.dot(g_col, xb, preferred_element_type=f32)      # x[col]        (E,H)
        u_nodes = jnp.dot(g_bat, ub, preferred_element_type=f32)    # u[batch]      (N,H)
        u_edge = jnp.dot(g_ebat, ub, preferred_element_type=f32)    # u[batch[row]] (E,H)

        # EdgeModel: e <- e + MLP([x[row], x[col], e, u[batch[row]]])
        e = e + run_mlp(f"blk{b}_edge",
                        jnp.concatenate([x_row, x_col, e, u_edge], axis=1))

        # NodeModel: x <- x + MLP2([x, scatter_sum(MLP1([x[row], e]), col), u[batch]])
        m = run_mlp(f"blk{b}_node1", jnp.concatenate([x_row, e], axis=1))     # (E,H)
        agg = jnp.dot(s_col, m.astype(bf16), preferred_element_type=f32)      # (N,H)
        x = x + run_mlp(f"blk{b}_node2", jnp.concatenate([x, agg, u_nodes], axis=1))

        # GlobalModel: u <- u + MLP([u, scatter_sum(x, batch)])
        gx = jnp.dot(s_bat, x.astype(bf16), preferred_element_type=f32)       # (G,H)
        u = u + run_mlp(f"blk{b}_global", jnp.concatenate([u, gx], axis=1))

    return run_mlp("decoder", x if decode_on == "node" else u)


# ============================ fused allocator kernel ===================================
@functools.lru_cache(maxsize=None)
def _build_allocator_call(N, E, G, hidden, n_blocks):
    order, meta, K0, NOUT_PAD = _mlp_layout(hidden, 1, n_blocks)
    dims = (N, E, G, hidden, n_blocks)

    def kernel(xraw_ref, row_ref, col_ref, colT_ref, bat_ref, batT_ref, ebat_ref,
               noise_ref,
               w0_ref, b0_ref, w1_ref, b1_ref, w2_ref, b2_ref, w3_ref, b3_ref,
               g_ref, be_ref,
               sw0, sb0, sw1, sb1, sw2, sb2, sw3, sb3,
               time_ref, std1_ref, std2_ref):
        run_mlp = _make_mlp_runner(order, meta, NOUT_PAD,
                                   (w0_ref, b0_ref, w1_ref, b1_ref, w2_ref, b2_ref,
                                    w3_ref, b3_ref, g_ref, be_ref))
        srefs = (sw0, sb0, sw1, sb1, sw2, sb2, sw3, sb3)

        xraw = xraw_ref[...]                          # (N, 5) f32
        pos = xraw[:, 0:3]
        M14 = xraw[:, 3:4]
        true_z = xraw[:, 4:5]
        true_M = jnp.log(M14 * 1e14) * (1.0 / LOG10)  # == log10(M14 * 1e14)
        ones = jnp.ones_like(true_M)

        # snr pass 1: std = exp(log(10)*obs_std1) == 10**obs_std1
        obs1 = _run_snr(jnp.concatenate([true_M, ones, true_z], axis=1), srefs)
        std1 = jnp.exp(LOG10 * obs1)
        std1_ref[...] = std1

        # noise injection on the mass feature (the z-feature noise never reaches the GNN,
        # which only reads x[:, :3] and x[:, 3:4])
        node_feat = M14 + noise_ref[:, 0:1] * std1[:, 0:1]

        dec = _run_gnn(run_mlp, node_feat, pos, row_ref[...], col_ref[...], colT_ref[...],
                       bat_ref[...], batT_ref[...], ebat_ref[...], dims, "node")

        # time2 = 1 + 59 * sigmoid(dec - 3): EUP exp + reciprocal, overflow-clamped
        z = jnp.exp(jnp.clip(3.0 - dec, -60.0, 60.0))
        time2 = 1.0 + 59.0 * pl.reciprocal(1.0 + z, approx=True)
        time_ref[...] = time2

        # snr pass 2: std = exp(obs_std2)
        obs2 = _run_snr(jnp.concatenate([true_M, time2, true_z], axis=1), srefs)
        std2_ref[...] = jnp.exp(obs2)

    return pl.pallas_call(
        kernel,
        out_shape=(jax.ShapeDtypeStruct((N, 1), jnp.float32),   # time2
                   jax.ShapeDtypeStruct((N, 2), jnp.float32),   # [Mstd1, zstd1]
                   jax.ShapeDtypeStruct((N, 2), jnp.float32)),  # [Mstd2, zstd2]
        in_specs=[_VMEM] * 26,
        out_specs=(_VMEM, _VMEM, _VMEM),
        compiler_params=_CPARAMS,
    )


# ============================ fused predictor kernel ===================================
@functools.lru_cache(maxsize=None)
def _build_predictor_call(N, E, G, hidden, n_out, n_blocks):
    order, meta, K0, NOUT_PAD = _mlp_layout(hidden, n_out, n_blocks)
    dims = (N, E, G, hidden, n_blocks)

    def kernel(xraw_ref, noise_ref, std2_ref,
               row_ref, col_ref, colT_ref, bat_ref, batT_ref, ebat_ref,
               w0_ref, b0_ref, w1_ref, b1_ref, w2_ref, b2_ref, w3_ref, b3_ref,
               g_ref, be_ref, out_ref):
        run_mlp = _make_mlp_runner(order, meta, NOUT_PAD,
                                   (w0_ref, b0_ref, w1_ref, b1_ref, w2_ref, b2_ref,
                                    w3_ref, b3_ref, g_ref, be_ref))
        xraw = xraw_ref[...]
        pos = xraw[:, 0:3]
        # second noise injection fused into the predictor prologue
        node_feat = xraw[:, 3:4] + noise_ref[:, 0:1] * std2_ref[:, 0:1]
        out_ref[...] = _run_gnn(run_mlp, node_feat, pos, row_ref[...], col_ref[...],
                                colT_ref[...], bat_ref[...], batT_ref[...], ebat_ref[...],
                                dims, "global")

    return pl.pallas_call(
        kernel,
        out_shape=jax.ShapeDtypeStruct((G, n_out), jnp.float32),
        in_specs=[_VMEM] * 19,
        out_specs=_VMEM,
        compiler_params=_CPARAMS,
    )


# ================================= parameter setup =====================================
def init_mlp_params(key, n_in, n_out, hidden, layer_norm):
    keys = jax.random.split(key, 4)
    dims = [(n_in, hidden), (hidden, hidden), (hidden, hidden), (hidden, n_out)]
    p = {}
    for i, (a, b) in enumerate(dims):
        p[f"w{i}"] = jax.random.normal(keys[i], (a, b), jnp.float32) / jnp.sqrt(float(a))
        p[f"b{i}"] = jnp.zeros((1, b), jnp.float32)
    if layer_norm:
        p["g"] = jnp.ones((1, n_out), jnp.float32)
        p["be"] = jnp.zeros((1, n_out), jnp.float32)
    p["layer_norm"] = layer_norm
    return p


def init_gnn_params(key, hidden, n_in, n_edge, n_out, blocks):
    keys = jax.random.split(key, 3 + blocks)
    p = {
        "node_enc": init_mlp_params(keys[0], n_in, hidden, MLP_HIDDEN, True),
        "edge_enc": init_mlp_params(keys[1], n_edge, hidden, MLP_HIDDEN, True),
        "decoder": init_mlp_params(keys[2], hidden, n_out, MLP_HIDDEN, False),
        "blocks": [],
    }
    for i in range(blocks):
        bk = jax.random.split(keys[3 + i], 4)
        p["blocks"].append({
            "edge":   init_mlp_params(bk[0], hidden * 4, hidden, MLP_HIDDEN, True),
            "node1":  init_mlp_params(bk[1], hidden * 2, hidden, MLP_HIDDEN, True),
            "node2":  init_mlp_params(bk[2], hidden * 3, hidden, MLP_HIDDEN, True),
            "global": init_mlp_params(bk[3], hidden * 2, hidden, MLP_HIDDEN, True),
        })
    return p


def pack_gnn_params(raw, hidden, n_out_dec, n_blocks):
    """Pack every MLP of one GNN into stacked, padded weight arrays (bf16 matmul weights,
    f32 biases / LayerNorm params) so the whole pass needs only 10 weight DMAs."""
    order, meta, K0, NOUT_PAD = _mlp_layout(hidden, n_out_dec, n_blocks)

    def get(name):
        if name in ("node_enc", "edge_enc", "decoder"):
            return raw[name]
        blk, part = name.split("_", 1)
        return raw["blocks"][int(blk[3:])][part]

    stacks = {k: [] for k in ("w0", "b0", "w1", "b1", "w2", "b2", "w3", "b3", "g", "be")}
    for name in order:
        p = get(name)
        n_in, n_out, has_ln, k_pad = meta[name]
        stacks["w0"].append(jnp.pad(p["w0"], ((0, K0 - n_in), (0, 0))))
        stacks["b0"].append(p["b0"])
        stacks["w1"].append(p["w1"])
        stacks["b1"].append(p["b1"])
        stacks["w2"].append(p["w2"])
        stacks["b2"].append(p["b2"])
        stacks["w3"].append(jnp.pad(p["w3"], ((0, 0), (0, NOUT_PAD - n_out))))
        stacks["b3"].append(jnp.pad(p["b3"], ((0, 0), (0, NOUT_PAD - n_out))))
        if has_ln:
            stacks["g"].append(jnp.pad(p["g"], ((0, 0), (0, NOUT_PAD - n_out)),
                                       constant_values=1.0))
            stacks["be"].append(jnp.pad(p["be"], ((0, 0), (0, NOUT_PAD - n_out))))
        else:
            stacks["g"].append(jnp.ones((1, NOUT_PAD), jnp.float32))
            stacks["be"].append(jnp.zeros((1, NOUT_PAD), jnp.float32))

    packed = {k: jnp.stack(v) for k, v in stacks.items()}
    for k in ("w0", "w1", "w2", "w3"):                 # bf16 matmul path, f32 accumulate
        packed[k] = packed[k].astype(jnp.bfloat16)
    packed["cfg"] = dict(hidden=hidden, n_out=n_out_dec, n_blocks=n_blocks)
    return packed


# =================================== model forward =====================================
def gnn_allocation_forward(params, x_feat, edge_index, batch, n_graphs, key):
    N, E, G = x_feat.shape[0], edge_index.shape[1], int(n_graphs)

    # index tensors in the orientations the kernels consume (no in-kernel transposes)
    row = edge_index[0][:, None].astype(jnp.int32)      # (E,1)
    col = edge_index[1][:, None].astype(jnp.int32)      # (E,1)
    col_t = edge_index[1][None, :].astype(jnp.int32)    # (1,E)
    bat = batch[:, None].astype(jnp.int32)              # (N,1)
    bat_t = batch[None, :].astype(jnp.int32)            # (1,N)
    ebat = batch[edge_index[0]][:, None].astype(jnp.int32)   # (E,1): batch[row]

    # unit-normal noise generated in plain JAX; scaled by the stds inside the kernels
    k1, k2 = jax.random.split(key, 2)
    noise1 = jax.random.normal(k1, (N, 2), jnp.float32)
    noise2 = jax.random.normal(k2, (N, 2), jnp.float32)

    ap, sp = params["allocator"], params["snr"]
    acfg = ap["cfg"]
    alloc_call = _build_allocator_call(N, E, G, acfg["hidden"], acfg["n_blocks"])
    time2, std1, std2 = alloc_call(
        x_feat, row, col, col_t, bat, bat_t, ebat, noise1,
        ap["w0"], ap["b0"], ap["w1"], ap["b1"], ap["w2"], ap["b2"], ap["w3"], ap["b3"],
        ap["g"], ap["be"],
        sp["w0"], sp["b0"], sp["w1"], sp["b1"], sp["w2"], sp["b2"], sp["w3"], sp["b3"])

    pp = params["predictor"]
    pcfg = pp["cfg"]
    pred_call = _build_predictor_call(N, E, G, pcfg["hidden"], pcfg["n_out"],
                                      pcfg["n_blocks"])
    predictions = pred_call(
        x_feat, noise2, std2, row, col, col_t, bat, bat_t, ebat,
        pp["w0"], pp["b0"], pp["w1"], pp["b1"], pp["w2"], pp["b2"], pp["w3"], pp["b3"],
        pp["g"], pp["be"])

    aux = {"time": time2, "Mstd1": std1[:, 0:1], "zstd1": std1[:, 1:2],
           "Mstd2": std2[:, 0:1], "zstd2": std2[:, 1:2]}
    return predictions, aux


# ======================================= main ==========================================
if __name__ == "__main__":
    key = jax.random.PRNGKey(0)
    k_params, k_data, k_noise = jax.random.split(key, 3)

    kp = jax.random.split(k_params, 3)
    alloc_raw = init_gnn_params(kp[0], HIDDEN, n_in=1, n_edge=3, n_out=1, blocks=N_MESSAGES)
    pred_raw = init_gnn_params(kp[1], HIDDEN, n_in=1, n_edge=3, n_out=N_OUT, blocks=N_MESSAGES)
    params = {
        "allocator": pack_gnn_params(alloc_raw, HIDDEN, 1, N_MESSAGES),
        "predictor": pack_gnn_params(pred_raw, HIDDEN, N_OUT, N_MESSAGES),
        # snr_model is an external callable in the PyTorch module; synthesize it as a
        # plain MLP(3 -> 2) whose evaluation (and exp/10**x epilogues) are fused into the
        # allocator kernel.
        "snr": init_mlp_params(kp[2], 3, 2, MLP_HIDDEN, False),
    }

    # small synthetic graph: 2 graphs x 4 nodes, fully connected within each graph
    n_per_graph, n_graphs = 4, 2
    n_nodes = n_per_graph * n_graphs
    kd = jax.random.split(k_data, 3)
    pos = jax.random.normal(kd[0], (n_nodes, 3), jnp.float32)
    M14 = jax.random.uniform(kd[1], (n_nodes, 1), jnp.float32, minval=0.5, maxval=2.0)
    zvals = jax.random.uniform(kd[2], (n_nodes, 1), jnp.float32, minval=0.1, maxval=2.0)
    x_feat = jnp.concatenate([pos, M14, zvals], axis=1)          # (n_nodes, 5)
    batch = jnp.repeat(jnp.arange(n_graphs, dtype=jnp.int32), n_per_graph)

    srcs, dsts = [], []
    for g in range(n_graphs):
        for i in range(n_per_graph):
            for j in range(n_per_graph):
                if i != j:
                    srcs.append(g * n_per_graph + i)
                    dsts.append(g * n_per_graph + j)
    edge_index = jnp.array([srcs, dsts], dtype=jnp.int32)        # (2, 24)

    preds, aux = gnn_allocation_forward(params, x_feat, edge_index, batch, n_graphs, k_noise)
    jax.block_until_ready((preds, aux))
    assert preds.shape == (n_graphs, N_OUT)
    assert aux["time"].shape == (n_nodes, 1)
    assert aux["Mstd1"].shape == (n_nodes, 1) and aux["Mstd2"].shape == (n_nodes, 1)
    print("KERNEL_OK")
</pallas_src>

<mosaic_0001>
module attributes {stable_mosaic.version = 11 : i64} {
  func.func @kernel(%arg0: memref<8x5xf32, #tpu.memory_space<vmem>>, %arg1: memref<24x1xi32, #tpu.memory_space<vmem>>, %arg2: memref<24x1xi32, #tpu.memory_space<vmem>>, %arg3: memref<1x24xi32, #tpu.memory_space<vmem>>, %arg4: memref<8x1xi32, #tpu.memory_space<vmem>>, %arg5: memref<1x8xi32, #tpu.memory_space<vmem>>, %arg6: memref<24x1xi32, #tpu.memory_space<vmem>>, %arg7: memref<8x2xf32, #tpu.memory_space<vmem>>, %arg8: memref<11x64x32xbf16, #tpu.memory_space<vmem>>, %arg9: memref<11x1x32xf32, #tpu.memory_space<vmem>>, %arg10: memref<11x32x32xbf16, #tpu.memory_space<vmem>>, %arg11: memref<11x1x32xf32, #tpu.memory_space<vmem>>, %arg12: memref<11x32x32xbf16, #tpu.memory_space<vmem>>, %arg13: memref<11x1x32xf32, #tpu.memory_space<vmem>>, %arg14: memref<11x32x16xbf16, #tpu.memory_space<vmem>>, %arg15: memref<11x1x16xf32, #tpu.memory_space<vmem>>, %arg16: memref<11x1x16xf32, #tpu.memory_space<vmem>>, %arg17: memref<11x1x16xf32, #tpu.memory_space<vmem>>, %arg18: memref<3x32xf32, #tpu.memory_space<vmem>>, %arg19: memref<1x32xf32, #tpu.memory_space<vmem>>, %arg20: memref<32x32xf32, #tpu.memory_space<vmem>>, %arg21: memref<1x32xf32, #tpu.memory_space<vmem>>, %arg22: memref<32x32xf32, #tpu.memory_space<vmem>>, %arg23: memref<1x32xf32, #tpu.memory_space<vmem>>, %arg24: memref<32x2xf32, #tpu.memory_space<vmem>>, %arg25: memref<1x2xf32, #tpu.memory_space<vmem>>, %arg26: memref<8x1xf32, #tpu.memory_space<vmem>>, %arg27: memref<8x2xf32, #tpu.memory_space<vmem>>, %arg28: memref<8x2xf32, #tpu.memory_space<vmem>>) attributes {dimension_semantics = [], scalar_prefetch = 0 : i64, scratch_operands = 0 : i64, tpu.core_type = #tpu.core_type<tc>} {
    %c0 = arith.constant 0 : index
    %c0_0 = arith.constant 0 : index
    %0 = vector.load %arg0[%c0, %c0_0] : memref<8x5xf32, #tpu.memory_space<vmem>>, vector<8x5xf32>
    %1 = vector.extract_strided_slice %0 {offsets = [0, 0], sizes = [8, 3], strides = [1, 1]} : vector<8x5xf32> to vector<8x3xf32>
    %2 = vector.extract_strided_slice %0 {offsets = [0, 3], sizes = [8, 1], strides = [1, 1]} : vector<8x5xf32> to vector<8x1xf32>
    %3 = vector.extract_strided_slice %0 {offsets = [0, 4], sizes = [8, 1], strides = [1, 1]} : vector<8x5xf32> to vector<8x1xf32>
    %cst = arith.constant 1.000000e+14 : f32
    %4 = vector.broadcast %cst : f32 to vector<8x1xf32>
    %5 = arith.mulf %2, %4 : vector<8x1xf32>
    %6 = math.log %5 : vector<8x1xf32>
    %cst_1 = arith.constant 0.434294492 : f32
    %7 = vector.broadcast %cst_1 : f32 to vector<8x1xf32>
    %8 = arith.mulf %6, %7 : vector<8x1xf32>
    %cst_2 = arith.constant 1.000000e+00 : f32
    %9 = vector.broadcast %cst_2 : f32 to vector<8x1xf32>
    %10 = tpu.concatenate %8, %9, %3 in 1 : vector<8x1xf32>, vector<8x1xf32>, vector<8x1xf32> -> vector<8x3xf32>
    %c0_3 = arith.constant 0 : index
    %c0_4 = arith.constant 0 : index
    %11 = vector.load %arg18[%c0_3, %c0_4] : memref<3x32xf32, #tpu.memory_space<vmem>>, vector<3x32xf32>
    %cst_5 = arith.constant dense<0.000000e+00> : vector<8x32xf32>
    %12 = tpu.matmul %10, %11, %cst_5 {dimension_numbers = #tpu.dot_dimension_numbers<[1], [0], [0], [1], [0, 0, 1, 1], [], []>} : vector<8x3xf32>, vector<3x32xf32>, vector<8x32xf32> -> vector<8x32xf32>
    %c0_6 = arith.constant 0 : index
    %c0_7 = arith.constant 0 : index
    %13 = vector.load %arg19[%c0_6, %c0_7] : memref<1x32xf32, #tpu.memory_space<vmem>>, vector<1x32xf32>
    %14 = vector.broadcast %13 : vector<1x32xf32> to vector<8x32xf32>
    %15 = arith.addf %12, %14 : vector<8x32xf32>
    %cst_8 = arith.constant 0.000000e+00 : f32
    %16 = vector.broadcast %cst_8 : f32 to vector<8x32xf32>
    %17 = arith.maximumf %15, %16 : vector<8x32xf32>
    %c0_9 = arith.constant 0 : index
    %c0_10 = arith.constant 0 : index
    %18 = vector.load %arg20[%c0_9, %c0_10] : memref<32x32xf32, #tpu.memory_space<vmem>>, vector<32x32xf32>
    %cst_11 = arith.constant dense<0.000000e+00> : vector<8x32xf32>
    %19 = tpu.matmul %17, %18, %cst_11 {dimension_numbers = #tpu.dot_dimension_numbers<[1], [0], [0], [1], [0, 0, 1, 1], [], []>} : vector<8x32xf32>, vector<32x32xf32>, vector<8x32xf32> -> vector<8x32xf32>
    %c0_12 = arith.constant 0 : index
    %c0_13 = arith.constant 0 : index
    %20 = vector.load %arg21[%c0_12, %c0_13] : memref<1x32xf32, #tpu.memory_space<vmem>>, vector<1x32xf32>
    %21 = vector.broadcast %20 : vector<1x32xf32> to vector<8x32xf32>
    %22 = arith.addf %19, %21 : vector<8x32xf32>
    %cst_14 = arith.constant 0.000000e+00 : f32
    %23 = vector.broadcast %cst_14 : f32 to vector<8x32xf32>
    %24 = arith.maximumf %22, %23 : vector<8x32xf32>
    %c0_15 = arith.constant 0 : index
    %c0_16 = arith.constant 0 : index
    %25 = vector.load %arg22[%c0_15, %c0_16] : memref<32x32xf32, #tpu.memory_space<vmem>>, vector<32x32xf32>
    %cst_17 = arith.constant dense<0.000000e+00> : vector<8x32xf32>
    %26 = tpu.matmul %24, %25, %cst_17 {dimension_numbers = #tpu.dot_dimension_numbers<[1], [0], [0], [1], [0, 0, 1, 1], [], []>} : vector<8x32xf32>, vector<32x32xf32>, vector<8x32xf32> -> vector<8x32xf32>
    %c0_18 = arith.constant 0 : index
    %c0_19 = arith.constant 0 : index
    %27 = vector.load %arg23[%c0_18, %c0_19] : memref<1x32xf32, #tpu.memory_space<vmem>>, vector<1x32xf32>
    %28 = vector.broadcast %27 : vector<1x32xf32> to vector<8x32xf32>
    %29 = arith.addf %26, %28 : vector<8x32xf32>
    %cst_20 = arith.constant 0.000000e+00 : f32
    %30 = vector.broadcast %cst_20 : f32 to vector<8x32xf32>
    %31 = arith.maximumf %29, %30 : vector<8x32xf32>
    %c0_21 = arith.constant 0 : index
    %c0_22 = arith.constant 0 : index
    %32 = vector.load %arg24[%c0_21, %c0_22] : memref<32x2xf32, #tpu.memory_space<vmem>>, vector<32x2xf32>
    %cst_23 = arith.constant dense<0.000000e+00> : vector<8x2xf32>
    %33 = tpu.matmul %31, %32, %cst_23 {dimension_numbers = #tpu.dot_dimension_numbers<[1], [0], [0], [1], [0, 0, 1, 1], [], []>} : vector<8x32xf32>, vector<32x2xf32>, vector<8x2xf32> -> vector<8x2xf32>
    %c0_24 = arith.constant 0 : index
    %c0_25 = arith.constant 0 : index
    %34 = vector.load %arg25[%c0_24, %c0_25] : memref<1x2xf32, #tpu.memory_space<vmem>>, vector<1x2xf32>
    %35 = vector.broadcast %34 : vector<1x2xf32> to vector<8x2xf32>
    %36 = arith.addf %33, %35 : vector<8x2xf32>
    %cst_26 = arith.constant 2.30258512 : f32
    %37 = vector.broadcast %cst_26 : f32 to vector<8x2xf32>
    %38 = arith.mulf %37, %36 : vector<8x2xf32>
    %39 = math.exp %38 : vector<8x2xf32>
    %c0_27 = arith.constant 0 : index
    %c0_28 = arith.constant 0 : index
    %40 = vector.load %arg27[%c0_27, %c0_28] : memref<8x2xf32, #tpu.memory_space<vmem>>, vector<8x2xf32>
    tpu.vector_store %arg27[%c0_27, %c0_28], %39 {strides = array<i32>} : memref<8x2xf32, #tpu.memory_space<vmem>>, vector<8x2xf32>,
    %c0_29 = arith.constant 0 : index
    %c0_30 = arith.constant 0 : index
    %41 = vector.load %arg7[%c0_29, %c0_30] : memref<8x2xf32, #tpu.memory_space<vmem>>, vector<8x1xf32>
    %42 = vector.extract_strided_slice %39 {offsets = [0, 0], sizes = [8, 1], strides = [1, 1]} : vector<8x2xf32> to vector<8x1xf32>
    %43 = arith.mulf %41, %42 : vector<8x1xf32>
    %44 = arith.addf %2, %43 : vector<8x1xf32>
    %c0_31 = arith.constant 0 : index
    %c0_32 = arith.constant 0 : index
    %45 = vector.load %arg1[%c0_31, %c0_32] : memref<24x1xi32, #tpu.memory_space<vmem>>, vector<24x1xi32>
    %c0_33 = arith.constant 0 : index
    %c0_34 = arith.constant 0 : index
    %46 = vector.load %arg2[%c0_33, %c0_34] : memref<24x1xi32, #tpu.memory_space<vmem>>, vector<24x1xi32>
    %c0_35 = arith.constant 0 : index
    %c0_36 = arith.constant 0 : index
    %47 = vector.load %arg3[%c0_35, %c0_36] : memref<1x24xi32, #tpu.memory_space<vmem>>, vector<1x24xi32>
    %c0_37 = arith.constant 0 : index
    %c0_38 = arith.constant 0 : index
    %48 = vector.load %arg4[%c0_37, %c0_38] : memref<8x1xi32, #tpu.memory_space<vmem>>, vector<8x1xi32>
    %c0_39 = arith.constant 0 : index
    %c0_40 = arith.constant 0 : index
    %49 = vector.load %arg5[%c0_39, %c0_40] : memref<1x8xi32, #tpu.memory_space<vmem>>, vector<1x8xi32>
    %c0_41 = arith.constant 0 : index
    %c0_42 = arith.constant 0 : index
    %50 = vector.load %arg6[%c0_41, %c0_42] : memref<24x1xi32, #tpu.memory_space<vmem>>, vector<24x1xi32>
    %51 = tpu.iota {dimensions = array<i32: 1>} : vector<24x8xi32>
    %52 = vector.broadcast %45 : vector<24x1xi32> to vector<24x8xi32>
    %53 = arith.cmpi eq, %52, %51 : vector<24x8xi32>
    %cst_43 = arith.constant 1.000000e+00 : f32
    %cst_44 = arith.constant 0.000000e+00 : f32
    %54 = vector.broadcast %cst_43 : f32 to vector<24x8xf32>
    %55 = vector.broadcast %cst_44 : f32 to vector<24x8xf32>
    %56 = arith.select %53, %54, %55 : vector<24x8xi1>, vector<24x8xf32>
    %57 = vector.broadcast %46 : vector<24x1xi32> to vector<24x8xi32>
    %58 = arith.cmpi eq, %57, %51 : vector<24x8xi32>
    %cst_45 = arith.constant 1.000000e+00 : f32
    %cst_46 = arith.constant 0.000000e+00 : f32
    %59 = vector.broadcast %cst_45 : f32 to vector<24x8xf32>
    %60 = vector.broadcast %cst_46 : f32 to vector<24x8xf32>
    %61 = arith.select %58, %59, %60 : vector<24x8xi1>, vector<24x8xf32>
    %62 = arith.truncf %56 : vector<24x8xf32> to vector<24x8xbf16>
    %63 = arith.truncf %61 : vector<24x8xf32> to vector<24x8xbf16>
    %64 = arith.subf %56, %61 : vector<24x8xf32>
    %65 = arith.truncf %64 : vector<24x8xf32> to vector<24x8xbf16>
    %66 = tpu.iota {dimensions = array<i32: 0>} : vector<8x24xi32>
    %67 = vector.broadcast %47 : vector<1x24xi32> to vector<8x24xi32>
    %68 = arith.cmpi eq, %67, %66 : vector<8x24xi32>
    %cst_47 = arith.constant 1.000000e+00 : f32
    %cst_48 = arith.constant 0.000000e+00 : f32
    %69 = vector.broadcast %cst_47 : f32 to vector<8x24xf32>
    %70 = vector.broadcast %cst_48 : f32 to vector<8x24xf32>
    %71 = arith.select %68, %69, %70 : vector<8x24xi1>, vector<8x24xf32>
    %72 = arith.truncf %71 : vector<8x24xf32> to vector<8x24xbf16>
    %73 = tpu.iota {dimensions = array<i32: 1>} : vector<8x2xi32>
    %74 = vector.broadcast %48 : vector<8x1xi32> to vector<8x2xi32>
    %75 = arith.cmpi eq, %74, %73 : vector<8x2xi32>
    %cst_49 = arith.constant 1.000000e+00 : f32
    %cst_50 = arith.constant 0.000000e+00 : f32
    %76 = vector.broadcast %cst_49 : f32 to vector<8x2xf32>
    %77 = vector.broadcast %cst_50 : f32 to vector<8x2xf32>
    %78 = arith.select %75, %76, %77 : vector<8x2xi1>, vector<8x2xf32>
    %79 = arith.truncf %78 : vector<8x2xf32> to vector<8x2xbf16>
    %80 = tpu.iota {dimensions = array<i32: 0>} : vector<2x8xi32>
    %81 = vector.broadcast %49 : vector<1x8xi32> to vector<2x8xi32>
    %82 = arith.cmpi eq, %81, %80 : vector<2x8xi32>
    %cst_51 = arith.constant 1.000000e+00 : f32
    %cst_52 = arith.constant 0.000000e+00 : f32
    %83 = vector.broadcast %cst_51 : f32 to vector<2x8xf32>
    %84 = vector.broadcast %cst_52 : f32 to vector<2x8xf32>
    %85 = arith.select %82, %83, %84 : vector<2x8xi1>, vector<2x8xf32>
    %86 = arith.truncf %85 : vector<2x8xf32> to vector<2x8xbf16>
    %87 = tpu.iota {dimensions = array<i32: 1>} : vector<24x2xi32>
    %88 = vector.broadcast %50 : vector<24x1xi32> to vector<24x2xi32>
    %89 = arith.cmpi eq, %88, %87 : vector<24x2xi32>
    %cst_53 = arith.constant 1.000000e+00 : f32
    %cst_54 = arith.constant 0.000000e+00 : f32
    %90 = vector.broadcast %cst_53 : f32 to vector<24x2xf32>
    %91 = vector.broadcast %cst_54 : f32 to vector<24x2xf32>
    %92 = arith.select %89, %90, %91 : vector<24x2xi1>, vector<24x2xf32>
    %93 = arith.truncf %92 : vector<24x2xf32> to vector<24x2xbf16>
    %94 = arith.truncf %1 : vector<8x3xf32> to vector<8x3xbf16>
    %cst_55 = arith.constant dense<0.000000e+00> : vector<24x3xf32>
    %95 = tpu.matmul %65, %94, %cst_55 {dimension_numbers = #tpu.dot_dimension_numbers<[1], [0], [0], [1], [0, 0, 1, 1], [], []>} : vector<24x8xbf16>, vector<8x3xbf16>, vector<24x3xf32> -> vector<24x3xf32>
    %cst_56 = arith.constant 0.000000e+00 : f32
    %96 = vector.broadcast %cst_56 : f32 to vector<8x7xf32>
    %97 = tpu.concatenate %44, %96 in 1 : vector<8x1xf32>, vector<8x7xf32> -> vector<8x8xf32>
    %c0_57 = arith.constant 0 : index
    %c0_58 = arith.constant 0 : index
    %c0_59 = arith.constant 0 : index
    %98 = vector.load %arg8[%c0_57, %c0_58, %c0_59] : memref<11x64x32xbf16, #tpu.memory_space<vmem>>, vector<1x64x32xbf16>
    %99 = vector.shape_cast %98 : vector<1x64x32xbf16> to vector<64x32xbf16>
    %100 = vector.extract_strided_slice %99 {offsets = [0, 0], sizes = [8, 32], strides = [1, 1]} : vector<64x32xbf16> to vector<8x32xbf16>
    %101 = arith.truncf %97 : vector<8x8xf32> to vector<8x8xbf16>
    %cst_60 = arith.constant dense<0.000000e+00> : vector<8x32xf32>
    %102 = tpu.matmul %101, %100, %cst_60 {dimension_numbers = #tpu.dot_dimension_numbers<[1], [0], [0], [1], [0, 0, 1, 1], [], []>} : vector<8x8xbf16>, vector<8x32xbf16>, vector<8x32xf32> -> vector<8x32xf32>
    %c0_61 = arith.constant 0 : index
    %c0_62 = arith.constant 0 : index
    %c0_63 = arith.constant 0 : index
    %103 = vector.load %arg9[%c0_61, %c0_62, %c0_63] : memref<11x1x32xf32, #tpu.memory_space<vmem>>, vector<1x1x32xf32>
    %104 = vector.shape_cast %103 : vector<1x1x32xf32> to vector<1x32xf32>
    %105 = vector.broadcast %104 : vector<1x32xf32> to vector<8x32xf32>
    %106 = arith.addf %102, %105 : vector<8x32xf32>
    %cst_64 = arith.constant 0.000000e+00 : f32
    %107 = vector.broadcast %cst_64 : f32 to vector<8x32xf32>
    %108 = arith.maximumf %106, %107 : vector<8x32xf32>
    %109 = arith.truncf %108 : vector<8x32xf32> to vector<8x32xbf16>
    %c0_65 = arith.constant 0 : index
    %c0_66 = arith.constant 0 : index
    %c0_67 = arith.constant 0 : index
    %110 = vector.load %arg10[%c0_65, %c0_66, %c0_67] : memref<11x32x32xbf16, #tpu.memory_space<vmem>>, vector<1x32x32xbf16>
    %111 = vector.shape_cast %110 : vector<1x32x32xbf16> to vector<32x32xbf16>
    %cst_68 = arith.constant dense<0.000000e+00> : vector<8x32xf32>
    %112 = tpu.matmul %109, %111, %cst_68 {dimension_numbers = #tpu.dot_dimension_numbers<[1], [0], [0], [1], [0, 0, 1, 1], [], []>} : vector<8x32xbf16>, vector<32x32xbf16>, vector<8x32xf32> -> vector<8x32xf32>
    %c0_69 = arith.constant 0 : index
    %c0_70 = arith.constant 0 : index
    %c0_71 = arith.constant 0 : index
    %113 = vector.load %arg11[%c0_69, %c0_70, %c0_71] : memref<11x1x32xf32, #tpu.memory_space<vmem>>, vector<1x1x32xf32>
    %114 = vector.shape_cast %113 : vector<1x1x32xf32> to vector<1x32xf32>
    %115 = vector.broadcast %114 : vector<1x32xf32> to vector<8x32xf32>
    %116 = arith.addf %112, %115 : vector<8x32xf32>
    %cst_72 = arith.constant 0.000000e+00 : f32
    %117 = vector.broadcast %cst_72 : f32 to vector<8x32xf32>
    %118 = arith.maximumf %116, %117 : vector<8x32xf32>
    %119 = arith.truncf %118 : vector<8x32xf32> to vector<8x32xbf16>
    %c0_73 = arith.constant 0 : index
    %c0_74 = arith.constant 0 : index
    %c0_75 = arith.constant 0 : index
    %120 = vector.load %arg12[%c0_73, %c0_74, %c0_75] : memref<11x32x32xbf16, #tpu.memory_space<vmem>>, vector<1x32x32xbf16>
    %121 = vector.shape_cast %120 : vector<1x32x32xbf16> to vector<32x32xbf16>
    %cst_76 = arith.constant dense<0.000000e+00> : vector<8x32xf32>
    %122 = tpu.matmul %119, %121, %cst_76 {dimension_numbers = #tpu.dot_dimension_numbers<[1], [0], [0], [1], [0, 0, 1, 1], [], []>} : vector<8x32xbf16>, vector<32x32xbf16>, vector<8x32xf32> -> vector<8x32xf32>
    %c0_77 = arith.constant 0 : index
    %c0_78 = arith.constant 0 : index
    %c0_79 = arith.constant 0 : index
    %123 = vector.load %arg13[%c0_77, %c0_78, %c0_79] : memref<11x1x32xf32, #tpu.memory_space<vmem>>, vector<1x1x32xf32>
    %124 = vector.shape_cast %123 : vector<1x1x32xf32> to vector<1x32xf32>
    %125 = vector.broadcast %124 : vector<1x32xf32> to vector<8x32xf32>
    %126 = arith.addf %122, %125 : vector<8x32xf32>
    %cst_80 = arith.constant 0.000000e+00 : f32
    %127 = vector.broadcast %cst_80 : f32 to vector<8x32xf32>
    %128 = arith.maximumf %126, %127 : vector<8x32xf32>
    %129 = arith.truncf %128 : vector<8x32xf32> to vector<8x32xbf16>
    %c0_81 = arith.constant 0 : index
    %c0_82 = arith.constant 0 : index
    %c0_83 = arith.constant 0 : index
    %130 = vector.load %arg14[%c0_81, %c0_82, %c0_83] : memref<11x32x16xbf16, #tpu.memory_space<vmem>>, vector<1x32x16xbf16>
    %131 = vector.shape_cast %130 : vector<1x32x16xbf16> to vector<32x16xbf16>
    %cst_84 = arith.constant dense<0.000000e+00> : vector<8x16xf32>
    %132 = tpu.matmul %129, %131, %cst_84 {dimension_numbers = #tpu.dot_dimension_numbers<[1], [0], [0], [1], [0, 0, 1, 1], [], []>} : vector<8x32xbf16>, vector<32x16xbf16>, vector<8x16xf32> -> vector<8x16xf32>
    %c0_85 = arith.constant 0 : index
    %c0_86 = arith.constant 0 : index
    %c0_87 = arith.constant 0 : index
    %133 = vector.load %arg15[%c0_85, %c0_86, %c0_87] : memref<11x1x16xf32, #tpu.memory_space<vmem>>, vector<1x1x16xf32>
    %134 = vector.shape_cast %133 : vector<1x1x16xf32> to vector<1x16xf32>
    %135 = vector.broadcast %134 : vector<1x16xf32> to vector<8x16xf32>
    %136 = arith.addf %132, %135 : vector<8x16xf32>
    %c0_88 = arith.constant 0 : index
    %c0_89 = arith.constant 0 : index
    %c0_90 = arith.constant 0 : index
    %137 = vector.load %arg16[%c0_88, %c0_89, %c0_90] : memref<11x1x16xf32, #tpu.memory_space<vmem>>, vector<1x1x16xf32>
    %138 = vector.shape_cast %137 : vector<1x1x16xf32> to vector<1x16xf32>
    %c0_91 = arith.constant 0 : index
    %c0_92 = arith.constant 0 : index
    %c0_93 = arith.constant 0 : index
    %139 = vector.load %arg17[%c0_91, %c0_92, %c0_93] : memref<11x1x16xf32, #tpu.memory_space<vmem>>, vector<1x1x16xf32>
    %140 = vector.shape_cast %139 : vector<1x1x16xf32> to vector<1x16xf32>
    %cst_94 = arith.constant dense<0.000000e+00> : vector<8xf32>
    %141 = vector.multi_reduction <add>, %136, %cst_94 [1] : vector<8x16xf32> to vector<8xf32>
    %142 = vector.shape_cast %141 : vector<8xf32> to vector<8x1xf32>
    %cst_95 = arith.constant 6.250000e-02 : f32
    %143 = vector.broadcast %cst_95 : f32 to vector<8x1xf32>
    %144 = arith.mulf %142, %143 : vector<8x1xf32>
    %145 = vector.broadcast %144 : vector<8x1xf32> to vector<8x16xf32>
    %146 = arith.subf %136, %145 : vector<8x16xf32>
    %147 = arith.mulf %146, %146 : vector<8x16xf32>
    %cst_96 = arith.constant dense<0.000000e+00> : vector<8xf32>
    %148 = vector.multi_reduction <add>, %147, %cst_96 [1] : vector<8x16xf32> to vector<8xf32>
    %149 = vector.shape_cast %148 : vector<8xf32> to vector<8x1xf32>
    %cst_97 = arith.constant 6.250000e-02 : f32
    %150 = vector.broadcast %cst_97 : f32 to vector<8x1xf32>
    %151 = arith.mulf %149, %150 : vector<8x1xf32>
    %cst_98 = arith.constant 9.99999974E-6 : f32
    %152 = vector.broadcast %cst_98 : f32 to vector<8x1xf32>
    %153 = arith.addf %151, %152 : vector<8x1xf32>
    %154 = math.rsqrt %153 : vector<8x1xf32>
    %155 = vector.broadcast %154 : vector<8x1xf32> to vector<8x16xf32>
    %156 = arith.mulf %146, %155 : vector<8x16xf32>
    %157 = vector.broadcast %138 : vector<1x16xf32> to vector<8x16xf32>
    %158 = arith.mulf %156, %157 : vector<8x16xf32>
    %159 = vector.broadcast %140 : vector<1x16xf32> to vector<8x16xf32>
    %160 = arith.addf %158, %159 : vector<8x16xf32>
    %cst_99 = arith.constant 0.000000e+00 : f32
    %161 = vector.broadcast %cst_99 : f32 to vector<24x5xf32>
    %162 = tpu.concatenate %95, %161 in 1 : vector<24x3xf32>, vector<24x5xf32> -> vector<24x8xf32>
    %c1 = arith.constant 1 : index
    %c0_100 = arith.constant 0 : index
    %c0_101 = arith.constant 0 : index
    %163 = vector.load %arg8[%c1, %c0_100, %c0_101] : memref<11x64x32xbf16, #tpu.memory_space<vmem>>, vector<1x64x32xbf16>
    %164 = vector.shape_cast %163 : vector<1x64x32xbf16> to vector<64x32xbf16>
    %165 = vector.extract_strided_slice %164 {offsets = [0, 0], sizes = [8, 32], strides = [1, 1]} : vector<64x32xbf16> to vector<8x32xbf16>
    %166 = arith.truncf %162 : vector<24x8xf32> to vector<24x8xbf16>
    %cst_102 = arith.constant dense<0.000000e+00> : vector<24x32xf32>
    %167 = tpu.matmul %166, %165, %cst_102 {dimension_numbers = #tpu.dot_dimension_numbers<[1], [0], [0], [1], [0, 0, 1, 1], [], []>} : vector<24x8xbf16>, vector<8x32xbf16>, vector<24x32xf32> -> vector<24x32xf32>
    %c1_103 = arith.constant 1 : index
    %c0_104 = arith.constant 0 : index
    %c0_105 = arith.constant 0 : index
    %168 = vector.load %arg9[%c1_103, %c0_104, %c0_105] : memref<11x1x32xf32, #tpu.memory_space<vmem>>, vector<1x1x32xf32>
    %169 = vector.shape_cast %168 : vector<1x1x32xf32> to vector<1x32xf32>
    %170 = vector.broadcast %169 : vector<1x32xf32> to vector<24x32xf32>
    %171 = arith.addf %167, %170 : vector<24x32xf32>
    %cst_106 = arith.constant 0.000000e+00 : f32
    %172 = vector.broadcast %cst_106 : f32 to vector<24x32xf32>
    %173 = arith.maximumf %171, %172 : vector<24x32xf32>
    %174 = arith.truncf %173 : vector<24x32xf32> to vector<24x32xbf16>
    %c1_107 = arith.constant 1 : index
    %c0_108 = arith.constant 0 : index
    %c0_109 = arith.constant 0 : index
    %175 = vector.load %arg10[%c1_107, %c0_108, %c0_109] : memref<11x32x32xbf16, #tpu.memory_space<vmem>>, vector<1x32x32xbf16>
    %176 = vector.shape_cast %175 : vector<1x32x32xbf16> to vector<32x32xbf16>
    %cst_110 = arith.constant dense<0.000000e+00> : vector<24x32xf32>
    %177 = tpu.matmul %174, %176, %cst_110 {dimension_numbers = #tpu.dot_dimension_numbers<[1], [0], [0], [1], [0, 0, 1, 1], [], []>} : vector<24x32xbf16>, vector<32x32xbf16>, vector<24x32xf32> -> vector<24x32xf32>
    %c1_111 = arith.constant 1 : index
    %c0_112 = arith.constant 0 : index
    %c0_113 = arith.constant 0 : index
    %178 = vector.load %arg11[%c1_111, %c0_112, %c0_113] : memref<11x1x32xf32, #tpu.memory_space<vmem>>, vector<1x1x32xf32>
    %179 = vector.shape_cast %178 : vector<1x1x32xf32> to vector<1x32xf32>
    %180 = vector.broadcast %179 : vector<1x32xf32> to vector<24x32xf32>
    %181 = arith.addf %177, %180 : vector<24x32xf32>
    %cst_114 = arith.constant 0.000000e+00 : f32
    %182 = vector.broadcast %cst_114 : f32 to vector<24x32xf32>
    %183 = arith.maximumf %181, %182 : vector<24x32xf32>
    %184 = arith.truncf %183 : vector<24x32xf32> to vector<24x32xbf16>
    %c1_115 = arith.constant 1 : index
    %c0_116 = arith.constant 0 : index
    %c0_117 = arith.constant 0 : index
    %185 = vector.load %arg12[%c1_115, %c0_116, %c0_117] : memref<11x32x32xbf16, #tpu.memory_space<vmem>>, vector<1x32x32xbf16>
    %186 = vector.shape_cast %185 : vector<1x32x32xbf16> to vector<32x32xbf16>
    %cst_118 = arith.constant dense<0.000000e+00> : vector<24x32xf32>
    %187 = tpu.matmul %184, %186, %cst_118 {dimension_numbers = #tpu.dot_dimension_numbers<[1], [0], [0], [1], [0, 0, 1, 1], [], []>} : vector<24x32xbf16>, vector<32x32xbf16>, vector<24x32xf32> -> vector<24x32xf32>
    %c1_119 = arith.constant 1 : index
    %c0_120 = arith.constant 0 : index
    %c0_121 = arith.constant 0 : index
    %188 = vector.load %arg13[%c1_119, %c0_120, %c0_121] : memref<11x1x32xf32, #tpu.memory_space<vmem>>, vector<1x1x32xf32>
    %189 = vector.shape_cast %188 : vector<1x1x32xf32> to vector<1x32xf32>
    %190 = vector.broadcast %189 : vector<1x32xf32> to vector<24x32xf32>
    %191 = arith.addf %187, %190 : vector<24x32xf32>
    %cst_122 = arith.constant 0.000000e+00 : f32
    %192 = vector.broadcast %cst_122 : f32 to vector<24x32xf32>
    %193 = arith.maximumf %191, %192 : vector<24x32xf32>
    %194 = arith.truncf %193 : vector<24x32xf32> to vector<24x32xbf16>
    %c1_123 = arith.constant 1 : index
    %c0_124 = arith.constant 0 : index
    %c0_125 = arith.constant 0 : index
    %195 = vector.load %arg14[%c1_123, %c0_124, %c0_125] : memref<11x32x16xbf16, #tpu.memory_space<vmem>>, vector<1x32x16xbf16>
    %196 = vector.shape_cast %195 : vector<1x32x16xbf16> to vector<32x16xbf16>
    %cst_126 = arith.constant dense<0.000000e+00> : vector<24x16xf32>
    %197 = tpu.matmul %194, %196, %cst_126 {dimension_numbers = #tpu.dot_dimension_numbers<[1], [0], [0], [1], [0, 0, 1, 1], [], []>} : vector<24x32xbf16>, vector<32x16xbf16>, vector<24x16xf32> -> vector<24x16xf32>
    %c1_127 = arith.constant 1 : index
    %c0_128 = arith.constant 0 : index
    %c0_129 = arith.constant 0 : index
    %198 = vector.load %arg15[%c1_127, %c0_128, %c0_129] : memref<11x1x16xf32, #tpu.memory_space<vmem>>, vector<1x1x16xf32>
    %199 = vector.shape_cast %198 : vector<1x1x16xf32> to vector<1x16xf32>
    %200 = vector.broadcast %199 : vector<1x16xf32> to vector<24x16xf32>
    %201 = arith.addf %197, %200 : vector<24x16xf32>
    %c1_130 = arith.constant 1 : index
    %c0_131 = arith.constant 0 : index
    %c0_132 = arith.constant 0 : index
    %202 = vector.load %arg16[%c1_130, %c0_131, %c0_132] : memref<11x1x16xf32, #tpu.memory_space<vmem>>, vector<1x1x16xf32>
    %203 = vector.shape_cast %202 : vector<1x1x16xf32> to vector<1x16xf32>
    %c1_133 = arith.constant 1 : index
    %c0_134 = arith.constant 0 : index
    %c0_135 = arith.constant 0 : index
    %204 = vector.load %arg17[%c1_133, %c0_134, %c0_135] : memref<11x1x16xf32, #tpu.memory_space<vmem>>, vector<1x1x16xf32>
    %205 = vector.shape_cast %204 : vector<1x1x16xf32> to vector<1x16xf32>
    %cst_136 = arith.constant dense<0.000000e+00> : vector<24xf32>
    %206 = vector.multi_reduction <add>, %201, %cst_136 [1] : vector<24x16xf32> to vector<24xf32>
    %207 = vector.shape_cast %206 : vector<24xf32> to vector<24x1xf32>
    %cst_137 = arith.constant 6.250000e-02 : f32
    %208 = vector.broadcast %cst_137 : f32 to vector<24x1xf32>
    %209 = arith.mulf %207, %208 : vector<24x1xf32>
    %210 = vector.broadcast %209 : vector<24x1xf32> to vector<24x16xf32>
    %211 = arith.subf %201, %210 : vector<24x16xf32>
    %212 = arith.mulf %211, %211 : vector<24x16xf32>
    %cst_138 = arith.constant dense<0.000000e+00> : vector<24xf32>
    %213 = vector.multi_reduction <add>, %212, %cst_138 [1] : vector<24x16xf32> to vector<24xf32>
    %214 = vector.shape_cast %213 : vector<24xf32> to vector<24x1xf32>
    %cst_139 = arith.constant 6.250000e-02 : f32
    %215 = vector.broadcast %cst_139 : f32 to vector<24x1xf32>
    %216 = arith.mulf %214, %215 : vector<24x1xf32>
    %cst_140 = arith.constant 9.99999974E-6 : f32
    %217 = vector.broadcast %cst_140 : f32 to vector<24x1xf32>
    %218 = arith.addf %216, %217 : vector<24x1xf32>
    %219 = math.rsqrt %218 : vector<24x1xf32>
    %220 = vector.broadcast %219 : vector<24x1xf32> to vector<24x16xf32>
    %221 = arith.mulf %211, %220 : vector<24x16xf32>
    %222 = vector.broadcast %203 : vector<1x16xf32> to vector<24x16xf32>
    %223 = arith.mulf %221, %222 : vector<24x16xf32>
    %224 = vector.broadcast %205 : vector<1x16xf32> to vector<24x16xf32>
    %225 = arith.addf %223, %224 : vector<24x16xf32>
    %cst_141 = arith.constant 0.000000e+00 : f32
    %226 = vector.broadcast %cst_141 : f32 to vector<2x16xf32>
    %227 = arith.truncf %160 : vector<8x16xf32> to vector<8x16xbf16>
    %228 = arith.truncf %226 : vector<2x16xf32> to vector<2x16xbf16>
    %cst_142 = arith.constant dense<0.000000e+00> : vector<24x16xf32>
    %229 = tpu.matmul %62, %227, %cst_142 {dimension_numbers = #tpu.dot_dimension_numbers<[1], [0], [0], [1], [0, 0, 1, 1], [], []>} : vector<24x8xbf16>, vector<8x16xbf16>, vector<24x16xf32> -> vector<24x16xf32>
    %cst_143 = arith.constant dense<0.000000e+00> : vector<24x16xf32>
    %230 = tpu.matmul %63, %227, %cst_143 {dimension_numbers = #tpu.dot_dimension_numbers<[1], [0], [0], [1], [0, 0, 1, 1], [], []>} : vector<24x8xbf16>, vector<8x16xbf16>, vector<24x16xf32> -> vector<24x16xf32>
    %cst_144 = arith.constant dense<0.000000e+00> : vector<8x16xf32>
    %231 = tpu.matmul %79, %228, %cst_144 {dimension_numbers = #tpu.dot_dimension_numbers<[1], [0], [0], [1], [0, 0, 1, 1], [], []>} : vector<8x2xbf16>, vector<2x16xbf16>, vector<8x16xf32> -> vector<8x16xf32>
    %cst_145 = arith.constant dense<0.000000e+00> : vector<24x16xf32>
    %232 = tpu.matmul %93, %228, %cst_145 {dimension_numbers = #tpu.dot_dimension_numbers<[1], [0], [0], [1], [0, 0, 1, 1], [], []>} : vector<24x2xbf16>, vector<2x16xbf16>, vector<24x16xf32> -> vector<24x16xf32>
    %233 = tpu.concatenate %229, %230, %225, %232 in 1 : vector<24x16xf32>, vector<24x16xf32>, vector<24x16xf32>, vector<24x16xf32> -> vector<24x64xf32>
    %c3 = arith.constant 3 : index
    %c0_146 = arith.constant 0 : index
    %c0_147 = arith.constant 0 : index
    %234 = vector.load %arg8[%c3, %c0_146, %c0_147] : memref<11x64x32xbf16, #tpu.memory_space<vmem>>, vector<1x64x32xbf16>
    %235 = vector.shape_cast %234 : vector<1x64x32xbf16> to vector<64x32xbf16>
    %236 = arith.truncf %233 : vector<24x64xf32> to vector<24x64xbf16>
    %cst_148 = arith.constant dense<0.000000e+00> : vector<24x32xf32>
    %237 = tpu.matmul %236, %235, %cst_148 {dimension_numbers = #tpu.dot_dimension_numbers<[1], [0], [0], [1], [0, 0, 1, 1], [], []>} : vector<24x64xbf16>, vector<64x32xbf16>, vector<24x32xf32> -> vector<24x32xf32>
    %c3_149 = arith.constant 3 : index
    %c0_150 = arith.constant 0 : index
    %c0_151 = arith.constant 0 : index
    %238 = vector.load %arg9[%c3_149, %c0_150, %c0_151] : memref<11x1x32xf32, #tpu.memory_space<vmem>>, vector<1x1x32xf32>
    %239 = vector.shape_cast %238 : vector<1x1x32xf32> to vector<1x32xf32>
    %240 = vector.broadcast %239 : vector<1x32xf32> to vector<24x32xf32>
    %241 = arith.addf %237, %240 : vector<24x32xf32>
    %cst_152 = arith.constant 0.000000e+00 : f32
    %242 = vector.broadcast %cst_152 : f32 to vector<24x32xf32>
    %243 = arith.maximumf %241, %242 : vector<24x32xf32>
    %244 = arith.truncf %243 : vector<24x32xf32> to vector<24x32xbf16>
    %c3_153 = arith.constant 3 : index
    %c0_154 = arith.constant 0 : index
    %c0_155 = arith.constant 0 : index
    %245 = vector.load %arg10[%c3_153, %c0_154, %c0_155] : memref<11x32x32xbf16, #tpu.memory_space<vmem>>, vector<1x32x32xbf16>
    %246 = vector.shape_cast %245 : vector<1x32x32xbf16> to vector<32x32xbf16>
    %cst_156 = arith.constant dense<0.000000e+00> : vector<24x32xf32>
    %247 = tpu.matmul %244, %246, %cst_156 {dimension_numbers = #tpu.dot_dimension_numbers<[1], [0], [0], [1], [0, 0, 1, 1], [], []>} : vector<24x32xbf16>, vector<32x32xbf16>, vector<24x32xf32> -> vector<24x32xf32>
    %c3_157 = arith.constant 3 : index
    %c0_158 = arith.constant 0 : index
    %c0_159 = arith.constant 0 : index
    %248 = vector.load %arg11[%c3_157, %c0_158, %c0_159] : memref<11x1x32xf32, #tpu.memory_space<vmem>>, vector<1x1x32xf32>
    %249 = vector.shape_cast %248 : vector<1x1x32xf32> to vector<1x32xf32>
    %250 = vector.broadcast %249 : vector<1x32xf32> to vector<24x32xf32>
    %251 = arith.addf %247, %250 : vector<24x32xf32>
    %cst_160 = arith.constant 0.000000e+00 : f32
    %252 = vector.broadcast %cst_160 : f32 to vector<24x32xf32>
    %253 = arith.maximumf %251, %252 : vector<24x32xf32>
    %254 = arith.truncf %253 : vector<24x32xf32> to vector<24x32xbf16>
    %c3_161 = arith.constant 3 : index
    %c0_162 = arith.constant 0 : index
    %c0_163 = arith.constant 0 : index
    %255 = vector.load %arg12[%c3_161, %c0_162, %c0_163] : memref<11x32x32xbf16, #tpu.memory_space<vmem>>, vector<1x32x32xbf16>
    %256 = vector.shape_cast %255 : vector<1x32x32xbf16> to vector<32x32xbf16>
    %cst_164 = arith.constant dense<0.000000e+00> : vector<24x32xf32>
    %257 = tpu.matmul %254, %256, %cst_164 {dimension_numbers = #tpu.dot_dimension_numbers<[1], [0], [0], [1], [0, 0, 1, 1], [], []>} : vector<24x32xbf16>, vector<32x32xbf16>, vector<24x32xf32> -> vector<24x32xf32>
    %c3_165 = arith.constant 3 : index
    %c0_166 = arith.constant 0 : index
    %c0_167 = arith.constant 0 : index
    %258 = vector.load %arg13[%c3_165, %c0_166, %c0_167] : memref<11x1x32xf32, #tpu.memory_space<vmem>>, vector<1x1x32xf32>
    %259 = vector.shape_cast %258 : vector<1x1x32xf32> to vector<1x32xf32>
    %260 = vector.broadcast %259 : vector<1x32xf32> to vector<24x32xf32>
    %261 = arith.addf %257, %260 : vector<24x32xf32>
    %cst_168 = arith.constant 0.000000e+00 : f32
    %262 = vector.broadcast %cst_168 : f32 to vector<24x32xf32>
    %263 = arith.maximumf %261, %262 : vector<24x32xf32>
    %264 = arith.truncf %263 : vector<24x32xf32> to vector<24x32xbf16>
    %c3_169 = arith.constant 3 : index
    %c0_170 = arith.constant 0 : index
    %c0_171 = arith.constant 0 : index
    %265 = vector.load %arg14[%c3_169, %c0_170, %c0_171] : memref<11x32x16xbf16, #tpu.memory_space<vmem>>, vector<1x32x16xbf16>
    %266 = vector.shape_cast %265 : vector<1x32x16xbf16> to vector<32x16xbf16>
    %cst_172 = arith.constant dense<0.000000e+00> : vector<24x16xf32>
    %267 = tpu.matmul %264, %266, %cst_172 {dimension_numbers = #tpu.dot_dimension_numbers<[1], [0], [0], [1], [0, 0, 1, 1], [], []>} : vector<24x32xbf16>, vector<32x16xbf16>, vector<24x16xf32> -> vector<24x16xf32>
    %c3_173 = arith.constant 3 : index
    %c0_174 = arith.constant 0 : index
    %c0_175 = arith.constant 0 : index
    %268 = vector.load %arg15[%c3_173, %c0_174, %c0_175] : memref<11x1x16xf32, #tpu.memory_space<vmem>>, vector<1x1x16xf32>
    %269 = vector.shape_cast %268 : vector<1x1x16xf32> to vector<1x16xf32>
    %270 = vector.broadcast %269 : vector<1x16xf32> to vector<24x16xf32>
    %271 = arith.addf %267, %270 : vector<24x16xf32>
    %c3_176 = arith.constant 3 : index
    %c0_177 = arith.constant 0 : index
    %c0_178 = arith.constant 0 : index
    %272 = vector.load %arg16[%c3_176, %c0_177, %c0_178] : memref<11x1x16xf32, #tpu.memory_space<vmem>>, vector<1x1x16xf32>
    %273 = vector.shape_cast %272 : vector<1x1x16xf32> to vector<1x16xf32>
    %c3_179 = arith.constant 3 : index
    %c0_180 = arith.constant 0 : index
    %c0_181 = arith.constant 0 : index
    %274 = vector.load %arg17[%c3_179, %c0_180, %c0_181] : memref<11x1x16xf32, #tpu.memory_space<vmem>>, vector<1x1x16xf32>
    %275 = vector.shape_cast %274 : vector<1x1x16xf32> to vector<1x16xf32>
    %cst_182 = arith.constant dense<0.000000e+00> : vector<24xf32>
    %276 = vector.multi_reduction <add>, %271, %cst_182 [1] : vector<24x16xf32> to vector<24xf32>
    %277 = vector.shape_cast %276 : vector<24xf32> to vector<24x1xf32>
    %cst_183 = arith.constant 6.250000e-02 : f32
    %278 = vector.broadcast %cst_183 : f32 to vector<24x1xf32>
    %279 = arith.mulf %277, %278 : vector<24x1xf32>
    %280 = vector.broadcast %279 : vector<24x1xf32> to vector<24x16xf32>
    %281 = arith.subf %271, %280 : vector<24x16xf32>
    %282 = arith.mulf %281, %281 : vector<24x16xf32>
    %cst_184 = arith.constant dense<0.000000e+00> : vector<24xf32>
    %283 = vector.multi_reduction <add>, %282, %cst_184 [1] : vector<24x16xf32> to vector<24xf32>
    %284 = vector.shape_cast %283 : vector<24xf32> to vector<24x1xf32>
    %cst_185 = arith.constant 6.250000e-02 : f32
    %285 = vector.broadcast %cst_185 : f32 to vector<24x1xf32>
    %286 = arith.mulf %284, %285 : vector<24x1xf32>
    %cst_186 = arith.constant 9.99999974E-6 : f32
    %287 = vector.broadcast %cst_186 : f32 to vector<24x1xf32>
    %288 = arith.addf %286, %287 : vector<24x1xf32>
    %289 = math.rsqrt %288 : vector<24x1xf32>
    %290 = vector.broadcast %289 : vector<24x1xf32> to vector<24x16xf32>
    %291 = arith.mulf %281, %290 : vector<24x16xf32>
    %292 = vector.broadcast %273 : vector<1x16xf32> to vector<24x16xf32>
    %293 = arith.mulf %291, %292 : vector<24x16xf32>
    %294 = vector.broadcast %275 : vector<1x16xf32> to vector<24x16xf32>
    %295 = arith.addf %293, %294 : vector<24x16xf32>
    %296 = arith.addf %225, %295 : vector<24x16xf32>
    %297 = tpu.concatenate %229, %296 in 1 : vector<24x16xf32>, vector<24x16xf32> -> vector<24x32xf32>
    %c4 = arith.constant 4 : index
    %c0_187 = arith.constant 0 : index
    %c0_188 = arith.constant 0 : index
    %298 = vector.load %arg8[%c4, %c0_187, %c0_188] : memref<11x64x32xbf16, #tpu.memory_space<vmem>>, vector<1x64x32xbf16>
    %299 = vector.shape_cast %298 : vector<1x64x32xbf16> to vector<64x32xbf16>
    %300 = vector.extract_strided_slice %299 {offsets = [0, 0], sizes = [32, 32], strides = [1, 1]} : vector<64x32xbf16> to vector<32x32xbf16>
    %301 = arith.truncf %297 : vector<24x32xf32> to vector<24x32xbf16>
    %cst_189 = arith.constant dense<0.000000e+00> : vector<24x32xf32>
    %302 = tpu.matmul %301, %300, %cst_189 {dimension_numbers = #tpu.dot_dimension_numbers<[1], [0], [0], [1], [0, 0, 1, 1], [], []>} : vector<24x32xbf16>, vector<32x32xbf16>, vector<24x32xf32> -> vector<24x32xf32>
    %c4_190 = arith.constant 4 : index
    %c0_191 = arith.constant 0 : index
    %c0_192 = arith.constant 0 : index
    %303 = vector.load %arg9[%c4_190, %c0_191, %c0_192] : memref<11x1x32xf32, #tpu.memory_space<vmem>>, vector<1x1x32xf32>
    %304 = vector.shape_cast %303 : vector<1x1x32xf32> to vector<1x32xf32>
    %305 = vector.broadcast %304 : vector<1x32xf32> to vector<24x32xf32>
    %306 = arith.addf %302, %305 : vector<24x32xf32>
    %cst_193 = arith.constant 0.000000e+00 : f32
    %307 = vector.broadcast %cst_193 : f32 to vector<24x32xf32>
    %308 = arith.maximumf %306, %307 : vector<24x32xf32>
    %309 = arith.truncf %308 : vector<24x32xf32> to vector<24x32xbf16>
    %c4_194 = arith.constant 4 : index
    %c0_195 = arith.constant 0 : index
    %c0_196 = arith.constant 0 : index
    %310 = vector.load %arg10[%c4_194, %c0_195, %c0_196] : memref<11x32x32xbf16, #tpu.memory_space<vmem>>, vector<1x32x32xbf16>
    %311 = vector.shape_cast %310 : vector<1x32x32xbf16> to vector<32x32xbf16>
    %cst_197 = arith.constant dense<0.000000e+00> : vector<24x32xf32>
    %312 = tpu.matmul %309, %311, %cst_197 {dimension_numbers = #tpu.dot_dimension_numbers<[1], [0], [0], [1], [0, 0, 1, 1], [], []>} : vector<24x32xbf16>, vector<32x32xbf16>, vector<24x32xf32> -> vector<24x32xf32>
    %c4_198 = arith.constant 4 : index
    %c0_199 = arith.constant 0 : index
    %c0_200 = arith.constant 0 : index
    %313 = vector.load %arg11[%c4_198, %c0_199, %c0_200] : memref<11x1x32xf32, #tpu.memory_space<vmem>>, vector<1x1x32xf32>
    %314 = vector.shape_cast %313 : vector<1x1x32xf32> to vector<1x32xf32>
    %315 = vector.broadcast %314 : vector<1x32xf32> to vector<24x32xf32>
    %316 = arith.addf %312, %315 : vector<24x32xf32>
    %cst_201 = arith.constant 0.000000e+00 : f32
    %317 = vector.broadcast %cst_201 : f32 to vector<24x32xf32>
    %318 = arith.maximumf %316, %317 : vector<24x32xf32>
    %319 = arith.truncf %318 : vector<24x32xf32> to vector<24x32xbf16>
    %c4_202 = arith.constant 4 : index
    %c0_203 = arith.constant 0 : index
    %c0_204 = arith.constant 0 : index
    %320 = vector.load %arg12[%c4_202, %c0_203, %c0_204] : memref<11x32x32xbf16, #tpu.memory_space<vmem>>, vector<1x32x32xbf16>
    %321 = vector.shape_cast %320 : vector<1x32x32xbf16> to vector<32x32xbf16>
    %cst_205 = arith.constant dense<0.000000e+00> : vector<24x32xf32>
    %322 = tpu.matmul %319, %321, %cst_205 {dimension_numbers = #tpu.dot_dimension_numbers<[1], [0], [0], [1], [0, 0, 1, 1], [], []>} : vector<24x32xbf16>, vector<32x32xbf16>, vector<24x32xf32> -> vector<24x32xf32>
    %c4_206 = arith.constant 4 : index
    %c0_207 = arith.constant 0 : index
    %c0_208 = arith.constant 0 : index
    %323 = vector.load %arg13[%c4_206, %c0_207, %c0_208] : memref<11x1x32xf32, #tpu.memory_space<vmem>>, vector<1x1x32xf32>
    %324 = vector.shape_cast %323 : vector<1x1x32xf32> to vector<1x32xf32>
    %325 = vector.broadcast %324 : vector<1x32xf32> to vector<24x32xf32>
    %326 = arith.addf %322, %325 : vector<24x32xf32>
    %cst_209 = arith.constant 0.000000e+00 : f32
    %327 = vector.broadcast %cst_209 : f32 to vector<24x32xf32>
    %328 = arith.maximumf %326, %327 : vector<24x32xf32>
    %329 = arith.truncf %328 : vector<24x32xf32> to vector<24x32xbf16>
    %c4_210 = arith.constant 4 : index
    %c0_211 = arith.constant 0 : index
    %c0_212 = arith.constant 0 : index
    %330 = vector.load %arg14[%c4_210, %c0_211, %c0_212] : memref<11x32x16xbf16, #tpu.memory_space<vmem>>, vector<1x32x16xbf16>
    %331 = vector.shape_cast %330 : vector<1x32x16xbf16> to vector<32x16xbf16>
    %cst_213 = arith.constant dense<0.000000e+00> : vector<24x16xf32>
    %332 = tpu.matmul %329, %331, %cst_213 {dimension_numbers = #tpu.dot_dimension_numbers<[1], [0], [0], [1], [0, 0, 1, 1], [], []>} : vector<24x32xbf16>, vector<32x16xbf16>, vector<24x16xf32> -> vector<24x16xf32>
    %c4_214 = arith.constant 4 : index
    %c0_215 = arith.constant 0 : index
    %c0_216 = arith.constant 0 : index
    %333 = vector.load %arg15[%c4_214, %c0_215, %c0_216] : memref<11x1x16xf32, #tpu.memory_space<vmem>>, vector<1x1x16xf32>
    %334 = vector.shape_cast %333 : vector<1x1x16xf32> to vector<1x16xf32>
    %335 = vector.broadcast %334 : vector<1x16xf32> to vector<24x16xf32>
    %336 = arith.addf %332, %335 : vector<24x16xf32>
    %c4_217 = arith.constant 4 : index
    %c0_218 = arith.constant 0 : index
    %c0_219 = arith.constant 0 : index
    %337 = vector.load %arg16[%c4_217, %c0_218, %c0_219] : memref<11x1x16xf32, #tpu.memory_space<vmem>>, vector<1x1x16xf32>
    %338 = vector.shape_cast %337 : vector<1x1x16xf32> to vector<1x16xf32>
    %c4_220 = arith.constant 4 : index
    %c0_221 = arith.constant 0 : index
    %c0_222 = arith.constant 0 : index
    %339 = vector.load %arg17[%c4_220, %c0_221, %c0_222] : memref<11x1x16xf32, #tpu.memory_space<vmem>>, vector<1x1x16xf32>
    %340 = vector.shape_cast %339 : vector<1x1x16xf32> to vector<1x16xf32>
    %cst_223 = arith.constant dense<0.000000e+00> : vector<24xf32>
    %341 = vector.multi_reduction <add>, %336, %cst_223 [1] : vector<24x16xf32> to vector<24xf32>
    %342 = vector.shape_cast %341 : vector<24xf32> to vector<24x1xf32>
    %cst_224 = arith.constant 6.250000e-02 : f32
    %343 = vector.broadcast %cst_224 : f32 to vector<24x1xf32>
    %344 = arith.mulf %342, %343 : vector<24x1xf32>
    %345 = vector.broadcast %344 : vector<24x1xf32> to vector<24x16xf32>
    %346 = arith.subf %336, %345 : vector<24x16xf32>
    %347 = arith.mulf %346, %346 : vector<24x16xf32>
    %cst_225 = arith.constant dense<0.000000e+00> : vector<24xf32>
    %348 = vector.multi_reduction <add>, %347, %cst_225 [1] : vector<24x16xf32> to vector<24xf32>
    %349 = vector.shape_cast %348 : vector<24xf32> to vector<24x1xf32>
    %cst_226 = arith.constant 6.250000e-02 : f32
    %350 = vector.broadcast %cst_226 : f32 to vector<24x1xf32>
    %351 = arith.mulf %349, %350 : vector<24x1xf32>
    %cst_227 = arith.constant 9.99999974E-6 : f32
    %352 = vector.broadcast %cst_227 : f32 to vector<24x1xf32>
    %353 = arith.addf %351, %352 : vector<24x1xf32>
    %354 = math.rsqrt %353 : vector<24x1xf32>
    %355 = vector.broadcast %354 : vector<24x1xf32> to vector<24x16xf32>
    %356 = arith.mulf %346, %355 : vector<24x16xf32>
    %357 = vector.broadcast %338 : vector<1x16xf32> to vector<24x16xf32>
    %358 = arith.mulf %356, %357 : vector<24x16xf32>
    %359 = vector.broadcast %340 : vector<1x16xf32> to vector<24x16xf32>
    %360 = arith.addf %358, %359 : vector<24x16xf32>
    %361 = arith.truncf %360 : vector<24x16xf32> to vector<24x16xbf16>
    %cst_228 = arith.constant dense<0.000000e+00> : vector<8x16xf32>
    %362 = tpu.matmul %72, %361, %cst_228 {dimension_numbers = #tpu.dot_dimension_numbers<[1], [0], [0], [1], [0, 0, 1, 1], [], []>} : vector<8x24xbf16>, vector<24x16xbf16>, vector<8x16xf32> -> vector<8x16xf32>
    %363 = tpu.concatenate %160, %362, %231 in 1 : vector<8x16xf32>, vector<8x16xf32>, vector<8x16xf32> -> vector<8x48xf32>
    %c5 = arith.constant 5 : index
    %c0_229 = arith.constant 0 : index
    %c0_230 = arith.constant 0 : index
    %364 = vector.load %arg8[%c5, %c0_229, %c0_230] : memref<11x64x32xbf16, #tpu.memory_space<vmem>>, vector<1x64x32xbf16>
    %365 = vector.shape_cast %364 : vector<1x64x32xbf16> to vector<64x32xbf16>
    %366 = vector.extract_strided_slice %365 {offsets = [0, 0], sizes = [48, 32], strides = [1, 1]} : vector<64x32xbf16> to vector<48x32xbf16>
    %367 = arith.truncf %363 : vector<8x48xf32> to vector<8x48xbf16>
    %cst_231 = arith.constant dense<0.000000e+00> : vector<8x32xf32>
    %368 = tpu.matmul %367, %366, %cst_231 {dimension_numbers = #tpu.dot_dimension_numbers<[1], [0], [0], [1], [0, 0, 1, 1], [], []>} : vector<8x48xbf16>, vector<48x32xbf16>, vector<8x32xf32> -> vector<8x32xf32>
    %c5_232 = arith.constant 5 : index
    %c0_233 = arith.constant 0 : index
    %c0_234 = arith.constant 0 : index
    %369 = vector.load %arg9[%c5_232, %c0_233, %c0_234] : memref<11x1x32xf32, #tpu.memory_space<vmem>>, vector<1x1x32xf32>
    %370 = vector.shape_cast %369 : vector<1x1x32xf32> to vector<1x32xf32>
    %371 = vector.broadcast %370 : vector<1x32xf32> to vector<8x32xf32>
    %372 = arith.addf %368, %371 : vector<8x32xf32>
    %cst_235 = arith.constant 0.000000e+00 : f32
    %373 = vector.broadcast %cst_235 : f32 to vector<8x32xf32>
    %374 = arith.maximumf %372, %373 : vector<8x32xf32>
    %375 = arith.truncf %374 : vector<8x32xf32> to vector<8x32xbf16>
    %c5_236 = arith.constant 5 : index
    %c0_237 = arith.constant 0 : index
    %c0_238 = arith.constant 0 : index
    %376 = vector.load %arg10[%c5_236, %c0_237, %c0_238] : memref<11x32x32xbf16, #tpu.memory_space<vmem>>, vector<1x32x32xbf16>
    %377 = vector.shape_cast %376 : vector<1x32x32xbf16> to vector<32x32xbf16>
    %cst_239 = arith.constant dense<0.000000e+00> : vector<8x32xf32>
    %378 = tpu.matmul %375, %377, %cst_239 {dimension_numbers = #tpu.dot_dimension_numbers<[1], [0], [0], [1], [0, 0, 1, 1], [], []>} : vector<8x32xbf16>, vector<32x32xbf16>, vector<8x32xf32> -> vector<8x32xf32>
    %c5_240 = arith.constant 5 : index
    %c0_241 = arith.constant 0 : index
    %c0_242 = arith.constant 0 : index
    %379 = vector.load %arg11[%c5_240, %c0_241, %c0_242] : memref<11x1x32xf32, #tpu.memory_space<vmem>>, vector<1x1x32xf32>
    %380 = vector.shape_cast %379 : vector<1x1x32xf32> to vector<1x32xf32>
    %381 = vector.broadcast %380 : vector<1x32xf32> to vector<8x32xf32>
    %382 = arith.addf %378, %381 : vector<8x32xf32>
    %cst_243 = arith.constant 0.000000e+00 : f32
    %383 = vector.broadcast %cst_243 : f32 to vector<8x32xf32>
    %384 = arith.maximumf %382, %383 : vector<8x32xf32>
    %385 = arith.truncf %384 : vector<8x32xf32> to vector<8x32xbf16>
    %c5_244 = arith.constant 5 : index
    %c0_245 = arith.constant 0 : index
    %c0_246 = arith.constant 0 : index
    %386 = vector.load %arg12[%c5_244, %c0_245, %c0_246] : memref<11x32x32xbf16, #tpu.memory_space<vmem>>, vector<1x32x32xbf16>
    %387 = vector.shape_cast %386 : vector<1x32x32xbf16> to vector<32x32xbf16>
    %cst_247 = arith.constant dense<0.000000e+00> : vector<8x32xf32>
    %388 = tpu.matmul %385, %387, %cst_247 {dimension_numbers = #tpu.dot_dimension_numbers<[1], [0], [0], [1], [0, 0, 1, 1], [], []>} : vector<8x32xbf16>, vector<32x32xbf16>, vector<8x32xf32> -> vector<8x32xf32>
    %c5_248 = arith.constant 5 : index
    %c0_249 = arith.constant 0 : index
    %c0_250 = arith.constant 0 : index
    %389 = vector.load %arg13[%c5_248, %c0_249, %c0_250] : memref<11x1x32xf32, #tpu.memory_space<vmem>>, vector<1x1x32xf32>
    %390 = vector.shape_cast %389 : vector<1x1x32xf32> to vector<1x32xf32>
    %391 = vector.broadcast %390 : vector<1x32xf32> to vector<8x32xf32>
    %392 = arith.addf %388, %391 : vector<8x32xf32>
    %cst_251 = arith.constant 0.000000e+00 : f32
    %393 = vector.broadcast %cst_251 : f32 to vector<8x32xf32>
    %394 = arith.maximumf %392, %393 : vector<8x32xf32>
    %395 = arith.truncf %394 : vector<8x32xf32> to vector<8x32xbf16>
    %c5_252 = arith.constant 5 : index
    %c0_253 = arith.constant 0 : index
    %c0_254 = arith.constant 0 : index
    %396 = vector.load %arg14[%c5_252, %c0_253, %c0_254] : memref<11x32x16xbf16, #tpu.memory_space<vmem>>, vector<1x32x16xbf16>
    %397 = vector.shape_cast %396 : vector<1x32x16xbf16> to vector<32x16xbf16>
    %cst_255 = arith.constant dense<0.000000e+00> : vector<8x16xf32>
    %398 = tpu.matmul %395, %397, %cst_255 {dimension_numbers = #tpu.dot_dimension_numbers<[1], [0], [0], [1], [0, 0, 1, 1], [], []>} : vector<8x32xbf16>, vector<32x16xbf16>, vector<8x16xf32> -> vector<8x16xf32>
    %c5_256 = arith.constant 5 : index
    %c0_257 = arith.constant 0 : index
    %c0_258 = arith.constant 0 : index
    %399 = vector.load %arg15[%c5_256, %c0_257, %c0_258] : memref<11x1x16xf32, #tpu.memory_space<vmem>>, vector<1x1x16xf32>
    %400 = vector.shape_cast %399 : vector<1x1x16xf32> to vector<1x16xf32>
    %401 = vector.broadcast %400 : vector<1x16xf32> to vector<8x16xf32>
    %402 = arith.addf %398, %401 : vector<8x16xf32>
    %c5_259 = arith.constant 5 : index
    %c0_260 = arith.constant 0 : index
    %c0_261 = arith.constant 0 : index
    %403 = vector.load %arg16[%c5_259, %c0_260, %c0_261] : memref<11x1x16xf32, #tpu.memory_space<vmem>>, vector<1x1x16xf32>
    %404 = vector.shape_cast %403 : vector<1x1x16xf32> to vector<1x16xf32>
    %c5_262 = arith.constant 5 : index
    %c0_263 = arith.constant 0 : index
    %c0_264 = arith.constant 0 : index
    %405 = vector.load %arg17[%c5_262, %c0_263, %c0_264] : memref<11x1x16xf32, #tpu.memory_space<vmem>>, vector<1x1x16xf32>
    %406 = vector.shape_cast %405 : vector<1x1x16xf32> to vector<1x16xf32>
    %cst_265 = arith.constant dense<0.000000e+00> : vector<8xf32>
    %407 = vector.multi_reduction <add>, %402, %cst_265 [1] : vector<8x16xf32> to vector<8xf32>
    %408 = vector.shape_cast %407 : vector<8xf32> to vector<8x1xf32>
    %cst_266 = arith.constant 6.250000e-02 : f32
    %409 = vector.broadcast %cst_266 : f32 to vector<8x1xf32>
    %410 = arith.mulf %408, %409 : vector<8x1xf32>
    %411 = vector.broadcast %410 : vector<8x1xf32> to vector<8x16xf32>
    %412 = arith.subf %402, %411 : vector<8x16xf32>
    %413 = arith.mulf %412, %412 : vector<8x16xf32>
    %cst_267 = arith.constant dense<0.000000e+00> : vector<8xf32>
    %414 = vector.multi_reduction <add>, %413, %cst_267 [1] : vector<8x16xf32> to vector<8xf32>
    %415 = vector.shape_cast %414 : vector<8xf32> to vector<8x1xf32>
    %cst_268 = arith.constant 6.250000e-02 : f32
    %416 = vector.broadcast %cst_268 : f32 to vector<8x1xf32>
    %417 = arith.mulf %415, %416 : vector<8x1xf32>
    %cst_269 = arith.constant 9.99999974E-6 : f32
    %418 = vector.broadcast %cst_269 : f32 to vector<8x1xf32>
    %419 = arith.addf %417, %418 : vector<8x1xf32>
    %420 = math.rsqrt %419 : vector<8x1xf32>
    %421 = vector.broadcast %420 : vector<8x1xf32> to vector<8x16xf32>
    %422 = arith.mulf %412, %421 : vector<8x16xf32>
    %423 = vector.broadcast %404 : vector<1x16xf32> to vector<8x16xf32>
    %424 = arith.mulf %422, %423 : vector<8x16xf32>
    %425 = vector.broadcast %406 : vector<1x16xf32> to vector<8x16xf32>
    %426 = arith.addf %424, %425 : vector<8x16xf32>
    %427 = arith.addf %160, %426 : vector<8x16xf32>
    %428 = arith.truncf %427 : vector<8x16xf32> to vector<8x16xbf16>
    %cst_270 = arith.constant dense<0.000000e+00> : vector<2x16xf32>
    %429 = tpu.matmul %86, %428, %cst_270 {dimension_numbers = #tpu.dot_dimension_numbers<[1], [0], [0], [1], [0, 0, 1, 1], [], []>} : vector<2x8xbf16>, vector<8x16xbf16>, vector<2x16xf32> -> vector<2x16xf32>
    %430 = tpu.concatenate %226, %429 in 1 : vector<2x16xf32>, vector<2x16xf32> -> vector<2x32xf32>
    %c6 = arith.constant 6 : index
    %c0_271 = arith.constant 0 : index
    %c0_272 = arith.constant 0 : index
    %431 = vector.load %arg8[%c6, %c0_271, %c0_272] : memref<11x64x32xbf16, #tpu.memory_space<vmem>>, vector<1x64x32xbf16>
    %432 = vector.shape_cast %431 : vector<1x64x32xbf16> to vector<64x32xbf16>
    %433 = vector.extract_strided_slice %432 {offsets = [0, 0], sizes = [32, 32], strides = [1, 1]} : vector<64x32xbf16> to vector<32x32xbf16>
    %434 = arith.truncf %430 : vector<2x32xf32> to vector<2x32xbf16>
    %cst_273 = arith.constant dense<0.000000e+00> : vector<2x32xf32>
    %435 = tpu.matmul %434, %433, %cst_273 {dimension_numbers = #tpu.dot_dimension_numbers<[1], [0], [0], [1], [0, 0, 1, 1], [], []>} : vector<2x32xbf16>, vector<32x32xbf16>, vector<2x32xf32> -> vector<2x32xf32>
    %c6_274 = arith.constant 6 : index
    %c0_275 = arith.constant 0 : index
    %c0_276 = arith.constant 0 : index
    %436 = vector.load %arg9[%c6_274, %c0_275, %c0_276] : memref<11x1x32xf32, #tpu.memory_space<vmem>>, vector<1x1x32xf32>
    %437 = vector.shape_cast %436 : vector<1x1x32xf32> to vector<1x32xf32>
    %438 = vector.broadcast %437 : vector<1x32xf32> to vector<2x32xf32>
    %439 = arith.addf %435, %438 : vector<2x32xf32>
    %cst_277 = arith.constant 0.000000e+00 : f32
    %440 = vector.broadcast %cst_277 : f32 to vector<2x32xf32>
    %441 = arith.maximumf %439, %440 : vector<2x32xf32>
    %442 = arith.truncf %441 : vector<2x32xf32> to vector<2x32xbf16>
    %c6_278 = arith.constant 6 : index
    %c0_279 = arith.constant 0 : index
    %c0_280 = arith.constant 0 : index
    %443 = vector.load %arg10[%c6_278, %c0_279, %c0_280] : memref<11x32x32xbf16, #tpu.memory_space<vmem>>, vector<1x32x32xbf16>
    %444 = vector.shape_cast %443 : vector<1x32x32xbf16> to vector<32x32xbf16>
    %cst_281 = arith.constant dense<0.000000e+00> : vector<2x32xf32>
    %445 = tpu.matmul %442, %444, %cst_281 {dimension_numbers = #tpu.dot_dimension_numbers<[1], [0], [0], [1], [0, 0, 1, 1], [], []>} : vector<2x32xbf16>, vector<32x32xbf16>, vector<2x32xf32> -> vector<2x32xf32>
    %c6_282 = arith.constant 6 : index
    %c0_283 = arith.constant 0 : index
    %c0_284 = arith.constant 0 : index
    %446 = vector.load %arg11[%c6_282, %c0_283, %c0_284] : memref<11x1x32xf32, #tpu.memory_space<vmem>>, vector<1x1x32xf32>
    %447 = vector.shape_cast %446 : vector<1x1x32xf32> to vector<1x32xf32>
    %448 = vector.broadcast %447 : vector<1x32xf32> to vector<2x32xf32>
    %449 = arith.addf %445, %448 : vector<2x32xf32>
    %cst_285 = arith.constant 0.000000e+00 : f32
    %450 = vector.broadcast %cst_285 : f32 to vector<2x32xf32>
    %451 = arith.maximumf %449, %450 : vector<2x32xf32>
    %452 = arith.truncf %451 : vector<2x32xf32> to vector<2x32xbf16>
    %c6_286 = arith.constant 6 : index
    %c0_287 = arith.constant 0 : index
    %c0_288 = arith.constant 0 : index
    %453 = vector.load %arg12[%c6_286, %c0_287, %c0_288] : memref<11x32x32xbf16, #tpu.memory_space<vmem>>, vector<1x32x32xbf16>
    %454 = vector.shape_cast %453 : vector<1x32x32xbf16> to vector<32x32xbf16>
    %cst_289 = arith.constant dense<0.000000e+00> : vector<2x32xf32>
    %455 = tpu.matmul %452, %454, %cst_289 {dimension_numbers = #tpu.dot_dimension_numbers<[1], [0], [0], [1], [0, 0, 1, 1], [], []>} : vector<2x32xbf16>, vector<32x32xbf16>, vector<2x32xf32> -> vector<2x32xf32>
    %c6_290 = arith.constant 6 : index
    %c0_291 = arith.constant 0 : index
    %c0_292 = arith.constant 0 : index
    %456 = vector.load %arg13[%c6_290, %c0_291, %c0_292] : memref<11x1x32xf32, #tpu.memory_space<vmem>>, vector<1x1x32xf32>
    %457 = vector.shape_cast %456 : vector<1x1x32xf32> to vector<1x32xf32>
    %458 = vector.broadcast %457 : vector<1x32xf32> to vector<2x32xf32>
    %459 = arith.addf %455, %458 : vector<2x32xf32>
    %cst_293 = arith.constant 0.000000e+00 : f32
    %460 = vector.broadcast %cst_293 : f32 to vector<2x32xf32>
    %461 = arith.maximumf %459, %460 : vector<2x32xf32>
    %462 = arith.truncf %461 : vector<2x32xf32> to vector<2x32xbf16>
    %c6_294 = arith.constant 6 : index
    %c0_295 = arith.constant 0 : index
    %c0_296 = arith.constant 0 : index
    %463 = vector.load %arg14[%c6_294, %c0_295, %c0_296] : memref<11x32x16xbf16, #tpu.memory_space<vmem>>, vector<1x32x16xbf16>
    %464 = vector.shape_cast %463 : vector<1x32x16xbf16> to vector<32x16xbf16>
    %cst_297 = arith.constant dense<0.000000e+00> : vector<2x16xf32>
    %465 = tpu.matmul %462, %464, %cst_297 {dimension_numbers = #tpu.dot_dimension_numbers<[1], [0], [0], [1], [0, 0, 1, 1], [], []>} : vector<2x32xbf16>, vector<32x16xbf16>, vector<2x16xf32> -> vector<2x16xf32>
    %c6_298 = arith.constant 6 : index
    %c0_299 = arith.constant 0 : index
    %c0_300 = arith.constant 0 : index
    %466 = vector.load %arg15[%c6_298, %c0_299, %c0_300] : memref<11x1x16xf32, #tpu.memory_space<vmem>>, vector<1x1x16xf32>
    %467 = vector.shape_cast %466 : vector<1x1x16xf32> to vector<1x16xf32>
    %468 = vector.broadcast %467 : vector<1x16xf32> to vector<2x16xf32>
    %469 = arith.addf %465, %468 : vector<2x16xf32>
    %c6_301 = arith.constant 6 : index
    %c0_302 = arith.constant 0 : index
    %c0_303 = arith.constant 0 : index
    %470 = vector.load %arg16[%c6_301, %c0_302, %c0_303] : memref<11x1x16xf32, #tpu.memory_space<vmem>>, vector<1x1x16xf32>
    %471 = vector.shape_cast %470 : vector<1x1x16xf32> to vector<1x16xf32>
    %c6_304 = arith.constant 6 : index
    %c0_305 = arith.constant 0 : index
    %c0_306 = arith.constant 0 : index
    %472 = vector.load %arg17[%c6_304, %c0_305, %c0_306] : memref<11x1x16xf32, #tpu.memory_space<vmem>>, vector<1x1x16xf32>
    %473 = vector.shape_cast %472 : vector<1x1x16xf32> to vector<1x16xf32>
    %cst_307 = arith.constant dense<0.000000e+00> : vector<2xf32>
    %474 = vector.multi_reduction <add>, %469, %cst_307 [1] : vector<2x16xf32> to vector<2xf32>
    %475 = vector.shape_cast %474 : vector<2xf32> to vector<2x1xf32>
    %cst_308 = arith.constant 6.250000e-02 : f32
    %476 = vector.broadcast %cst_308 : f32 to vector<2x1xf32>
    %477 = arith.mulf %475, %476 : vector<2x1xf32>
    %478 = vector.broadcast %477 : vector<2x1xf32> to vector<2x16xf32>
    %479 = arith.subf %469, %478 : vector<2x16xf32>
    %480 = arith.mulf %479, %479 : vector<2x16xf32>
    %cst_309 = arith.constant dense<0.000000e+00> : vector<2xf32>
    %481 = vector.multi_reduction <add>, %480, %cst_309 [1] : vector<2x16xf32> to vector<2xf32>
    %482 = vector.shape_cast %481 : vector<2xf32> to vector<2x1xf32>
    %cst_310 = arith.constant 6.250000e-02 : f32
    %483 = vector.broadcast %cst_310 : f32 to vector<2x1xf32>
    %484 = arith.mulf %482, %483 : vector<2x1xf32>
    %cst_311 = arith.constant 9.99999974E-6 : f32
    %485 = vector.broadcast %cst_311 : f32 to vector<2x1xf32>
    %486 = arith.addf %484, %485 : vector<2x1xf32>
    %487 = math.rsqrt %486 : vector<2x1xf32>
    %488 = vector.broadcast %487 : vector<2x1xf32> to vector<2x16xf32>
    %489 = arith.mulf %479, %488 : vector<2x16xf32>
    %490 = vector.broadcast %471 : vector<1x16xf32> to vector<2x16xf32>
    %491 = arith.mulf %489, %490 : vector<2x16xf32>
    %492 = vector.broadcast %473 : vector<1x16xf32> to vector<2x16xf32>
    %493 = arith.addf %491, %492 : vector<2x16xf32>
    %494 = arith.addf %226, %493 : vector<2x16xf32>
    %495 = arith.truncf %427 : vector<8x16xf32> to vector<8x16xbf16>
    %496 = arith.truncf %494 : vector<2x16xf32> to vector<2x16xbf16>
    %cst_312 = arith.constant dense<0.000000e+00> : vector<24x16xf32>
    %497 = tpu.matmul %62, %495, %cst_312 {dimension_numbers = #tpu.dot_dimension_numbers<[1], [0], [0], [1], [0, 0, 1, 1], [], []>} : vector<24x8xbf16>, vector<8x16xbf16>, vector<24x16xf32> -> vector<24x16xf32>
    %cst_313 = arith.constant dense<0.000000e+00> : vector<24x16xf32>
    %498 = tpu.matmul %63, %495, %cst_313 {dimension_numbers = #tpu.dot_dimension_numbers<[1], [0], [0], [1], [0, 0, 1, 1], [], []>} : vector<24x8xbf16>, vector<8x16xbf16>, vector<24x16xf32> -> vector<24x16xf32>
    %cst_314 = arith.constant dense<0.000000e+00> : vector<8x16xf32>
    %499 = tpu.matmul %79, %496, %cst_314 {dimension_numbers = #tpu.dot_dimension_numbers<[1], [0], [0], [1], [0, 0, 1, 1], [], []>} : vector<8x2xbf16>, vector<2x16xbf16>, vector<8x16xf32> -> vector<8x16xf32>
    %cst_315 = arith.constant dense<0.000000e+00> : vector<24x16xf32>
    %500 = tpu.matmul %93, %496, %cst_315 {dimension_numbers = #tpu.dot_dimension_numbers<[1], [0], [0], [1], [0, 0, 1, 1], [], []>} : vector<24x2xbf16>, vector<2x16xbf16>, vector<24x16xf32> -> vector<24x16xf32>
    %501 = tpu.concatenate %497, %498, %296, %500 in 1 : vector<24x16xf32>, vector<24x16xf32>, vector<24x16xf32>, vector<24x16xf32> -> vector<24x64xf32>
    %c7 = arith.constant 7 : index
    %c0_316 = arith.constant 0 : index
    %c0_317 = arith.constant 0 : index
    %502 = vector.load %arg8[%c7, %c0_316, %c0_317] : memref<11x64x32xbf16, #tpu.memory_space<vmem>>, vector<1x64x32xbf16>
    %503 = vector.shape_cast %502 : vector<1x64x32xbf16> to vector<64x32xbf16>
    %504 = arith.truncf %501 : vector<24x64xf32> to vector<24x64xbf16>
    %cst_318 = arith.constant dense<0.000000e+00> : vector<24x32xf32>
    %505 = tpu.matmul %504, %503, %cst_318 {dimension_numbers = #tpu.dot_dimension_numbers<[1], [0], [0], [1], [0, 0, 1, 1], [], []>} : vector<24x64xbf16>, vector<64x32xbf16>, vector<24x32xf32> -> vector<24x32xf32>
    %c7_319 = arith.constant 7 : index
    %c0_320 = arith.constant 0 : index
    %c0_321 = arith.constant 0 : index
    %506 = vector.load %arg9[%c7_319, %c0_320, %c0_321] : memref<11x1x32xf32, #tpu.memory_space<vmem>>, vector<1x1x32xf32>
    %507 = vector.shape_cast %506 : vector<1x1x32xf32> to vector<1x32xf32>
    %508 = vector.broadcast %507 : vector<1x32xf32> to vector<24x32xf32>
    %509 = arith.addf %505, %508 : vector<24x32xf32>
    %cst_322 = arith.constant 0.000000e+00 : f32
    %510 = vector.broadcast %cst_322 : f32 to vector<24x32xf32>
    %511 = arith.maximumf %509, %510 : vector<24x32xf32>
    %512 = arith.truncf %511 : vector<24x32xf32> to vector<24x32xbf16>
    %c7_323 = arith.constant 7 : index
    %c0_324 = arith.constant 0 : index
    %c0_325 = arith.constant 0 : index
    %513 = vector.load %arg10[%c7_323, %c0_324, %c0_325] : memref<11x32x32xbf16, #tpu.memory_space<vmem>>, vector<1x32x32xbf16>
    %514 = vector.shape_cast %513 : vector<1x32x32xbf16> to vector<32x32xbf16>
    %cst_326 = arith.constant dense<0.000000e+00> : vector<24x32xf32>
    %515 = tpu.matmul %512, %514, %cst_326 {dimension_numbers = #tpu.dot_dimension_numbers<[1], [0], [0], [1], [0, 0, 1, 1], [], []>} : vector<24x32xbf16>, vector<32x32xbf16>, vector<24x32xf32> -> vector<24x32xf32>
    %c7_327 = arith.constant 7 : index
    %c0_328 = arith.constant 0 : index
    %c0_329 = arith.constant 0 : index
    %516 = vector.load %arg11[%c7_327, %c0_328, %c0_329] : memref<11x1x32xf32, #tpu.memory_space<vmem>>, vector<1x1x32xf32>
    %517 = vector.shape_cast %516 : vector<1x1x32xf32> to vector<1x32xf32>
    %518 = vector.broadcast %517 : vector<1x32xf32> to vector<24x32xf32>
    %519 = arith.addf %515, %518 : vector<24x32xf32>
    %cst_330 = arith.constant 0.000000e+00 : f32
    %520 = vector.broadcast %cst_330 : f32 to vector<24x32xf32>
    %521 = arith.maximumf %519, %520 : vector<24x32xf32>
    %522 = arith.truncf %521 : vector<24x32xf32> to vector<24x32xbf16>
    %c7_331 = arith.constant 7 : index
    %c0_332 = arith.constant 0 : index
    %c0_333 = arith.constant 0 : index
    %523 = vector.load %arg12[%c7_331, %c0_332, %c0_333] : memref<11x32x32xbf16, #tpu.memory_space<vmem>>, vector<1x32x32xbf16>
    %524 = vector.shape_cast %523 : vector<1x32x32xbf16> to vector<32x32xbf16>
    %cst_334 = arith.constant dense<0.000000e+00> : vector<24x32xf32>
    %525 = tpu.matmul %522, %524, %cst_334 {dimension_numbers = #tpu.dot_dimension_numbers<[1], [0], [0], [1], [0, 0, 1, 1], [], []>} : vector<24x32xbf16>, vector<32x32xbf16>, vector<24x32xf32> -> vector<24x32xf32>
    %c7_335 = arith.constant 7 : index
    %c0_336 = arith.constant 0 : index
    %c0_337 = arith.constant 0 : index
    %526 = vector.load %arg13[%c7_335, %c0_336, %c0_337] : memref<11x1x32xf32, #tpu.memory_space<vmem>>, vector<1x1x32xf32>
    %527 = vector.shape_cast %526 : vector<1x1x32xf32> to vector<1x32xf32>
    %528 = vector.broadcast %527 : vector<1x32xf32> to vector<24x32xf32>
    %529 = arith.addf %525, %528 : vector<24x32xf32>
    %cst_338 = arith.constant 0.000000e+00 : f32
    %530 = vector.broadcast %cst_338 : f32 to vector<24x32xf32>
    %531 = arith.maximumf %529, %530 : vector<24x32xf32>
    %532 = arith.truncf %531 : vector<24x32xf32> to vector<24x32xbf16>
    %c7_339 = arith.constant 7 : index
    %c0_340 = arith.constant 0 : index
    %c0_341 = arith.constant 0 : index
    %533 = vector.load %arg14[%c7_339, %c0_340, %c0_341] : memref<11x32x16xbf16, #tpu.memory_space<vmem>>, vector<1x32x16xbf16>
    %534 = vector.shape_cast %533 : vector<1x32x16xbf16> to vector<32x16xbf16>
    %cst_342 = arith.constant dense<0.000000e+00> : vector<24x16xf32>
    %535 = tpu.matmul %532, %534, %cst_342 {dimension_numbers = #tpu.dot_dimension_numbers<[1], [0], [0], [1], [0, 0, 1, 1], [], []>} : vector<24x32xbf16>, vector<32x16xbf16>, vector<24x16xf32> -> vector<24x16xf32>
    %c7_343 = arith.constant 7 : index
    %c0_344 = arith.constant 0 : index
    %c0_345 = arith.constant 0 : index
    %536 = vector.load %arg15[%c7_343, %c0_344, %c0_345] : memref<11x1x16xf32, #tpu.memory_space<vmem>>, vector<1x1x16xf32>
    %537 = vector.shape_cast %536 : vector<1x1x16xf32> to vector<1x16xf32>
    %538 = vector.broadcast %537 : vector<1x16xf32> to vector<24x16xf32>
    %539 = arith.addf %535, %538 : vector<24x16xf32>
    %c7_346 = arith.constant 7 : index
    %c0_347 = arith.constant 0 : index
    %c0_348 = arith.constant 0 : index
    %540 = vector.load %arg16[%c7_346, %c0_347, %c0_348] : memref<11x1x16xf32, #tpu.memory_space<vmem>>, vector<1x1x16xf32>
    %541 = vector.shape_cast %540 : vector<1x1x16xf32> to vector<1x16xf32>
    %c7_349 = arith.constant 7 : index
    %c0_350 = arith.constant 0 : index
    %c0_351 = arith.constant 0 : index
    %542 = vector.load %arg17[%c7_349, %c0_350, %c0_351] : memref<11x1x16xf32, #tpu.memory_space<vmem>>, vector<1x1x16xf32>
    %543 = vector.shape_cast %542 : vector<1x1x16xf32> to vector<1x16xf32>
    %cst_352 = arith.constant dense<0.000000e+00> : vector<24xf32>
    %544 = vector.multi_reduction <add>, %539, %cst_352 [1] : vector<24x16xf32> to vector<24xf32>
    %545 = vector.shape_cast %544 : vector<24xf32> to vector<24x1xf32>
    %cst_353 = arith.constant 6.250000e-02 : f32
    %546 = vector.broadcast %cst_353 : f32 to vector<24x1xf32>
    %547 = arith.mulf %545, %546 : vector<24x1xf32>
    %548 = vector.broadcast %547 : vector<24x1xf32> to vector<24x16xf32>
    %549 = arith.subf %539, %548 : vector<24x16xf32>
    %550 = arith.mulf %549, %549 : vector<24x16xf32>
    %cst_354 = arith.constant dense<0.000000e+00> : vector<24xf32>
    %551 = vector.multi_reduction <add>, %550, %cst_354 [1] : vector<24x16xf32> to vector<24xf32>
    %552 = vector.shape_cast %551 : vector<24xf32> to vector<24x1xf32>
    %cst_355 = arith.constant 6.250000e-02 : f32
    %553 = vector.broadcast %cst_355 : f32 to vector<24x1xf32>
    %554 = arith.mulf %552, %553 : vector<24x1xf32>
    %cst_356 = arith.constant 9.99999974E-6 : f32
    %555 = vector.broadcast %cst_356 : f32 to vector<24x1xf32>
    %556 = arith.addf %554, %555 : vector<24x1xf32>
    %557 = math.rsqrt %556 : vector<24x1xf32>
    %558 = vector.broadcast %557 : vector<24x1xf32> to vector<24x16xf32>
    %559 = arith.mulf %549, %558 : vector<24x16xf32>
    %560 = vector.broadcast %541 : vector<1x16xf32> to vector<24x16xf32>
    %561 = arith.mulf %559, %560 : vector<24x16xf32>
    %562 = vector.broadcast %543 : vector<1x16xf32> to vector<24x16xf32>
    %563 = arith.addf %561, %562 : vector<24x16xf32>
    %564 = arith.addf %296, %563 : vector<24x16xf32>
    %565 = tpu.concatenate %497, %564 in 1 : vector<24x16xf32>, vector<24x16xf32> -> vector<24x32xf32>
    %c8 = arith.constant 8 : index
    %c0_357 = arith.constant 0 : index
    %c0_358 = arith.constant 0 : index
    %566 = vector.load %arg8[%c8, %c0_357, %c0_358] : memref<11x64x32xbf16, #tpu.memory_space<vmem>>, vector<1x64x32xbf16>
    %567 = vector.shape_cast %566 : vector<1x64x32xbf16> to vector<64x32xbf16>
    %568 = vector.extract_strided_slice %567 {offsets = [0, 0], sizes = [32, 32], strides = [1, 1]} : vector<64x32xbf16> to vector<32x32xbf16>
    %569 = arith.truncf %565 : vector<24x32xf32> to vector<24x32xbf16>
    %cst_359 = arith.constant dense<0.000000e+00> : vector<24x32xf32>
    %570 = tpu.matmul %569, %568, %cst_359 {dimension_numbers = #tpu.dot_dimension_numbers<[1], [0], [0], [1], [0, 0, 1, 1], [], []>} : vector<24x32xbf16>, vector<32x32xbf16>, vector<24x32xf32> -> vector<24x32xf32>
    %c8_360 = arith.constant 8 : index
    %c0_361 = arith.constant 0 : index
    %c0_362 = arith.constant 0 : index
    %571 = vector.load %arg9[%c8_360, %c0_361, %c0_362] : memref<11x1x32xf32, #tpu.memory_space<vmem>>, vector<1x1x32xf32>
    %572 = vector.shape_cast %571 : vector<1x1x32xf32> to vector<1x32xf32>
    %573 = vector.broadcast %572 : vector<1x32xf32> to vector<24x32xf32>
    %574 = arith.addf %570, %573 : vector<24x32xf32>
    %cst_363 = arith.constant 0.000000e+00 : f32
    %575 = vector.broadcast %cst_363 : f32 to vector<24x32xf32>
    %576 = arith.maximumf %574, %575 : vector<24x32xf32>
    %577 = arith.truncf %576 : vector<24x32xf32> to vector<24x32xbf16>
    %c8_364 = arith.constant 8 : index
    %c0_365 = arith.constant 0 : index
    %c0_366 = arith.constant 0 : index
    %578 = vector.load %arg10[%c8_364, %c0_365, %c0_366] : memref<11x32x32xbf16, #tpu.memory_space<vmem>>, vector<1x32x32xbf16>
    %579 = vector.shape_cast %578 : vector<1x32x32xbf16> to vector<32x32xbf16>
    %cst_367 = arith.constant dense<0.000000e+00> : vector<24x32xf32>
    %580 = tpu.matmul %577, %579, %cst_367 {dimension_numbers = #tpu.dot_dimension_numbers<[1], [0], [0], [1], [0, 0, 1, 1], [], []>} : vector<24x32xbf16>, vector<32x32xbf16>, vector<24x32xf32> -> vector<24x32xf32>
    %c8_368 = arith.constant 8 : index
    %c0_369 = arith.constant 0 : index
    %c0_370 = arith.constant 0 : index
    %581 = vector.load %arg11[%c8_368, %c0_369, %c0_370] : memref<11x1x32xf32, #tpu.memory_space<vmem>>, vector<1x1x32xf32>
    %582 = vector.shape_cast %581 : vector<1x1x32xf32> to vector<1x32xf32>
    %583 = vector.broadcast %582 : vector<1x32xf32> to vector<24x32xf32>
    %584 = arith.addf %580, %583 : vector<24x32xf32>
    %cst_371 = arith.constant 0.000000e+00 : f32
    %585 = vector.broadcast %cst_371 : f32 to vector<24x32xf32>
    %586 = arith.maximumf %584, %585 : vector<24x32xf32>
    %587 = arith.truncf %586 : vector<24x32xf32> to vector<24x32xbf16>
    %c8_372 = arith.constant 8 : index
    %c0_373 = arith.constant 0 : index
    %c0_374 = arith.constant 0 : index
    %588 = vector.load %arg12[%c8_372, %c0_373, %c0_374] : memref<11x32x32xbf16, #tpu.memory_space<vmem>>, vector<1x32x32xbf16>
    %589 = vector.shape_cast %588 : vector<1x32x32xbf16> to vector<32x32xbf16>
    %cst_375 = arith.constant dense<0.000000e+00> : vector<24x32xf32>
    %590 = tpu.matmul %587, %589, %cst_375 {dimension_numbers = #tpu.dot_dimension_numbers<[1], [0], [0], [1], [0, 0, 1, 1], [], []>} : vector<24x32xbf16>, vector<32x32xbf16>, vector<24x32xf32> -> vector<24x32xf32>
    %c8_376 = arith.constant 8 : index
    %c0_377 = arith.constant 0 : index
    %c0_378 = arith.constant 0 : index
    %591 = vector.load %arg13[%c8_376, %c0_377, %c0_378] : memref<11x1x32xf32, #tpu.memory_space<vmem>>, vector<1x1x32xf32>
    %592 = vector.shape_cast %591 : vector<1x1x32xf32> to vector<1x32xf32>
    %593 = vector.broadcast %592 : vector<1x32xf32> to vector<24x32xf32>
    %594 = arith.addf %590, %593 : vector<24x32xf32>
    %cst_379 = arith.constant 0.000000e+00 : f32
    %595 = vector.broadcast %cst_379 : f32 to vector<24x32xf32>
    %596 = arith.maximumf %594, %595 : vector<24x32xf32>
    %597 = arith.truncf %596 : vector<24x32xf32> to vector<24x32xbf16>
    %c8_380 = arith.constant 8 : index
    %c0_381 = arith.constant 0 : index
    %c0_382 = arith.constant 0 : index
    %598 = vector.load %arg14[%c8_380, %c0_381, %c0_382] : memref<11x32x16xbf16, #tpu.memory_space<vmem>>, vector<1x32x16xbf16>
    %599 = vector.shape_cast %598 : vector<1x32x16xbf16> to vector<32x16xbf16>
    %cst_383 = arith.constant dense<0.000000e+00> : vector<24x16xf32>
    %600 = tpu.matmul %597, %599, %cst_383 {dimension_numbers = #tpu.dot_dimension_numbers<[1], [0], [0], [1], [0, 0, 1, 1], [], []>} : vector<24x32xbf16>, vector<32x16xbf16>, vector<24x16xf32> -> vector<24x16xf32>
    %c8_384 = arith.constant 8 : index
    %c0_385 = arith.constant 0 : index
    %c0_386 = arith.constant 0 : index
    %601 = vector.load %arg15[%c8_384, %c0_385, %c0_386] : memref<11x1x16xf32, #tpu.memory_space<vmem>>, vector<1x1x16xf32>
    %602 = vector.shape_cast %601 : vector<1x1x16xf32> to vector<1x16xf32>
    %603 = vector.broadcast %602 : vector<1x16xf32> to vector<24x16xf32>
    %604 = arith.addf %600, %603 : vector<24x16xf32>
    %c8_387 = arith.constant 8 : index
    %c0_388 = arith.constant 0 : index
    %c0_389 = arith.constant 0 : index
    %605 = vector.load %arg16[%c8_387, %c0_388, %c0_389] : memref<11x1x16xf32, #tpu.memory_space<vmem>>, vector<1x1x16xf32>
    %606 = vector.shape_cast %605 : vector<1x1x16xf32> to vector<1x16xf32>
    %c8_390 = arith.constant 8 : index
    %c0_391 = arith.constant 0 : index
    %c0_392 = arith.constant 0 : index
    %607 = vector.load %arg17[%c8_390, %c0_391, %c0_392] : memref<11x1x16xf32, #tpu.memory_space<vmem>>, vector<1x1x16xf32>
    %608 = vector.shape_cast %607 : vector<1x1x16xf32> to vector<1x16xf32>
    %cst_393 = arith.constant dense<0.000000e+00> : vector<24xf32>
    %609 = vector.multi_reduction <add>, %604, %cst_393 [1] : vector<24x16xf32> to vector<24xf32>
    %610 = vector.shape_cast %609 : vector<24xf32> to vector<24x1xf32>
    %cst_394 = arith.constant 6.250000e-02 : f32
    %611 = vector.broadcast %cst_394 : f32 to vector<24x1xf32>
    %612 = arith.mulf %610, %611 : vector<24x1xf32>
    %613 = vector.broadcast %612 : vector<24x1xf32> to vector<24x16xf32>
    %614 = arith.subf %604, %613 : vector<24x16xf32>
    %615 = arith.mulf %614, %614 : vector<24x16xf32>
    %cst_395 = arith.constant dense<0.000000e+00> : vector<24xf32>
    %616 = vector.multi_reduction <add>, %615, %cst_395 [1] : vector<24x16xf32> to vector<24xf32>
    %617 = vector.shape_cast %616 : vector<24xf32> to vector<24x1xf32>
    %cst_396 = arith.constant 6.250000e-02 : f32
    %618 = vector.broadcast %cst_396 : f32 to vector<24x1xf32>
    %619 = arith.mulf %617, %618 : vector<24x1xf32>
    %cst_397 = arith.constant 9.99999974E-6 : f32
    %620 = vector.broadcast %cst_397 : f32 to vector<24x1xf32>
    %621 = arith.addf %619, %620 : vector<24x1xf32>
    %622 = math.rsqrt %621 : vector<24x1xf32>
    %623 = vector.broadcast %622 : vector<24x1xf32> to vector<24x16xf32>
    %624 = arith.mulf %614, %623 : vector<24x16xf32>
    %625 = vector.broadcast %606 : vector<1x16xf32> to vector<24x16xf32>
    %626 = arith.mulf %624, %625 : vector<24x16xf32>
    %627 = vector.broadcast %608 : vector<1x16xf32> to vector<24x16xf32>
    %628 = arith.addf %626, %627 : vector<24x16xf32>
    %629 = arith.truncf %628 : vector<24x16xf32> to vector<24x16xbf16>
    %cst_398 = arith.constant dense<0.000000e+00> : vector<8x16xf32>
    %630 = tpu.matmul %72, %629, %cst_398 {dimension_numbers = #tpu.dot_dimension_numbers<[1], [0], [0], [1], [0, 0, 1, 1], [], []>} : vector<8x24xbf16>, vector<24x16xbf16>, vector<8x16xf32> -> vector<8x16xf32>
    %631 = tpu.concatenate %427, %630, %499 in 1 : vector<8x16xf32>, vector<8x16xf32>, vector<8x16xf32> -> vector<8x48xf32>
    %c9 = arith.constant 9 : index
    %c0_399 = arith.constant 0 : index
    %c0_400 = arith.constant 0 : index
    %632 = vector.load %arg8[%c9, %c0_399, %c0_400] : memref<11x64x32xbf16, #tpu.memory_space<vmem>>, vector<1x64x32xbf16>
    %633 = vector.shape_cast %632 : vector<1x64x32xbf16> to vector<64x32xbf16>
    %634 = vector.extract_strided_slice %633 {offsets = [0, 0], sizes = [48, 32], strides = [1, 1]} : vector<64x32xbf16> to vector<48x32xbf16>
    %635 = arith.truncf %631 : vector<8x48xf32> to vector<8x48xbf16>
    %cst_401 = arith.constant dense<0.000000e+00> : vector<8x32xf32>
    %636 = tpu.matmul %635, %634, %cst_401 {dimension_numbers = #tpu.dot_dimension_numbers<[1], [0], [0], [1], [0, 0, 1, 1], [], []>} : vector<8x48xbf16>, vector<48x32xbf16>, vector<8x32xf32> -> vector<8x32xf32>
    %c9_402 = arith.constant 9 : index
    %c0_403 = arith.constant 0 : index
    %c0_404 = arith.constant 0 : index
    %637 = vector.load %arg9[%c9_402, %c0_403, %c0_404] : memref<11x1x32xf32, #tpu.memory_space<vmem>>, vector<1x1x32xf32>
    %638 = vector.shape_cast %637 : vector<1x1x32xf32> to vector<1x32xf32>
    %639 = vector.broadcast %638 : vector<1x32xf32> to vector<8x32xf32>
    %640 = arith.addf %636, %639 : vector<8x32xf32>
    %cst_405 = arith.constant 0.000000e+00 : f32
    %641 = vector.broadcast %cst_405 : f32 to vector<8x32xf32>
    %642 = arith.maximumf %640, %641 : vector<8x32xf32>
    %643 = arith.truncf %642 : vector<8x32xf32> to vector<8x32xbf16>
    %c9_406 = arith.constant 9 : index
    %c0_407 = arith.constant 0 : index
    %c0_408 = arith.constant 0 : index
    %644 = vector.load %arg10[%c9_406, %c0_407, %c0_408] : memref<11x32x32xbf16, #tpu.memory_space<vmem>>, vector<1x32x32xbf16>
    %645 = vector.shape_cast %644 : vector<1x32x32xbf16> to vector<32x32xbf16>
    %cst_409 = arith.constant dense<0.000000e+00> : vector<8x32xf32>
    %646 = tpu.matmul %643, %645, %cst_409 {dimension_numbers = #tpu.dot_dimension_numbers<[1], [0], [0], [1], [0, 0, 1, 1], [], []>} : vector<8x32xbf16>, vector<32x32xbf16>, vector<8x32xf32> -> vector<8x32xf32>
    %c9_410 = arith.constant 9 : index
    %c0_411 = arith.constant 0 : index
    %c0_412 = arith.constant 0 : index
    %647 = vector.load %arg11[%c9_410, %c0_411, %c0_412] : memref<11x1x32xf32, #tpu.memory_space<vmem>>, vector<1x1x32xf32>
    %648 = vector.shape_cast %647 : vector<1x1x32xf32> to vector<1x32xf32>
    %649 = vector.broadcast %648 : vector<1x32xf32> to vector<8x32xf32>
    %650 = arith.addf %646, %649 : vector<8x32xf32>
    %cst_413 = arith.constant 0.000000e+00 : f32
    %651 = vector.broadcast %cst_413 : f32 to vector<8x32xf32>
    %652 = arith.maximumf %650, %651 : vector<8x32xf32>
    %653 = arith.truncf %652 : vector<8x32xf32> to vector<8x32xbf16>
    %c9_414 = arith.constant 9 : index
    %c0_415 = arith.constant 0 : index
    %c0_416 = arith.constant 0 : index
    %654 = vector.load %arg12[%c9_414, %c0_415, %c0_416] : memref<11x32x32xbf16, #tpu.memory_space<vmem>>, vector<1x32x32xbf16>
    %655 = vector.shape_cast %654 : vector<1x32x32xbf16> to vector<32x32xbf16>
    %cst_417 = arith.constant dense<0.000000e+00> : vector<8x32xf32>
    %656 = tpu.matmul %653, %655, %cst_417 {dimension_numbers = #tpu.dot_dimension_numbers<[1], [0], [0], [1], [0, 0, 1, 1], [], []>} : vector<8x32xbf16>, vector<32x32xbf16>, vector<8x32xf32> -> vector<8x32xf32>
    %c9_418 = arith.constant 9 : index
    %c0_419 = arith.constant 0 : index
    %c0_420 = arith.constant 0 : index
    %657 = vector.load %arg13[%c9_418, %c0_419, %c0_420] : memref<11x1x32xf32, #tpu.memory_space<vmem>>, vector<1x1x32xf32>
    %658 = vector.shape_cast %657 : vector<1x1x32xf32> to vector<1x32xf32>
    %659 = vector.broadcast %658 : vector<1x32xf32> to vector<8x32xf32>
    %660 = arith.addf %656, %659 : vector<8x32xf32>
    %cst_421 = arith.constant 0.000000e+00 : f32
    %661 = vector.broadcast %cst_421 : f32 to vector<8x32xf32>
    %662 = arith.maximumf %660, %661 : vector<8x32xf32>
    %663 = arith.truncf %662 : vector<8x32xf32> to vector<8x32xbf16>
    %c9_422 = arith.constant 9 : index
    %c0_423 = arith.constant 0 : index
    %c0_424 = arith.constant 0 : index
    %664 = vector.load %arg14[%c9_422, %c0_423, %c0_424] : memref<11x32x16xbf16, #tpu.memory_space<vmem>>, vector<1x32x16xbf16>
    %665 = vector.shape_cast %664 : vector<1x32x16xbf16> to vector<32x16xbf16>
    %cst_425 = arith.constant dense<0.000000e+00> : vector<8x16xf32>
    %666 = tpu.matmul %663, %665, %cst_425 {dimension_numbers = #tpu.dot_dimension_numbers<[1], [0], [0], [1], [0, 0, 1, 1], [], []>} : vector<8x32xbf16>, vector<32x16xbf16>, vector<8x16xf32> -> vector<8x16xf32>
    %c9_426 = arith.constant 9 : index
    %c0_427 = arith.constant 0 : index
    %c0_428 = arith.constant 0 : index
    %667 = vector.load %arg15[%c9_426, %c0_427, %c0_428] : memref<11x1x16xf32, #tpu.memory_space<vmem>>, vector<1x1x16xf32>
    %668 = vector.shape_cast %667 : vector<1x1x16xf32> to vector<1x16xf32>
    %669 = vector.broadcast %668 : vector<1x16xf32> to vector<8x16xf32>
    %670 = arith.addf %666, %669 : vector<8x16xf32>
    %c9_429 = arith.constant 9 : index
    %c0_430 = arith.constant 0 : index
    %c0_431 = arith.constant 0 : index
    %671 = vector.load %arg16[%c9_429, %c0_430, %c0_431] : memref<11x1x16xf32, #tpu.memory_space<vmem>>, vector<1x1x16xf32>
    %672 = vector.shape_cast %671 : vector<1x1x16xf32> to vector<1x16xf32>
    %c9_432 = arith.constant 9 : index
    %c0_433 = arith.constant 0 : index
    %c0_434 = arith.constant 0 : index
    %673 = vector.load %arg17[%c9_432, %c0_433, %c0_434] : memref<11x1x16xf32, #tpu.memory_space<vmem>>, vector<1x1x16xf32>
    %674 = vector.shape_cast %673 : vector<1x1x16xf32> to vector<1x16xf32>
    %cst_435 = arith.constant dense<0.000000e+00> : vector<8xf32>
    %675 = vector.multi_reduction <add>, %670, %cst_435 [1] : vector<8x16xf32> to vector<8xf32>
    %676 = vector.shape_cast %675 : vector<8xf32> to vector<8x1xf32>
    %cst_436 = arith.constant 6.250000e-02 : f32
    %677 = vector.broadcast %cst_436 : f32 to vector<8x1xf32>
    %678 = arith.mulf %676, %677 : vector<8x1xf32>
    %679 = vector.broadcast %678 : vector<8x1xf32> to vector<8x16xf32>
    %680 = arith.subf %670, %679 : vector<8x16xf32>
    %681 = arith.mulf %680, %680 : vector<8x16xf32>
    %cst_437 = arith.constant dense<0.000000e+00> : vector<8xf32>
    %682 = vector.multi_reduction <add>, %681, %cst_437 [1] : vector<8x16xf32> to vector<8xf32>
    %683 = vector.shape_cast %682 : vector<8xf32> to vector<8x1xf32>
    %cst_438 = arith.constant 6.250000e-02 : f32
    %684 = vector.broadcast %cst_438 : f32 to vector<8x1xf32>
    %685 = arith.mulf %683, %684 : vector<8x1xf32>
    %cst_439 = arith.constant 9.99999974E-6 : f32
    %686 = vector.broadcast %cst_439 : f32 to vector<8x1xf32>
    %687 = arith.addf %685, %686 : vector<8x1xf32>
    %688 = math.rsqrt %687 : vector<8x1xf32>
    %689 = vector.broadcast %688 : vector<8x1xf32> to vector<8x16xf32>
    %690 = arith.mulf %680, %689 : vector<8x16xf32>
    %691 = vector.broadcast %672 : vector<1x16xf32> to vector<8x16xf32>
    %692 = arith.mulf %690, %691 : vector<8x16xf32>
    %693 = vector.broadcast %674 : vector<1x16xf32> to vector<8x16xf32>
    %694 = arith.addf %692, %693 : vector<8x16xf32>
    %695 = arith.addf %427, %694 : vector<8x16xf32>
    %c2 = arith.constant 2 : index
    %c0_440 = arith.constant 0 : index
    %c0_441 = arith.constant 0 : index
    %696 = vector.load %arg8[%c2, %c0_440, %c0_441] : memref<11x64x32xbf16, #tpu.memory_space<vmem>>, vector<1x64x32xbf16>
    %697 = vector.shape_cast %696 : vector<1x64x32xbf16> to vector<64x32xbf16>
    %698 = vector.extract_strided_slice %697 {offsets = [0, 0], sizes = [16, 32], strides = [1, 1]} : vector<64x32xbf16> to vector<16x32xbf16>
    %699 = arith.truncf %695 : vector<8x16xf32> to vector<8x16xbf16>
    %cst_442 = arith.constant dense<0.000000e+00> : vector<8x32xf32>
    %700 = tpu.matmul %699, %698, %cst_442 {dimension_numbers = #tpu.dot_dimension_numbers<[1], [0], [0], [1], [0, 0, 1, 1], [], []>} : vector<8x16xbf16>, vector<16x32xbf16>, vector<8x32xf32> -> vector<8x32xf32>
    %c2_443 = arith.constant 2 : index
    %c0_444 = arith.constant 0 : index
    %c0_445 = arith.constant 0 : index
    %701 = vector.load %arg9[%c2_443, %c0_444, %c0_445] : memref<11x1x32xf32, #tpu.memory_space<vmem>>, vector<1x1x32xf32>
    %702 = vector.shape_cast %701 : vector<1x1x32xf32> to vector<1x32xf32>
    %703 = vector.broadcast %702 : vector<1x32xf32> to vector<8x32xf32>
    %704 = arith.addf %700, %703 : vector<8x32xf32>
    %cst_446 = arith.constant 0.000000e+00 : f32
    %705 = vector.broadcast %cst_446 : f32 to vector<8x32xf32>
    %706 = arith.maximumf %704, %705 : vector<8x32xf32>
    %707 = arith.truncf %706 : vector<8x32xf32> to vector<8x32xbf16>
    %c2_447 = arith.constant 2 : index
    %c0_448 = arith.constant 0 : index
    %c0_449 = arith.constant 0 : index
    %708 = vector.load %arg10[%c2_447, %c0_448, %c0_449] : memref<11x32x32xbf16, #tpu.memory_space<vmem>>, vector<1x32x32xbf16>
    %709 = vector.shape_cast %708 : vector<1x32x32xbf16> to vector<32x32xbf16>
    %cst_450 = arith.constant dense<0.000000e+00> : vector<8x32xf32>
    %710 = tpu.matmul %707, %709, %cst_450 {dimension_numbers = #tpu.dot_dimension_numbers<[1], [0], [0], [1], [0, 0, 1, 1], [], []>} : vector<8x32xbf16>, vector<32x32xbf16>, vector<8x32xf32> -> vector<8x32xf32>
    %c2_451 = arith.constant 2 : index
    %c0_452 = arith.constant 0 : index
    %c0_453 = arith.constant 0 : index
    %711 = vector.load %arg11[%c2_451, %c0_452, %c0_453] : memref<11x1x32xf32, #tpu.memory_space<vmem>>, vector<1x1x32xf32>
    %712 = vector.shape_cast %711 : vector<1x1x32xf32> to vector<1x32xf32>
    %713 = vector.broadcast %712 : vector<1x32xf32> to vector<8x32xf32>
    %714 = arith.addf %710, %713 : vector<8x32xf32>
    %cst_454 = arith.constant 0.000000e+00 : f32
    %715 = vector.broadcast %cst_454 : f32 to vector<8x32xf32>
    %716 = arith.maximumf %714, %715 : vector<8x32xf32>
    %717 = arith.truncf %716 : vector<8x32xf32> to vector<8x32xbf16>
    %c2_455 = arith.constant 2 : index
    %c0_456 = arith.constant 0 : index
    %c0_457 = arith.constant 0 : index
    %718 = vector.load %arg12[%c2_455, %c0_456, %c0_457] : memref<11x32x32xbf16, #tpu.memory_space<vmem>>, vector<1x32x32xbf16>
    %719 = vector.shape_cast %718 : vector<1x32x32xbf16> to vector<32x32xbf16>
    %cst_458 = arith.constant dense<0.000000e+00> : vector<8x32xf32>
    %720 = tpu.matmul %717, %719, %cst_458 {dimension_numbers = #tpu.dot_dimension_numbers<[1], [0], [0], [1], [0, 0, 1, 1], [], []>} : vector<8x32xbf16>, vector<32x32xbf16>, vector<8x32xf32> -> vector<8x32xf32>
    %c2_459 = arith.constant 2 : index
    %c0_460 = arith.constant 0 : index
    %c0_461 = arith.constant 0 : index
    %721 = vector.load %arg13[%c2_459, %c0_460, %c0_461] : memref<11x1x32xf32, #tpu.memory_space<vmem>>, vector<1x1x32xf32>
    %722 = vector.shape_cast %721 : vector<1x1x32xf32> to vector<1x32xf32>
    %723 = vector.broadcast %722 : vector<1x32xf32> to vector<8x32xf32>
    %724 = arith.addf %720, %723 : vector<8x32xf32>
    %cst_462 = arith.constant 0.000000e+00 : f32
    %725 = vector.broadcast %cst_462 : f32 to vector<8x32xf32>
    %726 = arith.maximumf %724, %725 : vector<8x32xf32>
    %727 = arith.truncf %726 : vector<8x32xf32> to vector<8x32xbf16>
    %c2_463 = arith.constant 2 : index
    %c0_464 = arith.constant 0 : index
    %c0_465 = arith.constant 0 : index
    %728 = vector.load %arg14[%c2_463, %c0_464, %c0_465] : memref<11x32x16xbf16, #tpu.memory_space<vmem>>, vector<1x32x16xbf16>
    %729 = vector.shape_cast %728 : vector<1x32x16xbf16> to vector<32x16xbf16>
    %cst_466 = arith.constant dense<0.000000e+00> : vector<8x16xf32>
    %730 = tpu.matmul %727, %729, %cst_466 {dimension_numbers = #tpu.dot_dimension_numbers<[1], [0], [0], [1], [0, 0, 1, 1], [], []>} : vector<8x32xbf16>, vector<32x16xbf16>, vector<8x16xf32> -> vector<8x16xf32>
    %c2_467 = arith.constant 2 : index
    %c0_468 = arith.constant 0 : index
    %c0_469 = arith.constant 0 : index
    %731 = vector.load %arg15[%c2_467, %c0_468, %c0_469] : memref<11x1x16xf32, #tpu.memory_space<vmem>>, vector<1x1x16xf32>
    %732 = vector.shape_cast %731 : vector<1x1x16xf32> to vector<1x16xf32>
    %733 = vector.broadcast %732 : vector<1x16xf32> to vector<8x16xf32>
    %734 = arith.addf %730, %733 : vector<8x16xf32>
    %735 = vector.extract_strided_slice %734 {offsets = [0, 0], sizes = [8, 1], strides = [1, 1]} : vector<8x16xf32> to vector<8x1xf32>
    %cst_470 = arith.constant 3.000000e+00 : f32
    %736 = vector.broadcast %cst_470 : f32 to vector<8x1xf32>
    %737 = arith.subf %736, %735 : vector<8x1xf32>
    %cst_471 = arith.constant -6.000000e+01 : f32
    %cst_472 = arith.constant 6.000000e+01 : f32
    %738 = vector.broadcast %cst_471 : f32 to vector<8x1xf32>
    %739 = arith.maximumf %738, %737 : vector<8x1xf32>
    %740 = vector.broadcast %cst_472 : f32 to vector<8x1xf32>
    %741 = arith.minimumf %740, %739 : vector<8x1xf32>
    %742 = math.exp %741 : vector<8x1xf32>
    %cst_473 = arith.constant 1.000000e+00 : f32
    %743 = vector.broadcast %cst_473 : f32 to vector<8x1xf32>
    %744 = arith.addf %743, %742 : vector<8x1xf32>
    %745 = tpu.reciprocal %744 {approx = true} : vector<8x1xf32> -> vector<8x1xf32>
    %cst_474 = arith.constant 5.900000e+01 : f32
    %746 = vector.broadcast %cst_474 : f32 to vector<8x1xf32>
    %747 = arith.mulf %746, %745 : vector<8x1xf32>
    %cst_475 = arith.constant 1.000000e+00 : f32
    %748 = vector.broadcast %cst_475 : f32 to vector<8x1xf32>
    %749 = arith.addf %748, %747 : vector<8x1xf32>
    %c0_476 = arith.constant 0 : index
    %c0_477 = arith.constant 0 : index
    %750 = vector.load %arg26[%c0_476, %c0_477] : memref<8x1xf32, #tpu.memory_space<vmem>>, vector<8x1xf32>
    tpu.vector_store %arg26[%c0_476, %c0_477], %749 {strides = array<i32>} : memref<8x1xf32, #tpu.memory_space<vmem>>, vector<8x1xf32>,
    %751 = tpu.concatenate %8, %749, %3 in 1 : vector<8x1xf32>, vector<8x1xf32>, vector<8x1xf32> -> vector<8x3xf32>
    %c0_478 = arith.constant 0 : index
    %c0_479 = arith.constant 0 : index
    %752 = vector.load %arg18[%c0_478, %c0_479] : memref<3x32xf32, #tpu.memory_space<vmem>>, vector<3x32xf32>
    %cst_480 = arith.constant dense<0.000000e+00> : vector<8x32xf32>
    %753 = tpu.matmul %751, %752, %cst_480 {dimension_numbers = #tpu.dot_dimension_numbers<[1], [0], [0], [1], [0, 0, 1, 1], [], []>} : vector<8x3xf32>, vector<3x32xf32>, vector<8x32xf32> -> vector<8x32xf32>
    %c0_481 = arith.constant 0 : index
    %c0_482 = arith.constant 0 : index
    %754 = vector.load %arg19[%c0_481, %c0_482] : memref<1x32xf32, #tpu.memory_space<vmem>>, vector<1x32xf32>
    %755 = vector.broadcast %754 : vector<1x32xf32> to vector<8x32xf32>
    %756 = arith.addf %753, %755 : vector<8x32xf32>
    %cst_483 = arith.constant 0.000000e+00 : f32
    %757 = vector.broadcast %cst_483 : f32 to vector<8x32xf32>
    %758 = arith.maximumf %756, %757 : vector<8x32xf32>
    %c0_484 = arith.constant 0 : index
    %c0_485 = arith.constant 0 : index
    %759 = vector.load %arg20[%c0_484, %c0_485] : memref<32x32xf32, #tpu.memory_space<vmem>>, vector<32x32xf32>
    %cst_486 = arith.constant dense<0.000000e+00> : vector<8x32xf32>
    %760 = tpu.matmul %758, %759, %cst_486 {dimension_numbers = #tpu.dot_dimension_numbers<[1], [0], [0], [1], [0, 0, 1, 1], [], []>} : vector<8x32xf32>, vector<32x32xf32>, vector<8x32xf32> -> vector<8x32xf32>
    %c0_487 = arith.constant 0 : index
    %c0_488 = arith.constant 0 : index
    %761 = vector.load %arg21[%c0_487, %c0_488] : memref<1x32xf32, #tpu.memory_space<vmem>>, vector<1x32xf32>
    %762 = vector.broadcast %761 : vector<1x32xf32> to vector<8x32xf32>
    %763 = arith.addf %760, %762 : vector<8x32xf32>
    %cst_489 = arith.constant 0.000000e+00 : f32
    %764 = vector.broadcast %cst_489 : f32 to vector<8x32xf32>
    %765 = arith.maximumf %763, %764 : vector<8x32xf32>
    %c0_490 = arith.constant 0 : index
    %c0_491 = arith.constant 0 : index
    %766 = vector.load %arg22[%c0_490, %c0_491] : memref<32x32xf32, #tpu.memory_space<vmem>>, vector<32x32xf32>
    %cst_492 = arith.constant dense<0.000000e+00> : vector<8x32xf32>
    %767 = tpu.matmul %765, %766, %cst_492 {dimension_numbers = #tpu.dot_dimension_numbers<[1], [0], [0], [1], [0, 0, 1, 1], [], []>} : vector<8x32xf32>, vector<32x32xf32>, vector<8x32xf32> -> vector<8x32xf32>
    %c0_493 = arith.constant 0 : index
    %c0_494 = arith.constant 0 : index
    %768 = vector.load %arg23[%c0_493, %c0_494] : memref<1x32xf32, #tpu.memory_space<vmem>>, vector<1x32xf32>
    %769 = vector.broadcast %768 : vector<1x32xf32> to vector<8x32xf32>
    %770 = arith.addf %767, %769 : vector<8x32xf32>
    %cst_495 = arith.constant 0.000000e+00 : f32
    %771 = vector.broadcast %cst_495 : f32 to vector<8x32xf32>
    %772 = arith.maximumf %770, %771 : vector<8x32xf32>
    %c0_496 = arith.constant 0 : index
    %c0_497 = arith.constant 0 : index
    %773 = vector.load %arg24[%c0_496, %c0_497] : memref<32x2xf32, #tpu.memory_space<vmem>>, vector<32x2xf32>
    %cst_498 = arith.constant dense<0.000000e+00> : vector<8x2xf32>
    %774 = tpu.matmul %772, %773, %cst_498 {dimension_numbers = #tpu.dot_dimension_numbers<[1], [0], [0], [1], [0, 0, 1, 1], [], []>} : vector<8x32xf32>, vector<32x2xf32>, vector<8x2xf32> -> vector<8x2xf32>
    %c0_499 = arith.constant 0 : index
    %c0_500 = arith.constant 0 : index
    %775 = vector.load %arg25[%c0_499, %c0_500] : memref<1x2xf32, #tpu.memory_space<vmem>>, vector<1x2xf32>
    %776 = vector.broadcast %775 : vector<1x2xf32> to vector<8x2xf32>
    %777 = arith.addf %774, %776 : vector<8x2xf32>
    %778 = math.exp %777 : vector<8x2xf32>
    %c0_501 = arith.constant 0 : index
    %c0_502 = arith.constant 0 : index
    %779 = vector.load %arg28[%c0_501, %c0_502] : memref<8x2xf32, #tpu.memory_space<vmem>>, vector<8x2xf32>
    tpu.vector_store %arg28[%c0_501, %c0_502], %778 {strides = array<i32>} : memref<8x2xf32, #tpu.memory_space<vmem>>, vector<8x2xf32>,
    return
  }
}

</mosaic_0001>

<bundles_post_ra>
// kernel: tpu_custom_call.1
= control target key start
LH: loop header
LB: loop body
LE: loop exit
PB: predicated region body
PF: predicated region fallthrough
CT: control target
= control target key end

     0   :  { %v6497_v2 = vmov 0.0   ;;  %vm116_vm0 = vcmask 1042432   ;;  %vm6498_vm1 = vmmov 0   ;;  %s7783_s29 = smov 125   ;;  %vm100_vm2 = vcmask 7168   ;;  %s6504_s30 = smov 32   ;;  %s7744_s0 = inlined_call_operand.vmem [shape: f32[8,5], index: 0, kind: input, shape index: {}]   ;;  %s7745_s18 = inlined_call_operand.vmem [shape: f32[3,32], index: 18, kind: input, shape index: {}]   ;;  %s7746_s20 = inlined_call_operand.vmem [shape: f32[32,32], index: 20, kind: input, shape index: {}]   ;;  %s7747_s22 = inlined_call_operand.vmem [shape: f32[32,32], index: 22, kind: input, shape index: {}]   ;;  %s7748_s19 = inlined_call_operand.vmem [shape: f32[1,32], index: 19, kind: input, shape index: {}]   ;;  %s7749_s24 = inlined_call_operand.vmem [shape: f32[32,2], index: 24, kind: input, shape index: {}]   ;;  %s7750_s21 = inlined_call_operand.vmem [shape: f32[1,32], index: 21, kind: input, shape index: {}]   ;;  %s7751_s23 = inlined_call_operand.vmem [shape: f32[1,32], index: 23, kind: input, shape index: {}]   ;;  %s7752_s25 = inlined_call_operand.vmem [shape: f32[1,2], index: 25, kind: input, shape index: {}]   ;;  %s7753_s7 = inlined_call_operand.vmem [shape: f32[8,2], index: 7, kind: input, shape index: {}]   ;;  %s7754_s27 = inlined_call_operand.vmem [shape: f32[8,2], index: 27, kind: output, shape index: {1}]   ;;  %s7755_s8 = inlined_call_operand.vmem [shape: bf16[11,64,32], index: 8, kind: input, shape index: {}]   ;;  %s7756_s1 = inlined_call_operand.vmem [shape: s32[24,1], index: 1, kind: input, shape index: {}]   ;;  %s7757_s2 = inlined_call_operand.vmem [shape: s32[24,1], index: 2, kind: input, shape index: {}]   ;;  %s7758_s10 = inlined_call_operand.vmem [shape: bf16[11,32,32], index: 10, kind: input, shape index: {}]   ;;  %s7759_s9 = inlined_call_operand.vmem [shape: f32[11,1,32], index: 9, kind: input, shape index: {}]   ;;  %s7760_s12 = inlined_call_operand.vmem [shape: bf16[11,32,32], index: 12, kind: input, shape index: {}]   ;;  %s7761_s11 = inlined_call_operand.vmem [shape: f32[11,1,32], index: 11, kind: input, shape index: {}]   ;;  %s7762_s14 = inlined_call_operand.vmem [shape: bf16[11,32,16], index: 14, kind: input, shape index: {}]   ;;  %s7763_s13 = inlined_call_operand.vmem [shape: f32[11,1,32], index: 13, kind: input, shape index: {}]   ;;  %s7764_s15 = inlined_call_operand.vmem [shape: f32[11,1,16], index: 15, kind: input, shape index: {}]   ;;  %s7765_s6 = inlined_call_operand.vmem [shape: s32[24,1], index: 6, kind: input, shape index: {}]   ;;  %s7766_s16 = inlined_call_operand.vmem [shape: f32[11,1,16], index: 16, kind: input, shape index: {}]   ;;  %s7767_s17 = inlined_call_operand.vmem [shape: f32[11,1,16], index: 17, kind: input, shape index: {}]   ;;  %s7768_s4 = inlined_call_operand.vmem [shape: s32[8,1], index: 4, kind: input, shape index: {}]   ;;  %s7769_s3 = inlined_call_operand.vmem [shape: s32[1,24], index: 3, kind: input, shape index: {}]   ;;  %s7770_s5 = inlined_call_operand.vmem [shape: s32[1,8], index: 5, kind: input, shape index: {}]   ;;  %s7771_s26 = inlined_call_operand.vmem [shape: f32[8,1], index: 26, kind: output, shape index: {0}]   ;;  %s7772_s28 = inlined_call_operand.vmem [shape: f32[8,2], index: 28, kind: output, shape index: {2}]  }
   0x1   :  { %7784 = sst [smem:[#allocation2_spill]] %s7744_s0  ;;  %5831 = vmatprep.subr.mxu0 %v6497_v2  ;;  %5836 = vmatprep.subr.mxu1 %v6497_v2  ;;  %vm102_vm3 = vcmask 15360   ;;  %vm112_vm4 = vcmask 23552   ;;  %vm202_vm5 = vcmask 261120   ;;  %vm557_vm6 = vcmask 1043456   ;;  %v461_v51 = vld [vmem:[%s7757_s2 + $0x8] sm:$0xff] }
   0x2   :  { %7785 = sst [smem:[#allocation3_spill]] %s7745_s18  ;;  %5833 = vmatprep.mubr.msk.f32.mxu0 %vm6498_vm1, %v6497_v2  ;;  %5844 = vmatprep.mubr.msk.f32.mxu1 %vm6498_vm1, %v6497_v2  ;;  %v6502_v49 = vmov 0   ;;  %v462_v52 = vld [vmem:[%s7757_s2 + $0x10] sm:$0xff]  ;;  %v460_v56 = vld [vmem:[%s7757_s2] sm:$0xff]  ;;  %vm550_vm7 = vcmask 64512   ;;  %vm875_vm14 = vcmask 130048  }
   0x3   :  { %7786 = sst [smem:[#allocation4_spill]] %s7746_s20  ;;  %6327 = vset.pattern.permute.xlu1 %v6502_v49  ;;  %6326 = vset.pattern.permute.xlu0 %v6502_v49  ;;  %s6505_s2 = smov 48  }
   0x4   :  { %7787 = sst [smem:[#allocation5_spill]] %s7747_s22 }
   0x5   :  { %7788 = sst [smem:[#allocation6_spill]] %s7748_s19 }
   0x6   :  { %7789 = sst [smem:[#allocation7_spill]] %s7749_s24 }
   0x7   :  { %7790 = sst [smem:[#allocation8_spill]] %s7750_s21 }
   0x8   :  { %7791 = sst [smem:[#allocation9_spill]] %s7751_s23 }
   0x9   :  { %7792 = sst [smem:[#allocation10_spill]] %s7752_s25 }
   0xa   :  { %7793 = sst [smem:[#allocation11_spill]] %s7753_s7 }
   0xb   :  { %7794 = sst [smem:[#allocation12_spill]] %s7754_s27 }
   0xc   :  { %7795 = sst [smem:[#allocation13_spill]] %s7755_s8 }
   0xd   :  { %7796 = sst [smem:[#allocation14_spill]] %s7756_s1  ;;  %s6500_s1 = smov 126  }
   0xe   :  { %7797 = sst [smem:[#allocation15_spill]] %s7772_s28 }
   0xf   :  { %s7798_s24 = sld [smem:[#allocation2_spill]] }
  0x10   :  { %s7799_s22 = sld [smem:[#allocation3_spill]] }
  0x11   :  { %s7800_s8 = sld [smem:[#allocation4_spill]] }
  0x12   :  { %s7801_s21 = sld [smem:[#allocation5_spill]] }
  0x13   :  { %s7803_s27 = sld [smem:[#allocation7_spill]] }
  0x14   :  { %s7804_s19 = sld [smem:[#allocation8_spill]] }
  0x15   :  { %v6655_v0 = vld [vmem:[%s7798_s24] sm:$0xff]  ;;  %s7805_s18 = sld [smem:[#allocation9_spill]] }
  0x16   :  { %v88_v1 = vmul.f32 1e+14, %v6655_v0  ;;  %v104_v3 = vld [vmem:[%s7799_s22] sm:$0x7]  ;;  %s7806_s25 = sld [smem:[#allocation10_spill]]  ;;  %v549_v58 = vpack.c.bf16 %v6655_v0, %v6655_v0 }
  0x17   :  { %5832 = vmatpush3.msk.msra.mxu0 %vm116_vm0, %v104_v3  ;;  %v194_v4 = vld [vmem:[%s7800_s8 + $0x18] sm:$0xff]  ;;  %v193_v12 = vld [vmem:[%s7800_s8 + $0x10] sm:$0xff]  ;;  %v192_v13 = vld [vmem:[%s7800_s8 + $0x8] sm:$0xff]  ;;  %s7807_s0 = sld [smem:[#allocation11_spill]] }
  0x18   :  { %6449 = vlog2.f32 %v88_v1  ;;  %5847 = vmatprep.subr.mxu0 %v6497_v2  ;;  %5837 = vmatpush3.msra.mxu1 %v194_v4  ;;  %v191_v14 = vld [vmem:[%s7800_s8] sm:$0xff]  ;;  %v280_v15 = vld [vmem:[%s7801_s21 + $0x18] sm:$0xff]  ;;  %v279_v21 = vld [vmem:[%s7801_s21 + $0x10] sm:$0xff]  ;;  %s7808_s28 = sld [smem:[#allocation12_spill]]  ;;  %v559_v59 = vsel %vm557_vm6, %v549_v58, 0  ;;  %v469_v1 = vlaneseq }
  0x19   :  { %5838 = vmatprep.subr.mxu1 %v6497_v2  ;;  %v278_v22 = vld [vmem:[%s7801_s21 + $0x8] sm:$0xff]  ;;  %v277_v23 = vld [vmem:[%s7801_s21] sm:$0xff]  ;;  %v365_v24 = vld [vmem:[%s7803_s27 + $0x18] sm:$0xff]  ;;  %s7810_s24 = sld [smem:[#allocation14_spill]] }
  0x1a   :  { %5839 = vmatpush3.msra.mxu1 %v193_v12  ;;  %v5182_v25 = vld [vmem:[%s7804_s19] ss:$0 sm:$0xff]  ;;  %v364_v30 = vld [vmem:[%s7803_s27 + $0x10] sm:$0xff]  ;;  %v363_v31 = vld [vmem:[%s7803_s27 + $0x8] sm:$0xff]  ;;  %s7811_s19 = smov 125  }
  0x1b   :  { %5840 = vmatprep.subr.mxu1 %v6497_v2  ;;  %v362_v32 = vld [vmem:[%s7803_s27] sm:$0xff] }
  0x1c   :  { %5841 = vmatpush3.msra.mxu1 %v192_v13  ;;  %v5184_v33 = vld [vmem:[%s7805_s18] ss:$0 sm:$0xff]  ;;  %s6501_s18 = smov 3  }
  0x1d   :  { %5842 = vmatprep.subr.mxu1 %v6497_v2  ;;  %v5186_v38 = vld [vmem:[%s7806_s25] ss:$0 sm:$0xff]  ;;  %s7809_s25 = sld [smem:[#allocation13_spill]] }
  0x1e   :  { %5843 = vmatpush3.msra.mxu1 %v191_v14  ;;  %v450_v44 = vld [vmem:[%s7807_s0] sm:$0xff] }
  0x1f   :  { %5858 = vmatprep.subr.mxu1 %v6497_v2  ;;  %v457_v50 = vld [vmem:[%s7810_s24] sm:$0xff]  ;;  %v458_v55 = vld [vmem:[%s7810_s24 + $0x8] sm:$0xff]  ;;  %v459_v57 = vld [vmem:[%s7810_s24 + $0x10] sm:$0xff] }
  0x23   :  { %v614_v47 = vld [vmem:[%s7809_s25] sm:$0xf] }
  0x24   :  { %v627_v48 = vsel %vm557_vm6, %v614_v47, 0 }
  0x25   :  { %v6450_v5 = vpop.eup %6449 }
  0x26   :  { %v90_v6 = vmul.f32 0.6931472, %v6450_v5 }
  0x28   :  { %v91_v7 = vmul.f32 0.4342945, %v90_v6 }
  0x2a   :  { %93 = vrot.lane.b32.xlu0 %v91_v7, %s7783_s29 }
  0x2e   :  { %97 = vrot.lane.b32.xlu0 %v6655_v0, %s6500_s1  ;;  %s7802_s1 = sld [smem:[#allocation6_spill]] }
  0x32   :  { %472 = vperm.xlu0 %6326, %v457_v50  }
  0x34   :  { %v5179_v16 = vld [vmem:[%s7802_s1] ss:$0 sm:$0xff] }
  0x36   :  { %490 = vperm.xlu0 %6326, %v461_v51  }
  0x3a   :  { %493 = vperm.xlu0 %6326, %v462_v52  }
  0x9c   :  { %v6675_v8 = vpop.permute.xlu0 %93 }
  0x9d   :  { %v101_v9 = vsel %vm100_vm2, %v6675_v8, 1.0 }
  0xa0   :  { %v6679_v10 = vpop.permute.xlu0 %97 }
  0xa1   :  { %v103_v11 = vsel %vm102_vm3, %v101_v9, %v6679_v10 }
  0xa2   :  { %5834 = vmatmul.mubr.msk.f32.vlgmr.msra.gmra.mxu0 %vm112_vm4, %v103_v11 }
  0xa3   :  { %5855 = vmatprep.mubr.msk.f32.mxu0 %vm6498_vm1, %v6497_v2  ;;  %5848 = vmatpush3.msra.mxu0 %v280_v15 }
  0xa4   :  { %5849 = vmatprep.subr.mxu0 %v6497_v2 }
  0xa5   :  { %5850 = vmatpush3.msra.mxu0 %v279_v21 }
  0xa6   :  { %5851 = vmatprep.subr.mxu0 %v6497_v2 }
  0xa7   :  { %5852 = vmatpush3.msra.mxu0 %v278_v22 }
  0xa8   :  { %5853 = vmatprep.subr.mxu0 %v6497_v2 }
  0xa9   :  { %5854 = vmatpush3.msra.mxu0 %v277_v23  ;;  %v6368_v23 = vld [vmem:[%s7758_s10 + $0x8] sm:$0xff]  }
  0xaa   :  { %6309 = vmatprep.subr.msk.bf16.mxu0 %vm557_vm6, %v549_v58  ;;  %v5198_v58 = vld [vmem:[%s7763_s13] ss:$0 sm:$0xff] }
  0xad   :  { %v473_v63 = vpop.permute.xlu0 %472 }
  0xb1   :  { %v491_v3 = vpop.permute.xlu0 %490 }
  0xb5   :  { %v494_v9 = vpop.permute.xlu0 %493 }
 0x162   :  { %v186_v17 = vpop.f32.mrf.mxu0 }
 0x163   :  { %v187_v18 = vadd.f32 %v5179_v16, %v186_v17 }
 0x164   :  { %v5835_v19 = vpop.f32.mrf.mxu0 }
 0x165   :  { %v190_v20 = vmax.f32 %v187_v18, 0.0 }
 0x167   :  { %5845 = vmatmul.mubr.msk.f32.vlgmr.msra.gmra.mxu1 %vm202_vm5, %v190_v20 }
 0x168   :  { %5866 = vmatprep.mubr.msk.f32.mxu1 %vm6498_vm1, %v6497_v2  ;;  %5859 = vmatpush3.msra.mxu1 %v365_v24  ;;  %v6369_v24 = vld [vmem:[%s7758_s10] sm:$0xff]  }
 0x169   :  { %5860 = vmatprep.subr.mxu1 %v6497_v2 }
 0x16a   :  { %5861 = vmatpush3.msra.mxu1 %v364_v30 }
 0x16b   :  { %5862 = vmatprep.subr.mxu1 %v6497_v2 }
 0x16c   :  { %5863 = vmatpush3.msra.mxu1 %v363_v31 }
 0x16d   :  { %5864 = vmatprep.subr.mxu1 %v6497_v2 }
 0x16e   :  { %5865 = vmatpush3.msra.mxu1 %v362_v32 }
 0x16f   :  { %5875 = vmatprep.subr.bf16.mxu1 %v6497_v2 }
 0x227   :  { %v272_v26 = vpop.f32.mrf.mxu1 }
 0x228   :  { %v273_v27 = vadd.f32 %v5182_v25, %v272_v26  ;;  %v5192_v25 = vld [vmem:[%s7759_s9] ss:$0 sm:$0xff] }
 0x229   :  { %v5846_v28 = vpop.f32.mrf.mxu1 }
 0x22a   :  { %v276_v29 = vmax.f32 %v273_v27, 0.0 }
 0x22c   :  { %5856 = vmatmul.mubr.msk.f32.vlgmr.msra.gmra.mxu0 %vm202_vm5, %v276_v29 }
 0x22d   :  { %5870 = vmatpush3.bf16.msra.mxu0 %v559_v59 }
 0x22e   :  { %5881 = vmatprep.subr.bf16.mxu0 %v6497_v2 }
 0x2ec   :  { %v357_v34 = vpop.f32.mrf.mxu0 }
 0x2ed   :  { %v358_v35 = vadd.f32 %v5184_v33, %v357_v34 }
 0x2ee   :  { %v5857_v36 = vpop.f32.mrf.mxu0 }
 0x2ef   :  { %v361_v37 = vmax.f32 %v358_v35, 0.0  ;;  %v6370_v36 = vld [vmem:[%s7760_s12 + $0x8] sm:$0xff]  }
 0x2f1   :  { %5867 = vmatmul.mubr.msk.f32.vlgmr.msra.gmra.mxu1 %vm202_vm5, %v361_v37  ;;  %v6371_v37 = vld [vmem:[%s7760_s12] sm:$0xff]  }
 0x2f2   :  { %5877 = vmatprep.mubr.msk.bf16.mxu1 %vm6498_vm1, %v6497_v2  ;;  %5876 = vmatpush3.bf16.msra.mxu1 %v627_v48 }
 0x2f3   :  { %5889 = vmatprep.subr.bf16.mxu1 %v6497_v2 }
 0x3b1   :  { %v442_v39 = vpop.f32.mrf.mxu1 }
 0x3b2   :  { %v443_v40 = vadd.f32 %v5186_v38, %v442_v39  ;;  %v5208_v38 = vld [vmem:[%s7809_s25 + $0x20] sm:$0xf] }
 0x3b3   :  { %v5868_v41 = vpop.f32.mrf.mxu1  ;;  %v925_v50 = vsel %vm557_vm6, %v5208_v38, 0 }
 0x3b4   :  { %v446_v42 = vmul.f32 2.3025851, %v443_v40  ;;  %v5194_v40 = vld [vmem:[%s7761_s11] ss:$0 sm:$0xff] }
 0x3b6   :  { %v447_v43 = vmul.f32 1.442695, %v446_v42 }
 0x3b8   :  { %6451 = vpow2.f32 %v447_v43 }
 0x3c5   :  { %v6452_v45 = vpop.eup %6451 }
 0x3c6   :  { %449 = vst.msk [vmem:[%s7808_s28] sm:$0xff] %vm102_vm3, %v6452_v45  ;;  %v451_v46 = vmul.f32 %v6452_v45, %v450_v44 }
 0x3c8   :  { %453 = vrot.lane.b32.xlu1 %v451_v46, %s6501_s18  ;;  %s6503_s18 = smov 16  }
 0x43a   :  { %v454_v53 = vpop.permute.xlu1 %453 }
 0x43b   :  { %v456_v54 = vadd.f32 %v454_v53, %v6655_v0  ;;  %v6792_v0 = vand.u32 127, %v469_v1 }
 0x43d   :  { %610 = vrot.lane.b32.xlu1 %v456_v54, %s7811_s19  ;;  %vm480_vm8 = vcmp.eq.s32.totalorder %v473_v63, %v6792_v0  ;;  %vm496_vm9 = vcmp.eq.s32.totalorder %v491_v3, %v6792_v0  ;;  %vm497_vm12 = vcmp.eq.s32.totalorder %v494_v9, %v6792_v0 }
 0x43e   :  { %v483_v6 = vsel %vm480_vm8, 1.0, %v6497_v2  ;;  %v499_v7 = vsel %vm496_vm9, 1.0, %v6497_v2  ;;  %v6808_v18 = vsel %vm497_vm12, 1.0, %v6497_v2  ;;  %vm1590_vm12 = vcmask 523264  }
 0x441   :  { %475 = vperm.xlu1 %6327, %v458_v55   ;;  %v6372_v55 = vld [vmem:[%s7762_s14 + $0x8] sm:$0xff]  }
 0x445   :  { %487 = vperm.xlu1 %6327, %v460_v56   ;;  %v6373_v56 = vld [vmem:[%s7762_s14] sm:$0xff]  }
 0x449   :  { %478 = vperm.xlu1 %6327, %v459_v57   ;;  %v6374_v57 = vld [vmem:[%s7758_s10 + $0x18] sm:$0xff]  }
 0x4af   :  { %v611_v60 = vpop.permute.xlu1 %610 }
 0x4b0   :  { %v613_v61 = vsel %vm100_vm2, %v611_v60, 0.0 }
 0x4b1   :  { %v615_v62 = vpack.c.bf16 %v613_v61, %v613_v61 }
 0x4b3   :  { %5878 = vmatmul.mubr.msk.bf16.vlgmr.msra.gmra.mxu1 %vm550_vm7, %v615_v62 }
 0x4b4   :  { %5893 = vmatprep.mubr.msk.bf16.mxu1 %vm6498_vm1, %v6497_v2  ;;  %5890 = vmatpush3.bf16.msra.mxu1 %v6370_v36 }
 0x4b5   :  { %5891 = vmatprep.subr.bf16.mxu1 %v6497_v2 }
 0x4b8   :  { %5892 = vmatpush3.bf16.msra.mxu1 %v6371_v37  ;;  %v467_v37 = vld [vmem:[%s7765_s6 + $0x8] sm:$0xff] }
 0x4b9   :  { %6310 = vmatprep.subr.msk.bf16.mxu1 %vm557_vm6, %v5208_v38 }
 0x4bc   :  { %v476_v4 = vpop.permute.xlu1 %475 }
 0x4bd   :  { %vm481_vm10 = vcmp.eq.s32.totalorder %v476_v4, %v6792_v0  ;;  %v6375_v4 = vld [vmem:[%s7758_s10 + $0x10] sm:$0xff]  }
 0x4be   :  { %v484_v5 = vsel %vm481_vm10, 1.0, %v6497_v2 }
 0x4bf   :  { %v6800_v11 = vpack.c.bf16 %v484_v5, %v483_v6  ;;  %v506_v13 = vsub.f32 %v484_v5, %v499_v7 }
 0x4c0   :  { %v488_v12 = vpop.permute.xlu1 %487 }
 0x4c1   :  { %vm495_vm11 = vcmp.eq.s32.totalorder %v488_v12, %v6792_v0 }
 0x4c2   :  { %v498_v14 = vsel %vm495_vm11, 1.0, %v6497_v2  ;;  %vm1543_vm11 = vcmask 392192  }
 0x4c3   :  { %v505_v15 = vsub.f32 %v483_v6, %v498_v14  ;;  %v6805_v16 = vpack.c.bf16 %v499_v7, %v498_v14  ;;  %v5210_v7 = vld [vmem:[%s7759_s9 + $0x1] ss:$0 sm:$0xff] }
 0x4c4   :  { %v479_v17 = vpop.permute.xlu1 %478 }
 0x4c5   :  { %v508_v19 = vpack.c.bf16 %v506_v13, %v505_v15  ;;  %vm482_vm13 = vcmp.eq.s32.totalorder %v479_v17, %v6792_v0 }
 0x4c6   :  { %v6812_v20 = vsel %vm482_vm13, 1.0, %v6497_v2 }
 0x4c7   :  { %v507_v21 = vsub.f32 %v6812_v20, %v6808_v18  ;;  %5871 = vmatprep.mubr.msk.bf16.mxu0 %vm550_vm7, %v508_v19 }
 0x4c9   :  { %v509_v22 = vpack.c.bf16 %v507_v21, %v507_v21 }
 0x4cb   :  { %5872 = vmatmul.mubr.msk.bf16.vlgmr.msra.gmra.mxu0 %vm550_vm7, %v509_v22 }
 0x4cc   :  { %5885 = vmatprep.mubr.msk.bf16.mxu0 %vm6498_vm1, %v6497_v2  ;;  %5882 = vmatpush3.bf16.msra.mxu0 %v6368_v23 }
 0x4cd   :  { %5883 = vmatprep.subr.bf16.mxu0 %v6497_v2 }
 0x4d0   :  { %5884 = vmatpush3.bf16.msra.mxu0 %v6369_v24 }
 0x4d1   :  { %5897 = vmatprep.subr.bf16.mxu0 %v6497_v2 }
 0x573   :  { %v663_v26 = vpop.f32.mrf.mxu1 }
 0x574   :  { %v664_v27 = vadd.f32 %v5192_v25, %v663_v26  ;;  %v6376_v25 = vld [vmem:[%s7760_s12 + $0x18] sm:$0xff]   ;;  %v6377_v26 = vld [vmem:[%s7760_s12 + $0x10] sm:$0xff]  }
 0x575   :  { %v5879_v28 = vpop.f32.mrf.mxu1 }
 0x576   :  { %v669_v29 = vmax.f32 %v664_v27, 0.0  ;;  %v5202_v27 = vld [vmem:[%s7764_s15] ss:$0 sm:$0xff] }
 0x577   :  { %v666_v30 = vpop.f32.mrf.mxu1 }
 0x578   :  { %v670_v31 = vpack.c.bf16 %v669_v29, %v669_v29 }
 0x579   :  { %v5880_v32 = vpop.f32.mrf.mxu1 }
 0x57a   :  { %5886 = vmatmul.mubr.msk.bf16.vlgmr.msra.gmra.mxu0 %vm202_vm5, %v670_v31 }
 0x57b   :  { %5901 = vmatprep.mubr.msk.bf16.mxu0 %vm6498_vm1, %v6497_v2  ;;  %5898 = vmatpush3.bf16.msra.mxu0 %v6372_v55 }
 0x57c   :  { %5899 = vmatprep.subr.bf16.mxu0 %v6497_v2 }
 0x57f   :  { %5900 = vmatpush3.bf16.msra.mxu0 %v6373_v56 }
 0x580   :  { %5911 = vmatprep.subr.bf16.mxu0 %v6374_v57 }
 0x58b   :  { %v5873_v33 = vpop.f32.mrf.mxu0 }
 0x58c   :  { %v905_v53 = vsel %vm112_vm4, %v5873_v33, 0.0 }
 0x58d   :  { %v595_v34 = vpop.f32.mrf.mxu0  ;;  %v909_v54 = vpack.c.bf16 %v905_v53, %v905_v53 }
 0x58e   :  { %v903_v44 = vsel %vm112_vm4, %v595_v34, 0.0 }
 0x58f   :  { %v5874_v35 = vpop.f32.mrf.mxu0 }
 0x590   :  { %v5218_v35 = vld [vmem:[%s7761_s11 + $0x1] ss:$0 sm:$0xff] }
 0x591   :  { %v598_v39 = vpop.f32.mrf.mxu0 }
 0x592   :  { %v904_v45 = vsel %vm112_vm4, %v598_v39, 0.0 }
 0x593   :  { %v908_v51 = vpack.c.bf16 %v904_v45, %v903_v44 }
 0x63a   :  { %v731_v41 = vpop.f32.mrf.mxu0 }
 0x63b   :  { %v732_v42 = vadd.f32 %v5194_v40, %v731_v41 }
 0x63c   :  { %v5887_v43 = vpop.f32.mrf.mxu0 }
 0x63d   :  { %v737_v46 = vmax.f32 %v732_v42, 0.0  ;;  %v468_v43 = vld [vmem:[%s7765_s6 + $0x10] sm:$0xff] }
 0x63e   :  { %v734_v47 = vpop.f32.mrf.mxu0 }
 0x63f   :  { %v738_v48 = vpack.c.bf16 %v737_v46, %v737_v46 }
 0x640   :  { %v5888_v52 = vpop.f32.mrf.mxu0 }
 0x641   :  { %5894 = vmatmul.mubr.msk.bf16.vlgmr.msra.gmra.mxu1 %vm202_vm5, %v738_v48 }
 0x642   :  { %5907 = vmatprep.mubr.msk.bf16.mxu1 %vm550_vm7, %v908_v51  ;;  %5906 = vmatpush3.bf16.msra.mxu1 %v925_v50  ;;  %v6378_v50 = vld [vmem:[%s7762_s14 + $0x18] sm:$0xff]   ;;  %v6379_v51 = vld [vmem:[%s7762_s14 + $0x10] sm:$0xff]  }
 0x643   :  { %5919 = vmatprep.subr.bf16.mxu1 %v6376_v25 }
 0x649   :  { %5908 = vmatmul.mubr.msk.bf16.vlgmr.msra.gmra.mxu1 %vm550_vm7, %v909_v54 }
 0x64a   :  { %5920 = vmatpush3.bf16.msra.mxu1 %v6376_v25 }
 0x64b   :  { %5921 = vmatprep.subr.bf16.mxu1 %v6377_v26 }
 0x64e   :  { %5922 = vmatpush3.bf16.msra.mxu1 %v6377_v26 }
 0x701   :  { %v799_v59 = vpop.f32.mrf.mxu1 }
 0x702   :  { %v800_v60 = vadd.f32 %v5198_v58, %v799_v59  ;;  %v5228_v59 = vld [vmem:[%s7763_s13 + $0x1] ss:$0 sm:$0xff] }
 0x703   :  { %v5895_v61 = vpop.f32.mrf.mxu1 }
 0x704   :  { %v805_v62 = vmax.f32 %v800_v60, 0.0 }
 0x705   :  { %v802_v63 = vpop.f32.mrf.mxu1 }
 0x706   :  { %v806_v3 = vpack.c.bf16 %v805_v62, %v805_v62 }
 0x707   :  { %v5896_v5 = vpop.f32.mrf.mxu1 }
 0x708   :  { %5902 = vmatmul.mubr.msk.bf16.vlgmr.msra.gmra.mxu0 %vm202_vm5, %v806_v3 }
 0x709   :  { %v5909_v6 = vpop.f32.mrf.mxu1  ;;  %5912 = vmatpush3.bf16.msra.mxu0 %v6374_v57  ;;  %v466_v57 = vld [vmem:[%s7765_s6] sm:$0xff] }
 0x70a   :  { %5913 = vmatprep.subr.bf16.mxu0 %v6375_v4  ;;  %v970_v12 = vadd.f32 %v5909_v6, %v5210_v7 }
 0x70b   :  { %v961_v9 = vpop.f32.mrf.mxu1 }
 0x70c   :  { %v962_v14 = vadd.f32 %v5210_v7, %v961_v9  ;;  %v977_v19 = vmax.f32 %v970_v12, 0.0 }
 0x70d   :  { %v5910_v13 = vpop.f32.mrf.mxu1  ;;  %5914 = vmatpush3.bf16.msra.mxu0 %v6375_v4 }
 0x70e   :  { %v975_v21 = vmax.f32 %v962_v14, 0.0  ;;  %v979_v24 = vpack.c.bf16 %v977_v19, %v977_v19  ;;  %5927 = vmatprep.subr.bf16.mxu0 %v6378_v50  ;;  %v5206_v19 = vld [vmem:[%s7766_s16] ss:$0 sm:$0xff] }
 0x70f   :  { %v964_v15 = vpop.f32.mrf.mxu1 }
 0x710   :  { %v965_v17 = vadd.f32 %v5210_v7, %v964_v15 }
 0x712   :  { %v976_v22 = vmax.f32 %v965_v17, 0.0 }
 0x714   :  { %v978_v23 = vpack.c.bf16 %v976_v22, %v975_v21  ;;  %v5207_v22 = vld [vmem:[%s7767_s17] ss:$0 sm:$0xff] }
 0x716   :  { %5915 = vmatprep.mubr.msk.bf16.mxu0 %vm202_vm5, %v978_v23 }
 0x717   :  { %5916 = vmatmul.mubr.msk.bf16.vlgmr.msra.gmra.mxu0 %vm202_vm5, %v979_v24 }
 0x718   :  { %5928 = vmatpush3.bf16.msra.mxu0 %v6378_v50 }
 0x719   :  { %5929 = vmatprep.subr.bf16.mxu0 %v6379_v51 }
 0x71c   :  { %5930 = vmatpush3.bf16.msra.mxu0 %v6379_v51 }
 0x7c8   :  { %v867_v28 = vpop.f32.mrf.mxu0 }
 0x7c9   :  { %v868_v29 = vadd.f32 %v5202_v27, %v867_v28 }
 0x7ca   :  { %v5903_v30 = vpop.f32.mrf.mxu0 }
 0x7cb   :  { %v876_v31 = vsel %vm875_vm14, %v868_v29, 0.0 }
 0x7cc   :  { %877 = vadd.xlane.f32.xlu1 %v876_v31  ;;  %v870_v32 = vpop.f32.mrf.mxu0  ;;  %v6935_v31 = vpack.c.bf16 %v6812_v20, %v6812_v20 }
 0x7cd   :  { %v6939_v32 = vpack.c.bf16 %v6808_v18, %v6808_v18 }
 0x7ce   :  { %v5904_v33 = vpop.f32.mrf.mxu0 }
 0x7d7   :  { %v5917_v34 = vpop.f32.mrf.mxu0 }
 0x7d8   :  { %v1054_v38 = vadd.f32 %v5917_v34, %v5218_v35 }
 0x7d9   :  { %v1045_v36 = vpop.f32.mrf.mxu0 }
 0x7da   :  { %v1046_v40 = vadd.f32 %v5218_v35, %v1045_v36  ;;  %v1061_v44 = vmax.f32 %v1054_v38, 0.0  ;;  %v5238_v36 = vld [vmem:[%s7764_s15 + $0x1] ss:$0 sm:$0xff] }
 0x7db   :  { %v5918_v39 = vpop.f32.mrf.mxu0 }
 0x7dc   :  { %v1059_v45 = vmax.f32 %v1046_v40, 0.0  ;;  %v1063_v48 = vpack.c.bf16 %v1061_v44, %v1061_v44 }
 0x7dd   :  { %536 = vperm.xlu1 %6327, %v467_v37   ;;  %v1048_v41 = vpop.f32.mrf.mxu0 }
 0x7de   :  { %v1049_v42 = vadd.f32 %v5218_v35, %v1048_v41 }
 0x7e0   :  { %v1060_v46 = vmax.f32 %v1049_v42, 0.0 }
 0x7e1   :  { %539 = vperm.xlu1 %6327, %v468_v43  }
 0x7e2   :  { %v1062_v47 = vpack.c.bf16 %v1060_v46, %v1059_v45 }
 0x7e4   :  { %5923 = vmatprep.mubr.msk.bf16.mxu1 %vm202_vm5, %v1062_v47 }
 0x7e5   :  { %5924 = vmatmul.mubr.msk.bf16.vlgmr.msra.gmra.mxu1 %vm202_vm5, %v1063_v48 }
 0x7e6   :  { %5937 = vmatprep.mubr.msk.bf16.mxu1 %vm550_vm7, %v6800_v11 }
 0x855   :  { %v878_v52 = vpop.xlane.xlu1 %877 }
 0x856   :  { %v879_v53 = vmul.f32 0.0625, %v878_v52 }
 0x858   :  { %v880_v54 = vsub.f32 %v868_v29, %v879_v53 }
 0x859   :  { %v537_v25 = vpop.permute.xlu1 %536 }
 0x85a   :  { %v881_v55 = vmul.f32 %v880_v54, %v880_v54  ;;  %vm542_vm8 = vcmp.eq.s32.totalorder %v537_v25, %v6792_v0 }
 0x85b   :  { %v545_v33 = vsel %vm542_vm8, 1.0, %v6497_v2 }
 0x85c   :  { %v882_v56 = vsel %vm875_vm14, %v881_v55, 0.0 }
 0x85d   :  { %883 = vadd.xlane.f32.xlu0 %v882_v56  ;;  %v540_v30 = vpop.permute.xlu1 %539 }
 0x85e   :  { %vm543_vm9 = vcmp.eq.s32.totalorder %v540_v30, %v6792_v0 }
 0x85f   :  { %v546_v18 = vsel %vm543_vm9, 1.0, %v6497_v2  ;;  %vm3083_vm9 = vcmask 123904  }
 0x860   :  { %v6958_v20 = vpack.c.bf16 %v546_v18, %v546_v18  ;;  %v6381_v18 = vld [vmem:[%s7809_s25 + $0x70] sm:$0xff]  }
 0x873   :  { %533 = vperm.xlu0 %6326, %v466_v57  }
 0x8a5   :  { %v5925_v58 = vpop.f32.mrf.mxu1 }
 0x8a6   :  { %v1138_v61 = vadd.f32 %v5925_v58, %v5228_v59 }
 0x8a7   :  { %v1129_v60 = vpop.f32.mrf.mxu1 }
 0x8a8   :  { %v1130_v63 = vadd.f32 %v5228_v59, %v1129_v60  ;;  %v1145_v5 = vmax.f32 %v1138_v61, 0.0 }
 0x8a9   :  { %v5926_v62 = vpop.f32.mrf.mxu1 }
 0x8aa   :  { %v1143_v6 = vmax.f32 %v1130_v63, 0.0  ;;  %v1147_v12 = vpack.c.bf16 %v1145_v5, %v1145_v5 }
 0x8ab   :  { %v1132_v3 = vpop.f32.mrf.mxu1 }
 0x8ac   :  { %v1133_v4 = vadd.f32 %v5228_v59, %v1132_v3 }
 0x8ae   :  { %v1144_v7 = vmax.f32 %v1133_v4, 0.0 }
 0x8b0   :  { %v1146_v9 = vpack.c.bf16 %v1144_v7, %v1143_v6 }
 0x8b2   :  { %5931 = vmatprep.mubr.msk.bf16.mxu0 %vm202_vm5, %v1146_v9 }
 0x8b3   :  { %5932 = vmatmul.mubr.msk.bf16.vlgmr.msra.gmra.mxu0 %vm202_vm5, %v1147_v12 }
 0x8b4   :  { %5943 = vmatprep.mubr.msk.bf16.mxu0 %vm550_vm7, %v6805_v16 }
 0x8e6   :  { %v884_v13 = vpop.xlane.xlu0 %883 }
 0x8e7   :  { %v885_v14 = vmul.f32 0.0625, %v884_v13 }
 0x8e9   :  { %v886_v15 = vadd.f32 1e-05, %v885_v14  ;;  %v464_v14 = vld [vmem:[%s7768_s4] sm:$0xff]  ;;  %s7812_s4 = sld [smem:[#allocation8_spill]] }
 0x8eb   :  { %6453 = vrsqrt.f32 %v886_v15  ;;  %v6380_v15 = vld [vmem:[%s7809_s25 + $0x78] sm:$0xff]  }
 0x8ee   :  { %v534_v23 = vpop.permute.xlu0 %533 }
 0x8ef   :  { %vm541_vm15 = vcmp.eq.s32.totalorder %v534_v23, %v6792_v0 }
 0x8f0   :  { %v544_v28 = vsel %vm541_vm15, 1.0, %v6497_v2  ;;  %vm2372_vm15 = vcmask 195584  }
 0x8f1   :  { %v6944_v34 = vpack.c.bf16 %v545_v33, %v544_v28 }
 0x8f8   :  { %v6454_v17 = vpop.eup %6453 }
 0x8f9   :  { %v888_v21 = vmul.f32 %v6454_v17, %v880_v54 }
 0x8fb   :  { %v895_v24 = vmul.f32 %v5206_v19, %v888_v21 }
 0x8fd   :  { %v6923_v26 = vadd.f32 %v5207_v22, %v895_v24 }
 0x8ff   :  { %v1288_v27 = vpack.c.bf16 %v6923_v26, %v6923_v26 }
 0x901   :  { %6311 = vmatprep.subr.msk.bf16.mxu1 %vm557_vm6, %v1288_v27  ;;  %6312 = vmatprep.subr.msk.bf16.mxu0 %vm557_vm6, %v1288_v27  ;;  %v1296_v29 = vsel %vm557_vm6, %v1288_v27, 0 }
 0x902   :  { %5936 = vmatpush3.bf16.msra.mxu1 %v1296_v29  ;;  %5942 = vmatpush3.bf16.msra.mxu0 %v1296_v29 }
 0x903   :  { %5953 = vmatprep.subr.bf16.mxu0 %v6502_v49  ;;  %5947 = vmatprep.subr.bf16.mxu1 %v6497_v2 }
 0x905   :  { %5938 = vmatmul.mubr.msk.bf16.vlgmr.msra.gmra.mxu1 %vm550_vm7, %v6935_v31  ;;  %5944 = vmatmul.mubr.msk.bf16.vlgmr.msra.gmra.mxu0 %vm550_vm7, %v6939_v32 }
 0x906   :  { %5955 = vmatprep.mubr.msk.bf16.mxu0 %vm102_vm3, %v6944_v34  ;;  %5954 = vmatpush3.bf16.msra.mxu0 %v6502_v49 }
 0x907   :  { %5948 = vmatpush3.bf16.msra.mxu1 %v6502_v49  ;;  %5949 = vmatprep.mubr.msk.bf16.mxu1 %vm6498_vm1, %v6497_v2 }
 0x908   :  { %5959 = vmatprep.subr.bf16.mxu1 %v6380_v15 }
 0x90d   :  { %5956 = vmatmul.mubr.msk.bf16.vlgmr.msra.gmra.mxu0 %vm102_vm3, %v6958_v20 }
 0x973   :  { %v5933_v35 = vpop.f32.mrf.mxu0 }
 0x974   :  { %v1222_v40 = vadd.f32 %v5933_v35, %v5238_v36 }
 0x975   :  { %v1213_v37 = vpop.f32.mrf.mxu0 }
 0x976   :  { %v1214_v38 = vadd.f32 %v5238_v36, %v1213_v37  ;;  %v1237_v44 = vsel %vm875_vm14, %v1222_v40, 0.0  ;;  %v5245_v37 = vld [vmem:[%s7766_s16 + $0x1] ss:$0 sm:$0xff] }
 0x977   :  { %v5934_v39 = vpop.f32.mrf.mxu0 }
 0x978   :  { %v1231_v49 = vsel %vm875_vm14, %v1214_v38, 0.0 }
 0x979   :  { %v1216_v41 = vpop.f32.mrf.mxu0  ;;  %1232 = vadd.xlane.f32.xlu0 %v1231_v49 }
 0x97a   :  { %v1217_v42 = vadd.f32 %v5238_v36, %v1216_v41  ;;  %v6383_v41 = vld [vmem:[%s7809_s25 + $0x60] sm:$0xff]  }
 0x97c   :  { %v1234_v43 = vsel %vm875_vm14, %v1217_v42, 0.0 }
 0x97d   :  { %1235 = vadd.xlane.f32.xlu1 %v1234_v43  ;;  %1238 = vadd.xlane.f32.xlu0 %v1237_v44 }
 0x9c5   :  { %v6968_v45 = vpop.f32.mrf.mxu1  ;;  %v5945_v46 = vpop.f32.mrf.mxu0 }
 0x9c7   :  { %v6970_v47 = vpop.f32.mrf.mxu1  ;;  %v1386_v48 = vpop.f32.mrf.mxu0 }
 0x9c9   :  { %v5940_v50 = vpop.f32.mrf.mxu1  ;;  %v5946_v51 = vpop.f32.mrf.mxu0 }
 0x9cb   :  { %v1389_v52 = vpop.f32.mrf.mxu0 }
 0x9cc   :  { %v6328_v53 = vpack.i.bf16 %v1389_v52, %v1386_v48 }
 0x9cd   :  { %v6972_v54 = vpop.f32.mrf.mxu0 }
 0x9cf   :  { %v6974_v55 = vpop.f32.mrf.mxu0 }
 0x9d1   :  { %v5958_v56 = vpop.f32.mrf.mxu0 }
 0xa02   :  { %v1233_v57 = vpop.xlane.xlu0 %1232 }
 0xa03   :  { %v1240_v58 = vmul.f32 0.0625, %v1233_v57 }
 0xa05   :  { %v1243_v59 = vsub.f32 %v1214_v38, %v1240_v58 }
 0xa06   :  { %v1236_v60 = vpop.xlane.xlu1 %1235  ;;  %v1239_v61 = vpop.xlane.xlu0 %1238 }
 0xa07   :  { %v1241_v62 = vmul.f32 0.0625, %v1236_v60  ;;  %v1242_v63 = vmul.f32 0.0625, %v1239_v61  ;;  %v1246_v3 = vmul.f32 %v1243_v59, %v1243_v59 }
 0xa09   :  { %v1244_v4 = vsub.f32 %v1217_v42, %v1241_v62  ;;  %v1245_v5 = vsub.f32 %v1222_v40, %v1242_v63  ;;  %v1249_v6 = vsel %vm875_vm14, %v1246_v3, 0.0  ;;  %v5246_v42 = vld [vmem:[%s7767_s17 + $0x1] ss:$0 sm:$0xff] }
 0xa0a   :  { %1250 = vadd.xlane.f32.xlu0 %v1249_v6 }
 0xa0b   :  { %v1247_v7 = vmul.f32 %v1244_v4, %v1244_v4  ;;  %v1248_v9 = vmul.f32 %v1245_v5, %v1245_v5 }
 0xa0d   :  { %v1252_v12 = vsel %vm875_vm14, %v1247_v7, 0.0  ;;  %v1255_v13 = vsel %vm875_vm14, %v1248_v9, 0.0 }
 0xa0e   :  { %1253 = vadd.xlane.f32.xlu1 %v1252_v12  ;;  %1256 = vadd.xlane.f32.xlu0 %v1255_v13 }
 0xa1f   :  { %520 = vperm.xlu1 %6327, %v464_v14  }
 0xa23   :  { %1508 = vrot.lane.b32.xlu1 %v5945_v46, %s6503_s18 }
 0xa24   :  { %6329 = vrot.lane.b32.xlu0 %v6328_v53, %s6503_s18  ;;  %v1490_v53 = vpop.f32.mrf.mxu0 }
 0xa25   :  { %v6338_v56 = vpack.i.bf16 %v1490_v53, %v6974_v55 }
 0xa93   :  { %v1251_v17 = vpop.xlane.xlu0 %1250 }
 0xa94   :  { %v1258_v19 = vmul.f32 0.0625, %v1251_v17 }
 0xa96   :  { %v1261_v21 = vadd.f32 1e-05, %v1258_v19 }
 0xa97   :  { %v1254_v22 = vpop.xlane.xlu1 %1253  ;;  %v1257_v23 = vpop.xlane.xlu0 %1256 }
 0xa98   :  { %6455 = vrsqrt.f32 %v1261_v21  ;;  %v1259_v24 = vmul.f32 0.0625, %v1254_v22  ;;  %v1260_v25 = vmul.f32 0.0625, %v1257_v23 }
 0xa9a   :  { %v1262_v27 = vadd.f32 1e-05, %v1259_v24  ;;  %v1263_v28 = vadd.f32 1e-05, %v1260_v25 }
 0xa9b   :  { %v521_v29 = vpop.permute.xlu1 %520  ;;  %v6330_v57 = vpop.permute.xlu0 %6329 }
 0xa9c   :  { %6457 = vrsqrt.f32 %v1262_v27  ;;  %vm522_vm10 = vcmp.eq.s32.totalorder %v521_v29, %v6792_v0  ;;  %v6382_v0 = vld [vmem:[%s7809_s25 + $0x68] sm:$0xff]   ;;  %v6332_v60 = vunpack.i.h.bf16 %v6330_v57  ;;  %v6331_v62 = vunpack.i.l.bf16 %v6330_v57  ;;  %v6384_v29 = vld [vmem:[%s7758_s10 + $0x38] sm:$0xff]  }
 0xa9d   :  { %6459 = vrsqrt.f32 %v1263_v28  ;;  %v523_v30 = vsel %vm522_vm10, 1.0, %v6497_v2  ;;  %5971 = vmatprep.subr.bf16.mxu0 %v6384_v29 }
 0xa9e   :  { %v6989_v33 = vpack.c.bf16 %v523_v30, %v523_v30  ;;  %v1537_v7 = vsel %vm875_vm14, %v6970_v47, %v6331_v62  ;;  %5972 = vmatpush3.bf16.msra.mxu0 %v6384_v29  ;;  %v6385_v30 = vld [vmem:[%s7758_s10 + $0x30] sm:$0xff]  }
 0xa9f   :  { %v1509_v58 = vpop.permute.xlu1 %1508  ;;  %5973 = vmatprep.subr.bf16.mxu0 %v6385_v30 }
 0xaa0   :  { %5950 = vmatmul.mubr.msk.bf16.vlgmr.msra.gmra.mxu1 %vm102_vm3, %v6989_v33 }
 0xaa1   :  { %5960 = vmatpush3.bf16.msra.mxu1 %v6380_v15 }
 0xaa2   :  { %5961 = vmatprep.subr.bf16.mxu1 %v6381_v18  ;;  %5974 = vmatpush3.bf16.msra.mxu0 %v6385_v30  ;;  %v5295_v30 = vld [vmem:[%s7764_s15 + $0x3] ss:$0 sm:$0xff] }
 0xaa5   :  { %v6456_v35 = vpop.eup %6455  ;;  %5962 = vmatpush3.bf16.msra.mxu1 %v6381_v18 }
 0xaa6   :  { %v1267_v36 = vmul.f32 %v6456_v35, %v1243_v59  ;;  %5963 = vmatprep.subr.bf16.mxu1 %v6382_v0  ;;  %v5263_v35 = vld [vmem:[%s7759_s9 + $0x3] ss:$0 sm:$0xff] }
 0xaa8   :  { %v1276_v49 = vmul.f32 %v5245_v37, %v1267_v36 }
 0xaa9   :  { %v6458_v38 = vpop.eup %6457  ;;  %5964 = vmatpush3.bf16.msra.mxu1 %v6382_v0 }
 0xaaa   :  { %v6460_v39 = vpop.eup %6459  ;;  %v1268_v40 = vmul.f32 %v6458_v38, %v1244_v4  ;;  %5965 = vmatprep.subr.bf16.mxu1 %v6383_v41  ;;  %v7008_v48 = vadd.f32 %v5246_v42, %v1276_v49  ;;  %v7023_v4 = vpop.f32.mrf.mxu1 }
 0xaab   :  { %v1269_v43 = vmul.f32 %v6460_v39, %v1245_v5  ;;  %v1538_v55 = vsel %vm875_vm14, %v7023_v4, %v6332_v60 }
 0xaac   :  { %v1277_v44 = vmul.f32 %v5245_v37, %v1268_v40 }
 0xaad   :  { %v1278_v46 = vmul.f32 %v5245_v37, %v1269_v43  ;;  %5966 = vmatpush3.bf16.msra.mxu1 %v6383_v41 }
 0xaae   :  { %v7010_v50 = vadd.f32 %v5246_v42, %v1277_v44 }
 0xaaf   :  { %v7012_v51 = vadd.f32 %v5246_v42, %v1278_v46  ;;  %v6386_v46 = vld [vmem:[%s7760_s12 + $0x38] sm:$0xff]  }
 0xab0   :  { %v6333_v52 = vpack.i.bf16 %v7010_v50, %v7008_v48  ;;  %5979 = vmatprep.subr.bf16.mxu0 %v6386_v46 }
 0xab1   :  { %1520 = vrot.lane.b32.xlu0 %v7012_v51, %s6504_s30 }
 0xab2   :  { %6334 = vrot.lane.b32.xlu1 %v6333_v52, %s6504_s30  ;;  %v6387_v52 = vld [vmem:[%s7760_s12 + $0x30] sm:$0xff]  }
 0xab5   :  { %1532 = vrot.lane.b32.xlu0 %v6972_v54, %s6505_s2  ;;  %v1539_v54 = vsel %vm875_vm14, %v6968_v45, %v1509_v58 }
 0xab6   :  { %6339 = vrot.lane.b32.xlu1 %v6338_v56, %s6505_s2  ;;  %v5275_v56 = vld [vmem:[%s7761_s11 + $0x3] ss:$0 sm:$0xff] }
 0xb23   :  { %v1521_v59 = vpop.permute.xlu0 %1520 }
 0xb24   :  { %v6335_v61 = vpop.permute.xlu1 %6334  ;;  %v1542_v9 = vsel %vm202_vm5, %v1539_v54, %v1521_v59 }
 0xb25   :  { %v6337_v63 = vunpack.i.h.bf16 %v6335_v61  ;;  %v6336_v3 = vunpack.i.l.bf16 %v6335_v61 }
 0xb27   :  { %v1533_v5 = vpop.permute.xlu0 %1532  ;;  %v1540_v14 = vsel %vm202_vm5, %v1537_v7, %v6336_v3  ;;  %v1541_v15 = vsel %vm202_vm5, %v1538_v55, %v6337_v63  ;;  %v6389_v7 = vld [vmem:[%s7762_s14 + $0x30] sm:$0xff]  }
 0xb28   :  { %v6340_v6 = vpop.permute.xlu1 %6339  ;;  %v1546_v17 = vsel %vm1543_vm11, %v1542_v9, %v1533_v5 }
 0xb29   :  { %v6342_v12 = vunpack.i.h.bf16 %v6340_v6  ;;  %v6341_v13 = vunpack.i.l.bf16 %v6340_v6  ;;  %v1557_v23 = vpack.c.bf16 %v1546_v17, %v1546_v17  ;;  %v6388_v6 = vld [vmem:[%s7762_s14 + $0x38] sm:$0xff]  }
 0xb2a   :  { %5987 = vmatprep.subr.bf16.mxu1 %v6388_v6 }
 0xb2b   :  { %v1545_v19 = vsel %vm1543_vm11, %v1541_v15, %v6342_v12  ;;  %v1544_v21 = vsel %vm1543_vm11, %v1540_v14, %v6341_v13  ;;  %v5285_v12 = vld [vmem:[%s7763_s13 + $0x3] ss:$0 sm:$0xff] }
 0xb2c   :  { %v1556_v22 = vpack.c.bf16 %v1545_v19, %v1544_v21 }
 0xb2e   :  { %5967 = vmatprep.mubr.msk.bf16.mxu1 %vm1590_vm12, %v1556_v22 }
 0xb2f   :  { %5968 = vmatmul.mubr.msk.bf16.vlgmr.msra.gmra.mxu1 %vm1590_vm12, %v1557_v23 }
 0xb30   :  { %5988 = vmatpush3.bf16.msra.mxu1 %v6388_v6 }
 0xb31   :  { %5989 = vmatprep.subr.bf16.mxu1 %v6389_v7 }
 0xb34   :  { %5990 = vmatpush3.bf16.msra.mxu1 %v6389_v7 }
 0xb60   :  { %v7039_v24 = vpop.f32.mrf.mxu1 }
 0xb62   :  { %v5951_v25 = vpop.f32.mrf.mxu1 }
 0xb64   :  { %v1444_v27 = vpop.f32.mrf.mxu1 }
 0xb66   :  { %v5952_v28 = vpop.f32.mrf.mxu1 }
 0xbef   :  { %v5969_v18 = vpop.f32.mrf.mxu1 }
 0xbf0   :  { %v1640_v0 = vadd.f32 %v5969_v18, %v5263_v35 }
 0xbf1   :  { %v1631_v36 = vpop.f32.mrf.mxu1 }
 0xbf2   :  { %v1632_v38 = vadd.f32 %v5263_v35, %v1631_v36  ;;  %v1647_v49 = vmax.f32 %v1640_v0, 0.0 }
 0xbf3   :  { %v5970_v37 = vpop.f32.mrf.mxu1 }
 0xbf4   :  { %v1645_v41 = vmax.f32 %v1632_v38, 0.0  ;;  %v1649_v44 = vpack.c.bf16 %v1647_v49, %v1647_v49 }
 0xbf5   :  { %v1634_v39 = vpop.f32.mrf.mxu1 }
 0xbf6   :  { %v1635_v40 = vadd.f32 %v5263_v35, %v1634_v39 }
 0xbf8   :  { %v1646_v42 = vmax.f32 %v1635_v40, 0.0 }
 0xbfa   :  { %v1648_v43 = vpack.c.bf16 %v1646_v42, %v1645_v41 }
 0xbfc   :  { %5975 = vmatprep.mubr.msk.bf16.mxu0 %vm202_vm5, %v1648_v43 }
 0xbfd   :  { %5976 = vmatmul.mubr.msk.bf16.vlgmr.msra.gmra.mxu0 %vm202_vm5, %v1649_v44 }
 0xbfe   :  { %5980 = vmatpush3.bf16.msra.mxu0 %v6386_v46 }
 0xbff   :  { %5981 = vmatprep.subr.bf16.mxu0 %v6387_v52 }
 0xc02   :  { %5982 = vmatpush3.bf16.msra.mxu0 %v6387_v52 }
 0xcbd   :  { %v5977_v53 = vpop.f32.mrf.mxu0 }
 0xcbe   :  { %v1724_v58 = vadd.f32 %v5977_v53, %v5275_v56 }
 0xcbf   :  { %v1715_v57 = vpop.f32.mrf.mxu0 }
 0xcc0   :  { %v1716_v60 = vadd.f32 %v5275_v56, %v1715_v57  ;;  %v1731_v63 = vmax.f32 %v1724_v58, 0.0 }
 0xcc1   :  { %v5978_v59 = vpop.f32.mrf.mxu0 }
 0xcc2   :  { %v1729_v3 = vmax.f32 %v1716_v60, 0.0  ;;  %v1733_v54 = vpack.c.bf16 %v1731_v63, %v1731_v63 }
 0xcc3   :  { %v1718_v61 = vpop.f32.mrf.mxu0 }
 0xcc4   :  { %v1719_v62 = vadd.f32 %v5275_v56, %v1718_v61 }
 0xcc6   :  { %v1730_v5 = vmax.f32 %v1719_v62, 0.0 }
 0xcc8   :  { %v1732_v55 = vpack.c.bf16 %v1730_v5, %v1729_v3  ;;  %v6390_v3 = vld [vmem:[%s7809_s25 + $0x88] sm:$0xff]  }
 0xcc9   :  { %5995 = vmatprep.subr.bf16.mxu0 %v6390_v3 }
 0xcca   :  { %5983 = vmatprep.mubr.msk.bf16.mxu0 %vm202_vm5, %v1732_v55 }
 0xccb   :  { %5984 = vmatmul.mubr.msk.bf16.vlgmr.msra.gmra.mxu0 %vm202_vm5, %v1733_v54 }
 0xccc   :  { %5996 = vmatpush3.bf16.msra.mxu0 %v6390_v3 }
 0xd8b   :  { %v5985_v9 = vpop.f32.mrf.mxu0 }
 0xd8c   :  { %v1808_v14 = vadd.f32 %v5985_v9, %v5285_v12 }
 0xd8d   :  { %v1799_v13 = vpop.f32.mrf.mxu0 }
 0xd8e   :  { %v1800_v17 = vadd.f32 %v5285_v12, %v1799_v13  ;;  %v1815_v22 = vmax.f32 %v1808_v14, 0.0 }
 0xd8f   :  { %v5986_v15 = vpop.f32.mrf.mxu0 }
 0xd90   :  { %v1813_v23 = vmax.f32 %v1800_v17, 0.0  ;;  %v1817_v28 = vpack.c.bf16 %v1815_v22, %v1815_v22  ;;  %v5302_v17 = vld [vmem:[%s7766_s16 + $0x3] ss:$0 sm:$0xff] }
 0xd91   :  { %v1802_v19 = vpop.f32.mrf.mxu0  ;;  %v6391_v22 = vld [vmem:[%s7809_s25 + $0x80] sm:$0xff]  }
 0xd92   :  { %v1803_v21 = vadd.f32 %v5285_v12, %v1802_v19  ;;  %5997 = vmatprep.subr.bf16.mxu0 %v6391_v22 }
 0xd93   :  { %5998 = vmatpush3.bf16.msra.mxu0 %v6391_v22 }
 0xd94   :  { %v1814_v25 = vmax.f32 %v1803_v21, 0.0 }
 0xd96   :  { %v1816_v27 = vpack.c.bf16 %v1814_v25, %v1813_v23  ;;  %v5303_v25 = vld [vmem:[%s7767_s17 + $0x3] ss:$0 sm:$0xff] }
 0xd98   :  { %5991 = vmatprep.mubr.msk.bf16.mxu1 %vm202_vm5, %v1816_v27 }
 0xd99   :  { %5992 = vmatmul.mubr.msk.bf16.vlgmr.msra.gmra.mxu1 %vm202_vm5, %v1817_v28 }
 0xe59   :  { %v5993_v29 = vpop.f32.mrf.mxu1 }
 0xe5a   :  { %v1892_v39 = vadd.f32 %v5993_v29, %v5295_v30 }
 0xe5b   :  { %v1883_v18 = vpop.f32.mrf.mxu1 }
 0xe5c   :  { %v1884_v35 = vadd.f32 %v5295_v30, %v1883_v18  ;;  %v1907_v49 = vsel %vm875_vm14, %v1892_v39, 0.0 }
 0xe5d   :  { %v5994_v36 = vpop.f32.mrf.mxu1 }
 0xe5e   :  { %v1901_v0 = vsel %vm875_vm14, %v1884_v35, 0.0 }
 0xe5f   :  { %v1886_v37 = vpop.f32.mrf.mxu1  ;;  %1902 = vadd.xlane.f32.xlu1 %v1901_v0 }
 0xe60   :  { %v1887_v38 = vadd.f32 %v5295_v30, %v1886_v37 }
 0xe62   :  { %v1904_v40 = vsel %vm875_vm14, %v1887_v38, 0.0 }
 0xe63   :  { %1905 = vadd.xlane.f32.xlu0 %v1904_v40 }
 0xe67   :  { %1908 = vadd.xlane.f32.xlu0 %v1907_v49 }
 0xee8   :  { %v1903_v41 = vpop.xlane.xlu1 %1902 }
 0xee9   :  { %v1910_v42 = vmul.f32 0.0625, %v1903_v41 }
 0xeeb   :  { %v1913_v43 = vsub.f32 %v1884_v35, %v1910_v42 }
 0xeec   :  { %v1906_v44 = vpop.xlane.xlu0 %1905 }
 0xeed   :  { %v1911_v46 = vmul.f32 0.0625, %v1906_v44  ;;  %v1916_v52 = vmul.f32 %v1913_v43, %v1913_v43 }
 0xeef   :  { %v1914_v53 = vsub.f32 %v1887_v38, %v1911_v46  ;;  %v1919_v56 = vsel %vm875_vm14, %v1916_v52, 0.0 }
 0xef0   :  { %v1909_v57 = vpop.xlane.xlu0 %1908  ;;  %1920 = vadd.xlane.f32.xlu1 %v1919_v56 }
 0xef1   :  { %v1912_v58 = vmul.f32 0.0625, %v1909_v57  ;;  %v1917_v59 = vmul.f32 %v1914_v53, %v1914_v53 }
 0xef3   :  { %v1915_v60 = vsub.f32 %v1892_v39, %v1912_v58  ;;  %v1922_v61 = vsel %vm875_vm14, %v1917_v59, 0.0 }
 0xef4   :  { %1923 = vadd.xlane.f32.xlu0 %v1922_v61 }
 0xef5   :  { %v1918_v62 = vmul.f32 %v1915_v60, %v1915_v60 }
 0xef7   :  { %v1925_v63 = vsel %vm875_vm14, %v1918_v62, 0.0 }
 0xef8   :  { %1926 = vadd.xlane.f32.xlu1 %v1925_v63 }
 0xf79   :  { %v1921_v5 = vpop.xlane.xlu1 %1920 }
 0xf7a   :  { %v1928_v55 = vmul.f32 0.0625, %v1921_v5 }
 0xf7c   :  { %v1931_v54 = vadd.f32 1e-05, %v1928_v55  ;;  %v6394_v55 = vld [vmem:[%s7760_s12 + $0x48] sm:$0xff]  }
 0xf7d   :  { %v1924_v6 = vpop.xlane.xlu0 %1923  ;;  %6011 = vmatprep.subr.bf16.mxu0 %v6394_v55 }
 0xf7e   :  { %6461 = vrsqrt.f32 %v1931_v54  ;;  %v1929_v7 = vmul.f32 0.0625, %v1924_v6  ;;  %v6395_v54 = vld [vmem:[%s7760_s12 + $0x40] sm:$0xff]  }
 0xf80   :  { %v1932_v9 = vadd.f32 1e-05, %v1929_v7  ;;  %v5319_v7 = vld [vmem:[%s7761_s11 + $0x4] ss:$0 sm:$0xff] }
 0xf81   :  { %v1927_v12 = vpop.xlane.xlu1 %1926 }
 0xf82   :  { %6463 = vrsqrt.f32 %v1932_v9  ;;  %v1930_v13 = vmul.f32 0.0625, %v1927_v12 }
 0xf84   :  { %v1933_v14 = vadd.f32 1e-05, %v1930_v13 }
 0xf86   :  { %6465 = vrsqrt.f32 %v1933_v14 }
 0xf8b   :  { %v6462_v15 = vpop.eup %6461 }
 0xf8c   :  { %v1937_v19 = vmul.f32 %v6462_v15, %v1913_v43 }
 0xf8e   :  { %v1946_v21 = vmul.f32 %v5302_v17, %v1937_v19 }
 0xf8f   :  { %v6464_v23 = vpop.eup %6463 }
 0xf90   :  { %v1938_v27 = vmul.f32 %v6464_v23, %v1914_v53  ;;  %v1955_v29 = vadd.f32 %v5303_v25, %v1946_v21 }
 0xf92   :  { %v1947_v28 = vmul.f32 %v5302_v17, %v1938_v27  ;;  %v7096_v36 = vadd.f32 %v1955_v29, %v7008_v48  ;;  %v6396_v27 = vld [vmem:[%s7762_s14 + $0x48] sm:$0xff]  }
 0xf93   :  { %v6466_v30 = vpop.eup %6465 }
 0xf94   :  { %v1956_v18 = vadd.f32 %v5303_v25, %v1947_v28  ;;  %v1939_v35 = vmul.f32 %v6466_v30, %v1915_v60  ;;  %v6397_v28 = vld [vmem:[%s7762_s14 + $0x40] sm:$0xff]  }
 0xf95   :  { %v5329_v30 = vld [vmem:[%s7763_s13 + $0x4] ss:$0 sm:$0xff] }
 0xf96   :  { %v7099_v0 = vadd.f32 %v1956_v18, %v7010_v50  ;;  %v1948_v37 = vmul.f32 %v5302_v17, %v1939_v35 }
 0xf98   :  { %v7103_v38 = vpack.i.bf16 %v7099_v0, %v7096_v36  ;;  %v1957_v39 = vadd.f32 %v5303_v25, %v1948_v37 }
 0xf9a   :  { %6344 = vrot.lane.b32.xlu0 %v7103_v38, %s6503_s18  ;;  %v7108_v40 = vadd.f32 %v1957_v39, %v7012_v51  ;;  %v6392_v51 = vld [vmem:[%s7758_s10 + $0x48] sm:$0xff]  }
 0xf9b   :  { %6003 = vmatprep.subr.bf16.mxu1 %v6392_v51 }
 0xf9c   :  { %1968 = vrot.lane.b32.xlu1 %v7108_v40, %s6503_s18  ;;  %6004 = vmatpush3.bf16.msra.mxu1 %v6392_v51 }
0x100c   :  { %v6345_v48 = vpop.permute.xlu0 %6344 }
0x100d   :  { %v6347_v49 = vunpack.i.h.bf16 %v6345_v48  ;;  %v6346_v41 = vunpack.i.l.bf16 %v6345_v48 }
0x100e   :  { %v1969_v50 = vpop.permute.xlu1 %1968 }
0x100f   :  { %v1974_v42 = vsel %vm875_vm14, %v7023_v4, %v6347_v49  ;;  %v1973_v43 = vsel %vm875_vm14, %v6970_v47, %v6346_v41  ;;  %v1975_v44 = vsel %vm875_vm14, %v6968_v45, %v1969_v50  ;;  %v6393_v4 = vld [vmem:[%s7758_s10 + $0x40] sm:$0xff]  }
0x1010   :  { %v1981_v46 = vpack.c.bf16 %v1974_v42, %v1973_v43  ;;  %v1982_v52 = vpack.c.bf16 %v1975_v44, %v1975_v44  ;;  %6005 = vmatprep.subr.bf16.mxu1 %v6393_v4  ;;  %v5309_v45 = vld [vmem:[%s7759_s9 + $0x4] ss:$0 sm:$0xff] }
0x1011   :  { %6006 = vmatpush3.bf16.msra.mxu1 %v6393_v4 }
0x1012   :  { %5999 = vmatprep.mubr.msk.bf16.mxu0 %vm202_vm5, %v1981_v46  ;;  %6019 = vmatprep.subr.bf16.mxu1 %v6396_v27  ;;  %v5339_v46 = vld [vmem:[%s7764_s15 + $0x4] ss:$0 sm:$0xff] }
0x1013   :  { %6000 = vmatmul.mubr.msk.bf16.vlgmr.msra.gmra.mxu0 %vm202_vm5, %v1982_v52 }
0x1014   :  { %6012 = vmatpush3.bf16.msra.mxu0 %v6394_v55 }
0x1015   :  { %6013 = vmatprep.subr.bf16.mxu0 %v6395_v54 }
0x1018   :  { %6014 = vmatpush3.bf16.msra.mxu0 %v6395_v54 }
0x1019   :  { %6027 = vmatprep.subr.bf16.mxu0 %v6497_v2 }
0x10d3   :  { %v6001_v47 = vpop.f32.mrf.mxu0 }
0x10d4   :  { %v2052_v56 = vadd.f32 %v6001_v47, %v5309_v45 }
0x10d5   :  { %v2043_v53 = vpop.f32.mrf.mxu0 }
0x10d6   :  { %v2044_v58 = vadd.f32 %v5309_v45, %v2043_v53  ;;  %v2059_v61 = vmax.f32 %v2052_v56, 0.0 }
0x10d7   :  { %v6002_v57 = vpop.f32.mrf.mxu0 }
0x10d8   :  { %v2057_v62 = vmax.f32 %v2044_v58, 0.0  ;;  %v2061_v5 = vpack.c.bf16 %v2059_v61, %v2059_v61 }
0x10d9   :  { %v2046_v59 = vpop.f32.mrf.mxu0 }
0x10da   :  { %v2047_v60 = vadd.f32 %v5309_v45, %v2046_v59 }
0x10dc   :  { %v2058_v63 = vmax.f32 %v2047_v60, 0.0 }
0x10de   :  { %v2060_v3 = vpack.c.bf16 %v2058_v63, %v2057_v62 }
0x10e0   :  { %6007 = vmatprep.mubr.msk.bf16.mxu1 %vm202_vm5, %v2060_v3 }
0x10e1   :  { %6008 = vmatmul.mubr.msk.bf16.vlgmr.msra.gmra.mxu1 %vm202_vm5, %v2061_v5 }
0x10e2   :  { %6020 = vmatpush3.bf16.msra.mxu1 %v6396_v27 }
0x10e3   :  { %6021 = vmatprep.subr.bf16.mxu1 %v6397_v28 }
0x10e6   :  { %6022 = vmatpush3.bf16.msra.mxu1 %v6397_v28 }
0x10e7   :  { %6035 = vmatprep.subr.bf16.mxu1 %v6497_v2 }
0x11a1   :  { %v6009_v6 = vpop.f32.mrf.mxu1 }
0x11a2   :  { %v2136_v12 = vadd.f32 %v6009_v6, %v5319_v7 }
0x11a3   :  { %v2127_v9 = vpop.f32.mrf.mxu1 }
0x11a4   :  { %v2128_v14 = vadd.f32 %v5319_v7, %v2127_v9  ;;  %v2143_v19 = vmax.f32 %v2136_v12, 0.0 }
0x11a5   :  { %v6010_v13 = vpop.f32.mrf.mxu1 }
0x11a6   :  { %v2141_v21 = vmax.f32 %v2128_v14, 0.0  ;;  %v2145_v25 = vpack.c.bf16 %v2143_v19, %v2143_v19 }
0x11a7   :  { %v2130_v15 = vpop.f32.mrf.mxu1 }
0x11a8   :  { %v2131_v17 = vadd.f32 %v5319_v7, %v2130_v15 }
0x11aa   :  { %v2142_v22 = vmax.f32 %v2131_v17, 0.0 }
0x11ac   :  { %v2144_v23 = vpack.c.bf16 %v2142_v22, %v2141_v21 }
0x11ae   :  { %6015 = vmatprep.mubr.msk.bf16.mxu0 %vm202_vm5, %v2144_v23 }
0x11af   :  { %6016 = vmatmul.mubr.msk.bf16.vlgmr.msra.gmra.mxu0 %vm202_vm5, %v2145_v25 }
0x11b0   :  { %6031 = vmatprep.mubr.msk.bf16.mxu0 %vm6498_vm1, %v6497_v2 }
0x126f   :  { %v6017_v29 = vpop.f32.mrf.mxu0 }
0x1270   :  { %v2220_v35 = vadd.f32 %v6017_v29, %v5329_v30 }
0x1271   :  { %v2211_v18 = vpop.f32.mrf.mxu0 }
0x1272   :  { %v2212_v39 = vadd.f32 %v5329_v30, %v2211_v18  ;;  %v2227_v41 = vmax.f32 %v2220_v35, 0.0  ;;  %v5346_v18 = vld [vmem:[%s7766_s16 + $0x4] ss:$0 sm:$0xff] }
0x1273   :  { %v6018_v37 = vpop.f32.mrf.mxu0 }
0x1274   :  { %v2225_v50 = vmax.f32 %v2212_v39, 0.0  ;;  %v2229_v44 = vpack.c.bf16 %v2227_v41, %v2227_v41 }
0x1275   :  { %v2214_v48 = vpop.f32.mrf.mxu0 }
0x1276   :  { %v2215_v49 = vadd.f32 %v5329_v30, %v2214_v48 }
0x1278   :  { %v2226_v42 = vmax.f32 %v2215_v49, 0.0  ;;  %v7177_v49 = vshrl.u32 %v469_v1, 7 }
0x127a   :  { %v2228_v43 = vpack.c.bf16 %v2226_v42, %v2225_v50  ;;  %v5188_v50 = vld [vmem:[%s7769_s3] ss:$0 sm:$0xff] }
0x127b   :  { %vm516_vm13 = vcmp.eq.s32.totalorder %v5188_v50, %v7177_v49 }
0x127c   :  { %6023 = vmatprep.mubr.msk.bf16.mxu1 %vm202_vm5, %v2228_v43 }
0x127d   :  { %6024 = vmatmul.mubr.msk.bf16.vlgmr.msra.gmra.mxu1 %vm202_vm5, %v2229_v44 }
0x127e   :  { %6041 = vmatprep.mubr.msk.bf16.mxu1 %vm6498_vm1, %v6497_v2 }
0x133d   :  { %v6025_v52 = vpop.f32.mrf.mxu1 }
0x133e   :  { %v2304_v51 = vadd.f32 %v6025_v52, %v5339_v46 }
0x133f   :  { %v2295_v4 = vpop.f32.mrf.mxu1 }
0x1340   :  { %v2296_v47 = vadd.f32 %v5339_v46, %v2295_v4  ;;  %v2319_v45 = vsel %vm875_vm14, %v2304_v51, 0.0 }
0x1341   :  { %2320 = vadd.xlane.f32.xlu1 %v2319_v45  ;;  %v6026_v53 = vpop.f32.mrf.mxu1 }
0x1342   :  { %v2313_v56 = vsel %vm875_vm14, %v2296_v47, 0.0 }
0x1343   :  { %v2298_v57 = vpop.f32.mrf.mxu1  ;;  %2314 = vadd.xlane.f32.xlu0 %v2313_v56  ;;  %v6398_v56 = vld [vmem:[%s7809_s25 + $0xb0] sm:$0xff]  }
0x1344   :  { %v2299_v58 = vadd.f32 %v5339_v46, %v2298_v57  ;;  %6036 = vmatpush3.bf16.msra.mxu1 %v6398_v56  ;;  %v6399_v57 = vld [vmem:[%s7809_s25 + $0xa8] sm:$0xff]  }
0x1345   :  { %6037 = vmatprep.subr.bf16.mxu1 %v6497_v2 }
0x1346   :  { %v2316_v59 = vsel %vm875_vm14, %v2299_v58, 0.0 }
0x1347   :  { %2317 = vadd.xlane.f32.xlu0 %v2316_v59 }
0x1348   :  { %6038 = vmatpush3.bf16.msra.mxu1 %v6399_v57 }
0x1349   :  { %6039 = vmatprep.subr.bf16.mxu1 %v6497_v2 }
0x13ca   :  { %v2321_v60 = vpop.xlane.xlu1 %2320 }
0x13cb   :  { %v2324_v61 = vmul.f32 0.0625, %v2321_v60 }
0x13cc   :  { %v2315_v62 = vpop.xlane.xlu0 %2314 }
0x13cd   :  { %v2327_v63 = vsub.f32 %v2304_v51, %v2324_v61  ;;  %v2322_v3 = vmul.f32 0.0625, %v2315_v62 }
0x13cf   :  { %v2325_v5 = vsub.f32 %v2296_v47, %v2322_v3  ;;  %v2330_v55 = vmul.f32 %v2327_v63, %v2327_v63  ;;  %v517_v47 = vsel %vm516_vm13, 1.0, %v6497_v2 }
0x13d0   :  { %v2318_v54 = vpop.xlane.xlu0 %2317  ;;  %v7186_v53 = vpack.c.bf16 %v517_v47, %v517_v47 }
0x13d1   :  { %v2323_v6 = vmul.f32 0.0625, %v2318_v54  ;;  %v2337_v7 = vsel %vm875_vm14, %v2330_v55, 0.0  ;;  %v2328_v9 = vmul.f32 %v2325_v5, %v2325_v5 }
0x13d2   :  { %2338 = vadd.xlane.f32.xlu1 %v2337_v7  ;;  %v6402_v7 = vld [vmem:[%s7758_s10 + $0x50] sm:$0xff]  }
0x13d3   :  { %v2326_v12 = vsub.f32 %v2299_v58, %v2323_v6  ;;  %v2331_v13 = vsel %vm875_vm14, %v2328_v9, 0.0  ;;  %v6400_v58 = vld [vmem:[%s7809_s25 + $0xa0] sm:$0xff]   ;;  %v6401_v6 = vld [vmem:[%s7758_s10 + $0x58] sm:$0xff]  }
0x13d4   :  { %2332 = vadd.xlane.f32.xlu0 %v2331_v13  ;;  %6040 = vmatpush3.bf16.msra.mxu1 %v6400_v58  ;;  %v5356_v9 = vld [vmem:[%s7759_s9 + $0x5] ss:$0 sm:$0xff] }
0x13d5   :  { %v2329_v14 = vmul.f32 %v2326_v12, %v2326_v12  ;;  %6061 = vmatprep.subr.bf16.mxu1 %v6497_v2 }
0x13d7   :  { %v2334_v15 = vsel %vm875_vm14, %v2329_v14, 0.0 }
0x13d8   :  { %2335 = vadd.xlane.f32.xlu1 %v2334_v15 }
0x13e9   :  { %2424 = vrot.lane.b32.xlu1 %v7039_v24, %s6504_s30  ;;  %v5347_v24 = vld [vmem:[%s7767_s17 + $0x4] ss:$0 sm:$0xff] }
0x145b   :  { %v2339_v17 = vpop.xlane.xlu1 %2338 }
0x145c   :  { %v2342_v19 = vmul.f32 0.0625, %v2339_v17 }
0x145d   :  { %v2333_v21 = vpop.xlane.xlu0 %2332 }
0x145e   :  { %v2345_v22 = vadd.f32 1e-05, %v2342_v19  ;;  %v2340_v23 = vmul.f32 0.0625, %v2333_v21 }
0x1460   :  { %6467 = vrsqrt.f32 %v2345_v22  ;;  %v2343_v25 = vadd.f32 1e-05, %v2340_v23  ;;  %v6403_v22 = vld [vmem:[%s7760_s12 + $0x58] sm:$0xff]   ;;  %v6404_v23 = vld [vmem:[%s7760_s12 + $0x50] sm:$0xff]  }
0x1461   :  { %v2336_v27 = vpop.xlane.xlu1 %2335 }
0x1462   :  { %6469 = vrsqrt.f32 %v2343_v25  ;;  %v2341_v28 = vmul.f32 0.0625, %v2336_v27  ;;  %v5366_v25 = vld [vmem:[%s7761_s11 + $0x5] ss:$0 sm:$0xff] }
0x1464   :  { %v2344_v29 = vadd.f32 1e-05, %v2341_v28 }
0x1465   :  { %v2425_v3 = vpop.permute.xlu1 %2424 }
0x1466   :  { %6471 = vrsqrt.f32 %v2344_v29 }
0x146d   :  { %v6468_v30 = vpop.eup %6467 }
0x146e   :  { %v2351_v35 = vmul.f32 %v6468_v30, %v2327_v63 }
0x146f   :  { %v6470_v37 = vpop.eup %6469 }
0x1470   :  { %v2360_v39 = vmul.f32 %v5346_v18, %v2351_v35  ;;  %v2349_v48 = vmul.f32 %v6470_v37, %v2325_v5 }
0x1472   :  { %v2369_v41 = vadd.f32 %v5347_v24, %v2360_v39  ;;  %v2358_v46 = vmul.f32 %v5346_v18, %v2349_v48  ;;  %v6406_v39 = vld [vmem:[%s7762_s14 + $0x50] sm:$0xff]   ;;  %v5375_v48 = vld [vmem:[%s7763_s13 + $0x5] ss:$0 sm:$0xff] }
0x1473   :  { %v6472_v42 = vpop.eup %6471 }
0x1474   :  { %v2371_v43 = vpack.c.bf16 %v2369_v41, %v2369_v41  ;;  %v2350_v44 = vmul.f32 %v6472_v42, %v2326_v12  ;;  %v2367_v4 = vadd.f32 %v5347_v24, %v2358_v46 }
0x1476   :  { %v2377_v52 = vsel %vm557_vm6, %v2371_v43, 0  ;;  %v2359_v51 = vmul.f32 %v5346_v18, %v2350_v44 }
0x1477   :  { %6028 = vmatpush3.bf16.msra.mxu0 %v2377_v52 }
0x1478   :  { %6029 = vmatprep.subr.bf16.mxu0 %v6497_v2  ;;  %v2368_v1 = vadd.f32 %v5347_v24, %v2359_v51  ;;  %v6405_v24 = vld [vmem:[%s7762_s14 + $0x58] sm:$0xff]   ;;  %v5384_v51 = vld [vmem:[%s7764_s15 + $0x5] ss:$0 sm:$0xff] }
0x147a   :  { %v2370_v45 = vpack.c.bf16 %v2368_v1, %v2367_v4 }
0x147c   :  { %6030 = vmatpush3.bf16.msra.mxu0 %v2370_v45 }
0x147d   :  { %6045 = vmatprep.subr.bf16.mxu0 %v6497_v2 }
0x147f   :  { %6032 = vmatmul.mubr.msk.bf16.vlgmr.msra.gmra.mxu0 %vm2372_vm15, %v7186_v53 }
0x1480   :  { %6049 = vmatprep.mubr.msk.bf16.mxu0 %vm6498_vm1, %v6497_v2  ;;  %6046 = vmatpush3.bf16.msra.mxu0 %v6401_v6 }
0x1481   :  { %6047 = vmatprep.subr.bf16.mxu0 %v6497_v2 }
0x1484   :  { %6048 = vmatpush3.bf16.msra.mxu0 %v6402_v7  ;;  %v5391_v7 = vld [vmem:[%s7767_s17 + $0x5] ss:$0 sm:$0xff] }
0x1485   :  { %6053 = vmatprep.subr.bf16.mxu0 %v6497_v2 }
0x153f   :  { %v2413_v59 = vpop.f32.mrf.mxu0 }
0x1540   :  { %2420 = vrot.lane.b32.xlu0 %v2413_v59, %s6503_s18 }
0x1541   :  { %v6033_v60 = vpop.f32.mrf.mxu0 }
0x1543   :  { %v2416_v61 = vpop.f32.mrf.mxu0 }
0x1545   :  { %v6034_v62 = vpop.f32.mrf.mxu0 }
0x15b2   :  { %v2421_v63 = vpop.permute.xlu0 %2420 }
0x15b3   :  { %v2427_v5 = vsel %vm875_vm14, %v6923_v26, %v2421_v63 }
0x15b4   :  { %v2428_v55 = vsel %vm202_vm5, %v2427_v5, %v2425_v3 }
0x15b5   :  { %v2436_v54 = vpack.c.bf16 %v2428_v55, %v2428_v55 }
0x15b7   :  { %6042 = vmatmul.mubr.msk.bf16.vlgmr.msra.gmra.mxu1 %vm1543_vm11, %v2436_v54  ;;  %v5390_v54 = vld [vmem:[%s7766_s16 + $0x5] ss:$0 sm:$0xff] }
0x15b8   :  { %6065 = vmatprep.mubr.msk.bf16.mxu1 %vm6498_vm1, %v6497_v2  ;;  %6062 = vmatpush3.bf16.msra.mxu1 %v6405_v24  ;;  %v6412_v24 = vld [vmem:[%s7758_s10 + $0x60] sm:$0xff]  }
0x15b9   :  { %6063 = vmatprep.subr.bf16.mxu1 %v6497_v2 }
0x15bc   :  { %6064 = vmatpush3.bf16.msra.mxu1 %v6406_v39  ;;  %v5398_v39 = vld [vmem:[%s7759_s9 + $0x6] ss:$0 sm:$0xff] }
0x15bd   :  { %6075 = vmatprep.subr.bf16.mxu1 %v6497_v2 }
0x1677   :  { %v2500_v12 = vpop.f32.mrf.mxu1 }
0x1678   :  { %v2501_v13 = vadd.f32 %v5356_v9, %v2500_v12  ;;  %v5189_v9 = vld [vmem:[%s7770_s5] ss:$0 sm:$0xff] }
0x1679   :  { %v6043_v14 = vpop.f32.mrf.mxu1  ;;  %vm529_vm8 = vcmp.eq.s32.totalorder %v5189_v9, %v7177_v49  ;;  %v6408_v49 = vld [vmem:[%s7809_s25 + $0xc0] sm:$0xff]  }
0x167a   :  { %v2506_v15 = vmax.f32 %v2501_v13, 0.0 }
0x167b   :  { %v2503_v17 = vpop.f32.mrf.mxu1 }
0x167c   :  { %v2507_v19 = vpack.c.bf16 %v2506_v15, %v2506_v15  ;;  %v530_v15 = vsel %vm529_vm8, 1.0, %v6497_v2 }
0x167d   :  { %v6044_v21 = vpop.f32.mrf.mxu1 }
0x167e   :  { %6050 = vmatmul.mubr.msk.bf16.vlgmr.msra.gmra.mxu0 %vm202_vm5, %v2507_v19  ;;  %v531_v21 = vpack.c.bf16 %v530_v15, %v530_v15 }
0x167f   :  { %6057 = vmatprep.mubr.msk.bf16.mxu0 %vm6498_vm1, %v6497_v2  ;;  %6054 = vmatpush3.bf16.msra.mxu0 %v6403_v22  ;;  %v6411_v22 = vld [vmem:[%s7758_s10 + $0x68] sm:$0xff]  }
0x1680   :  { %6055 = vmatprep.subr.bf16.mxu0 %v6497_v2 }
0x1683   :  { %6056 = vmatpush3.bf16.msra.mxu0 %v6404_v23 }
0x1684   :  { %6069 = vmatprep.subr.bf16.mxu0 %v6497_v2 }
0x173e   :  { %v2570_v27 = vpop.f32.mrf.mxu0 }
0x173f   :  { %v2571_v28 = vadd.f32 %v5366_v25, %v2570_v27 }
0x1740   :  { %v6051_v29 = vpop.f32.mrf.mxu0 }
0x1741   :  { %v2576_v30 = vmax.f32 %v2571_v28, 0.0 }
0x1742   :  { %v2573_v18 = vpop.f32.mrf.mxu0 }
0x1743   :  { %v2577_v35 = vpack.c.bf16 %v2576_v30, %v2576_v30  ;;  %v6409_v18 = vld [vmem:[%s7760_s12 + $0x68] sm:$0xff]  }
0x1744   :  { %v6052_v37 = vpop.f32.mrf.mxu0 }
0x1745   :  { %6058 = vmatmul.mubr.msk.bf16.vlgmr.msra.gmra.mxu0 %vm202_vm5, %v2577_v35  ;;  %v6410_v37 = vld [vmem:[%s7760_s12 + $0x60] sm:$0xff]  }
0x1746   :  { %6071 = vmatprep.mubr.msk.bf16.mxu0 %vm6498_vm1, %v6497_v2 }
0x1805   :  { %v2640_v41 = vpop.f32.mrf.mxu0 }
0x1806   :  { %v2641_v50 = vadd.f32 %v5375_v48, %v2640_v41 }
0x1807   :  { %v6059_v42 = vpop.f32.mrf.mxu0 }
0x1808   :  { %v2646_v43 = vmax.f32 %v2641_v50, 0.0 }
0x1809   :  { %v2643_v44 = vpop.f32.mrf.mxu0 }
0x180a   :  { %v2647_v46 = vpack.c.bf16 %v2646_v43, %v2646_v43  ;;  %v6413_v44 = vld [vmem:[%s7762_s14 + $0x68] sm:$0xff]  }
0x180b   :  { %v6060_v52 = vpop.f32.mrf.mxu0 }
0x180c   :  { %6066 = vmatmul.mubr.msk.bf16.vlgmr.msra.gmra.mxu1 %vm202_vm5, %v2647_v46 }
0x180d   :  { %6079 = vmatprep.mubr.msk.bf16.mxu1 %vm6498_vm1, %v6497_v2 }
0x18cc   :  { %v2710_v4 = vpop.f32.mrf.mxu1 }
0x18cd   :  { %v2711_v1 = vadd.f32 %v5384_v51, %v2710_v4  ;;  %v6414_v51 = vld [vmem:[%s7762_s14 + $0x60] sm:$0xff]  }
0x18ce   :  { %v6067_v47 = vpop.f32.mrf.mxu1  ;;  %v5407_v4 = vld [vmem:[%s7761_s11 + $0x6] ss:$0 sm:$0xff] }
0x18cf   :  { %v2720_v45 = vsel %vm875_vm14, %v2711_v1, 0.0 }
0x18d0   :  { %2721 = vadd.xlane.f32.xlu1 %v2720_v45  ;;  %v2713_v56 = vpop.f32.mrf.mxu1 }
0x18d2   :  { %v6068_v57 = vpop.f32.mrf.mxu1 }
0x1959   :  { %v2722_v58 = vpop.xlane.xlu1 %2721 }
0x195a   :  { %v2723_v59 = vmul.f32 0.0625, %v2722_v58 }
0x195c   :  { %v2724_v60 = vsub.f32 %v2711_v1, %v2723_v59 }
0x195e   :  { %v2725_v61 = vmul.f32 %v2724_v60, %v2724_v60 }
0x1960   :  { %v2726_v62 = vsel %vm875_vm14, %v2725_v61, 0.0 }
0x1961   :  { %2727 = vadd.xlane.f32.xlu0 %v2726_v62 }
0x19ea   :  { %v2728_v63 = vpop.xlane.xlu0 %2727 }
0x19eb   :  { %v2729_v3 = vmul.f32 0.0625, %v2728_v63 }
0x19ed   :  { %v2730_v5 = vadd.f32 1e-05, %v2729_v3 }
0x19ef   :  { %6473 = vrsqrt.f32 %v2730_v5 }
0x19fc   :  { %v6474_v55 = vpop.eup %6473 }
0x19fd   :  { %v2732_v6 = vmul.f32 %v6474_v55, %v2724_v60  ;;  %v5416_v60 = vld [vmem:[%s7763_s13 + $0x6] ss:$0 sm:$0xff] }
0x19ff   :  { %v2739_v12 = vmul.f32 %v5390_v54, %v2732_v6 }
0x1a01   :  { %v2746_v13 = vadd.f32 %v5391_v7, %v2739_v12  ;;  %v5425_v7 = vld [vmem:[%s7764_s15 + $0x6] ss:$0 sm:$0xff] }
0x1a03   :  { %v7270_v14 = vadd.f32 %v2746_v13, %v6923_v26  ;;  %v6407_v26 = vld [vmem:[%s7809_s25 + $0xc8] sm:$0xff]  }
0x1a04   :  { %6076 = vmatpush3.bf16.msra.mxu1 %v6407_v26 }
0x1a05   :  { %v2748_v17 = vpack.c.bf16 %v7270_v14, %v7270_v14  ;;  %6077 = vmatprep.subr.bf16.mxu1 %v6497_v2 }
0x1a07   :  { %v7276_v19 = vsel %vm557_vm6, %v2748_v17, 0 }
0x1a08   :  { %6070 = vmatpush3.bf16.msra.mxu0 %v7276_v19  ;;  %6078 = vmatpush3.bf16.msra.mxu1 %v6408_v49 }
0x1a09   :  { %6083 = vmatprep.subr.bf16.mxu0 %v6497_v2  ;;  %6091 = vmatprep.subr.bf16.mxu1 %v6497_v2 }
0x1a0b   :  { %6072 = vmatmul.mubr.msk.bf16.vlgmr.msra.gmra.mxu0 %vm550_vm7, %v531_v21 }
0x1a0c   :  { %6087 = vmatprep.mubr.msk.bf16.mxu0 %vm6498_vm1, %v6497_v2  ;;  %6084 = vmatpush3.bf16.msra.mxu0 %v6411_v22 }
0x1a0d   :  { %6085 = vmatprep.subr.bf16.mxu0 %v6497_v2 }
0x1a10   :  { %6086 = vmatpush3.bf16.msra.mxu0 %v6412_v24 }
0x1a11   :  { %6099 = vmatprep.subr.bf16.mxu0 %v6497_v2 }
0x1acb   :  { %v2789_v23 = vpop.f32.mrf.mxu0 }
0x1acc   :  { %2796 = vrot.lane.b32.xlu0 %v2789_v23, %s6503_s18 }
0x1acd   :  { %v6073_v25 = vpop.f32.mrf.mxu0 }
0x1acf   :  { %v2792_v27 = vpop.f32.mrf.mxu0 }
0x1ad1   :  { %v6074_v28 = vpop.f32.mrf.mxu0 }
0x1b3e   :  { %v2797_v29 = vpop.permute.xlu0 %2796 }
0x1b3f   :  { %v2799_v30 = vsel %vm875_vm14, 0.0, %v2797_v29 }
0x1b40   :  { %v2805_v35 = vpack.c.bf16 %v2799_v30, %v2799_v30 }
0x1b42   :  { %6080 = vmatmul.mubr.msk.bf16.vlgmr.msra.gmra.mxu1 %vm202_vm5, %v2805_v35 }
0x1b43   :  { %6092 = vmatpush3.bf16.msra.mxu1 %v6409_v18  ;;  %6095 = vmatprep.mubr.msk.bf16.mxu1 %vm6498_vm1, %v6497_v2 }
0x1b44   :  { %6093 = vmatprep.subr.bf16.mxu1 %v6497_v2 }
0x1b47   :  { %6094 = vmatpush3.bf16.msra.mxu1 %v6410_v37  ;;  %v5432_v37 = vld [vmem:[%s7767_s17 + $0x6] ss:$0 sm:$0xff] }
0x1b48   :  { %6313 = vmatprep.subr.msk.bf16.mxu1 %vm557_vm6, %v2748_v17 }
0x1c02   :  { %v2863_v48 = vpop.f32.mrf.mxu1 }
0x1c03   :  { %v2864_v41 = vadd.f32 %v5398_v39, %v2863_v48 }
0x1c04   :  { %v6081_v50 = vpop.f32.mrf.mxu1 }
0x1c05   :  { %v2869_v42 = vmax.f32 %v2864_v41, 0.0  ;;  %v6415_v50 = vld [vmem:[%s7809_s25 + $0xf8] sm:$0xff]  }
0x1c06   :  { %v2866_v43 = vpop.f32.mrf.mxu1 }
0x1c07   :  { %v2870_v46 = vpack.c.bf16 %v2869_v42, %v2869_v42  ;;  %v6416_v42 = vld [vmem:[%s7809_s25 + $0xf0] sm:$0xff]   ;;  %v6417_v43 = vld [vmem:[%s7809_s25 + $0xe8] sm:$0xff]  }
0x1c08   :  { %v6082_v52 = vpop.f32.mrf.mxu1 }
0x1c09   :  { %6088 = vmatmul.mubr.msk.bf16.vlgmr.msra.gmra.mxu0 %vm202_vm5, %v2870_v46 }
0x1c0a   :  { %6100 = vmatpush3.bf16.msra.mxu0 %v6413_v44  ;;  %6103 = vmatprep.mubr.msk.bf16.mxu0 %vm6498_vm1, %v6497_v2 }
0x1c0b   :  { %6101 = vmatprep.subr.bf16.mxu0 %v6497_v2 }
0x1c0e   :  { %6102 = vmatpush3.bf16.msra.mxu0 %v6414_v51 }
0x1c0f   :  { %6314 = vmatprep.subr.msk.bf16.mxu0 %vm557_vm6, %v2748_v17 }
0x1cc9   :  { %v2933_v1 = vpop.f32.mrf.mxu0 }
0x1cca   :  { %v2934_v47 = vadd.f32 %v5407_v4, %v2933_v1 }
0x1ccb   :  { %v6089_v45 = vpop.f32.mrf.mxu0 }
0x1ccc   :  { %v2939_v56 = vmax.f32 %v2934_v47, 0.0 }
0x1ccd   :  { %v2936_v57 = vpop.f32.mrf.mxu0 }
0x1cce   :  { %v2940_v58 = vpack.c.bf16 %v2939_v56, %v2939_v56 }
0x1ccf   :  { %v6090_v59 = vpop.f32.mrf.mxu0 }
0x1cd0   :  { %6096 = vmatmul.mubr.msk.bf16.vlgmr.msra.gmra.mxu1 %vm202_vm5, %v2940_v58 }
0x1cd1   :  { %6108 = vmatpush3.bf16.msra.mxu1 %v7276_v19  ;;  %6109 = vmatprep.mubr.msk.bf16.mxu1 %vm550_vm7, %v6800_v11 }
0x1cd2   :  { %6119 = vmatprep.subr.bf16.mxu1 %v6497_v2 }
0x1cd8   :  { %6110 = vmatmul.mubr.msk.bf16.vlgmr.msra.gmra.mxu1 %vm550_vm7, %v6935_v31 }
0x1cd9   :  { %6121 = vmatprep.mubr.msk.bf16.mxu1 %vm6498_vm1, %v6497_v2 }
0x1d90   :  { %v3003_v61 = vpop.f32.mrf.mxu1 }
0x1d91   :  { %v3004_v62 = vadd.f32 %v5416_v60, %v3003_v61 }
0x1d92   :  { %v6097_v63 = vpop.f32.mrf.mxu1 }
0x1d93   :  { %v3009_v3 = vmax.f32 %v3004_v62, 0.0 }
0x1d94   :  { %v3006_v5 = vpop.f32.mrf.mxu1 }
0x1d95   :  { %v3010_v55 = vpack.c.bf16 %v3009_v3, %v3009_v3 }
0x1d96   :  { %v6098_v54 = vpop.f32.mrf.mxu1 }
0x1d97   :  { %6104 = vmatmul.mubr.msk.bf16.vlgmr.msra.gmra.mxu0 %vm202_vm5, %v3010_v55 }
0x1d98   :  { %6114 = vmatpush3.bf16.msra.mxu0 %v7276_v19  ;;  %v7343_v11 = vpop.f32.mrf.mxu1  ;;  %6115 = vmatprep.mubr.msk.bf16.mxu0 %vm550_vm7, %v6805_v16 }
0x1d9a   :  { %v7347_v31 = vpop.f32.mrf.mxu1 }
0x1d9c   :  { %v6112_v6 = vpop.f32.mrf.mxu1 }
0x1d9f   :  { %6116 = vmatmul.mubr.msk.bf16.vlgmr.msra.gmra.mxu0 %vm550_vm7, %v6939_v32  ;;  %vm1403_vm7 = vcmask 1040384  }
0x1da0   :  { %6127 = vmatprep.mubr.msk.bf16.mxu0 %vm102_vm3, %v6944_v34 }
0x1e57   :  { %v3073_v9 = vpop.f32.mrf.mxu0 }
0x1e58   :  { %v3074_v12 = vadd.f32 %v5425_v7, %v3073_v9 }
0x1e59   :  { %v6105_v13 = vpop.f32.mrf.mxu0 }
0x1e5a   :  { %v3084_v15 = vsel %vm3083_vm9, %v3074_v12, 0.0 }
0x1e5b   :  { %3085 = vadd.xlane.f32.xlu1 %v3084_v15  ;;  %v3076_v16 = vpop.f32.mrf.mxu0 }
0x1e5d   :  { %v6106_v17 = vpop.f32.mrf.mxu0 }
0x1e5f   :  { %v6117_v19 = vpop.f32.mrf.mxu0 }
0x1e60   :  { %3307 = vrot.lane.b32.xlu0 %v6117_v19, %s6503_s18 }
0x1e61   :  { %v3195_v32 = vpop.f32.mrf.mxu0 }
0x1e63   :  { %v6118_v21 = vpop.f32.mrf.mxu0 }
0x1e64   :  { %6354 = vrot.lane.b32.xlu0 %v7103_v38, %s6504_s30  ;;  %v5431_v38 = vld [vmem:[%s7766_s16 + $0x6] ss:$0 sm:$0xff] }
0x1e65   :  { %v3198_v25 = vpop.f32.mrf.mxu0 }
0x1e66   :  { %v6348_v27 = vpack.i.bf16 %v3198_v25, %v3195_v32 }
0x1ed2   :  { %v3308_v58 = vpop.permute.xlu0 %3307 }
0x1ed3   :  { %v3335_v55 = vsel %vm875_vm14, %v7343_v11, %v3308_v58  ;;  %v6423_v58 = vld [vmem:[%s7762_s14 + $0x78] sm:$0xff]  }
0x1ed6   :  { %v6355_v62 = vpop.permute.xlu0 %6354 }
0x1ed7   :  { %v6357_v54 = vunpack.i.h.bf16 %v6355_v62  ;;  %v6356_v6 = vunpack.i.l.bf16 %v6355_v62 }
0x1ee4   :  { %v3086_v34 = vpop.xlane.xlu1 %3085 }
0x1ee5   :  { %v3087_v26 = vmul.f32 0.0625, %v3086_v34 }
0x1ee7   :  { %v3088_v49 = vsub.f32 %v3074_v12, %v3087_v26  ;;  %v6419_v26 = vld [vmem:[%s7758_s10 + $0x78] sm:$0xff]  }
0x1ee9   :  { %v3089_v22 = vmul.f32 %v3088_v49, %v3088_v49 }
0x1eeb   :  { %v3090_v23 = vsel %vm3083_vm9, %v3089_v22, 0.0 }
0x1eec   :  { %3091 = vadd.xlane.f32.xlu1 %v3090_v23  ;;  %v5449_v23 = vld [vmem:[%s7759_s9 + $0x7] ss:$0 sm:$0xff] }
0x1efd   :  { %6349 = vrot.lane.b32.xlu1 %v6348_v27, %s6503_s18 }
0x1f01   :  { %3316 = vrot.lane.b32.xlu1 %v7108_v40, %s6504_s30 }
0x1f75   :  { %v3092_v28 = vpop.xlane.xlu1 %3091 }
0x1f76   :  { %v3093_v29 = vmul.f32 0.0625, %v3092_v28 }
0x1f78   :  { %v3094_v30 = vadd.f32 1e-05, %v3093_v29 }
0x1f79   :  { %v6350_v57 = vpop.permute.xlu1 %6349 }
0x1f7a   :  { %6475 = vrsqrt.f32 %v3094_v30  ;;  %v6352_v59 = vunpack.i.h.bf16 %v6350_v57  ;;  %v6351_v60 = vunpack.i.l.bf16 %v6350_v57 }
0x1f7c   :  { %v3333_v3 = vsel %vm875_vm14, %v7347_v31, %v6351_v60 }
0x1f7d   :  { %v3317_v61 = vpop.permute.xlu1 %3316  ;;  %v3336_v16 = vsel %vm202_vm5, %v3333_v3, %v6356_v6 }
0x1f7e   :  { %v3338_v9 = vsel %vm202_vm5, %v3335_v55, %v3317_v61  ;;  %v5471_v61 = vld [vmem:[%s7763_s13 + $0x7] ss:$0 sm:$0xff] }
0x1f87   :  { %v6476_v18 = vpop.eup %6475 }
0x1f88   :  { %v3096_v35 = vmul.f32 %v6476_v18, %v3088_v49  ;;  %v6420_v49 = vld [vmem:[%s7758_s10 + $0x70] sm:$0xff]  }
0x1f8a   :  { %v3103_v24 = vmul.f32 %v5431_v38, %v3096_v35 }
0x1f8c   :  { %v3110_v39 = vadd.f32 %v5432_v37, %v3103_v24 }
0x1f8e   :  { %v3112_v48 = vpack.c.bf16 %v3110_v39, %v3110_v39 }
0x1f90   :  { %6315 = vmatprep.subr.msk.bf16.mxu0 %vm1403_vm7, %v3112_v48  ;;  %v3210_v41 = vsel %vm1403_vm7, %v3112_v48, 0  ;;  %v6421_v48 = vld [vmem:[%s7760_s12 + $0x78] sm:$0xff]  }
0x1f91   :  { %6120 = vmatpush3.bf16.msra.mxu1 %v3210_v41  ;;  %6126 = vmatpush3.bf16.msra.mxu0 %v3210_v41  ;;  %v6422_v41 = vld [vmem:[%s7760_s12 + $0x70] sm:$0xff]  }
0x1f92   :  { %6131 = vmatprep.subr.bf16.mxu1 %v6415_v50  ;;  %6143 = vmatprep.subr.bf16.mxu0 %v6419_v26 }
0x1f94   :  { %6122 = vmatmul.mubr.msk.bf16.vlgmr.msra.gmra.mxu1 %vm102_vm3, %v6989_v33  ;;  %6128 = vmatmul.mubr.msk.bf16.vlgmr.msra.gmra.mxu0 %vm102_vm3, %v6958_v20  ;;  %v6418_v20 = vld [vmem:[%s7809_s25 + $0xe0] sm:$0xff]   ;;  %v7386_v33 = vpop.f32.mrf.mxu1 }
0x1f95   :  { %6132 = vmatpush3.bf16.msra.mxu1 %v6415_v50  ;;  %v3334_v63 = vsel %vm875_vm14, %v7386_v33, %v6352_v59  ;;  %6144 = vmatpush3.bf16.msra.mxu0 %v6419_v26  ;;  %v6424_v59 = vld [vmem:[%s7762_s14 + $0x70] sm:$0xff]  }
0x1f96   :  { %6133 = vmatprep.subr.bf16.mxu1 %v6416_v42  ;;  %v3337_v17 = vsel %vm202_vm5, %v3334_v63, %v6357_v54  ;;  %6145 = vmatprep.subr.bf16.mxu0 %v6420_v49 }
0x1f99   :  { %6134 = vmatpush3.bf16.msra.mxu1 %v6416_v42  ;;  %6146 = vmatpush3.bf16.msra.mxu0 %v6420_v49  ;;  %v5461_v42 = vld [vmem:[%s7761_s11 + $0x7] ss:$0 sm:$0xff] }
0x1f9a   :  { %6135 = vmatprep.subr.bf16.mxu1 %v6417_v43  ;;  %6151 = vmatprep.subr.bf16.mxu0 %v6421_v48 }
0x1f9d   :  { %6136 = vmatpush3.bf16.msra.mxu1 %v6417_v43 }
0x1f9e   :  { %6137 = vmatprep.subr.bf16.mxu1 %v6418_v20 }
0x1fa1   :  { %6138 = vmatpush3.bf16.msra.mxu1 %v6418_v20 }
0x1fa2   :  { %6159 = vmatprep.subr.bf16.mxu1 %v6423_v58 }
0x2054   :  { %v7388_v44 = vpop.f32.mrf.mxu1  ;;  %v6129_v46 = vpop.f32.mrf.mxu0 }
0x2055   :  { %3328 = vrot.lane.b32.xlu1 %v6129_v46, %s6505_s2 }
0x2056   :  { %v6123_v52 = vpop.f32.mrf.mxu1  ;;  %v3286_v51 = vpop.f32.mrf.mxu0 }
0x2058   :  { %v3249_v4 = vpop.f32.mrf.mxu1  ;;  %v6130_v1 = vpop.f32.mrf.mxu0 }
0x205a   :  { %v6124_v47 = vpop.f32.mrf.mxu1  ;;  %v3289_v45 = vpop.f32.mrf.mxu0 }
0x205b   :  { %v6358_v56 = vpack.i.bf16 %v3289_v45, %v3286_v51 }
0x205d   :  { %6359 = vrot.lane.b32.xlu0 %v6358_v56, %s6505_s2 }
0x20c7   :  { %v3329_v5 = vpop.permute.xlu1 %3328 }
0x20c8   :  { %v3341_v15 = vsel %vm1543_vm11, %v3338_v9, %v3329_v5 }
0x20c9   :  { %v3352_v34 = vpack.c.bf16 %v3341_v15, %v3341_v15 }
0x20cf   :  { %v6360_v7 = vpop.permute.xlu0 %6359 }
0x20d0   :  { %v6362_v12 = vunpack.i.h.bf16 %v6360_v7  ;;  %v6361_v13 = vunpack.i.l.bf16 %v6360_v7 }
0x20d2   :  { %v3340_v19 = vsel %vm1543_vm11, %v3337_v17, %v6362_v12  ;;  %v3339_v32 = vsel %vm1543_vm11, %v3336_v16, %v6361_v13  ;;  %v5481_v16 = vld [vmem:[%s7764_s15 + $0x7] ss:$0 sm:$0xff] }
0x20d3   :  { %v3351_v21 = vpack.c.bf16 %v3340_v19, %v3339_v32 }
0x20d5   :  { %6139 = vmatprep.mubr.msk.bf16.mxu1 %vm1590_vm12, %v3351_v21 }
0x20d6   :  { %6140 = vmatmul.mubr.msk.bf16.vlgmr.msra.gmra.mxu1 %vm1590_vm12, %v3352_v34 }
0x20d7   :  { %6160 = vmatpush3.bf16.msra.mxu1 %v6423_v58  ;;  %v5488_v58 = vld [vmem:[%s7766_s16 + $0x7] ss:$0 sm:$0xff] }
0x20d8   :  { %6161 = vmatprep.subr.bf16.mxu1 %v6424_v59 }
0x20db   :  { %6162 = vmatpush3.bf16.msra.mxu1 %v6424_v59 }
0x2196   :  { %v6141_v22 = vpop.f32.mrf.mxu1 }
0x2197   :  { %v3434_v27 = vadd.f32 %v6141_v22, %v5449_v23 }
0x2198   :  { %v3425_v25 = vpop.f32.mrf.mxu1 }
0x2199   :  { %v3426_v29 = vadd.f32 %v5449_v23, %v3425_v25  ;;  %v3441_v38 = vmax.f32 %v3434_v27, 0.0 }
0x219a   :  { %v6142_v28 = vpop.f32.mrf.mxu1 }
0x219b   :  { %v3439_v35 = vmax.f32 %v3426_v29, 0.0  ;;  %v3443_v39 = vpack.c.bf16 %v3441_v38, %v3441_v38 }
0x219c   :  { %v3428_v30 = vpop.f32.mrf.mxu1 }
0x219d   :  { %v3429_v18 = vadd.f32 %v5449_v23, %v3428_v30 }
0x219f   :  { %v3440_v37 = vmax.f32 %v3429_v18, 0.0 }
0x21a1   :  { %v3442_v24 = vpack.c.bf16 %v3440_v37, %v3439_v35 }
0x21a3   :  { %6147 = vmatprep.mubr.msk.bf16.mxu0 %vm202_vm5, %v3442_v24 }
0x21a4   :  { %6148 = vmatmul.mubr.msk.bf16.vlgmr.msra.gmra.mxu0 %vm202_vm5, %v3443_v39 }
0x21a5   :  { %6152 = vmatpush3.bf16.msra.mxu0 %v6421_v48 }
0x21a6   :  { %6153 = vmatprep.subr.bf16.mxu0 %v6422_v41 }
0x21a9   :  { %6154 = vmatpush3.bf16.msra.mxu0 %v6422_v41 }
0x2264   :  { %v6149_v50 = vpop.f32.mrf.mxu0 }
0x2265   :  { %v3518_v20 = vadd.f32 %v6149_v50, %v5461_v42 }
0x2266   :  { %v3509_v43 = vpop.f32.mrf.mxu0 }
0x2267   :  { %v3510_v52 = vadd.f32 %v5461_v42, %v3509_v43  ;;  %v3525_v1 = vmax.f32 %v3518_v20, 0.0 }
0x2268   :  { %v6150_v46 = vpop.f32.mrf.mxu0 }
0x2269   :  { %v3523_v47 = vmax.f32 %v3510_v52, 0.0  ;;  %v3527_v57 = vpack.c.bf16 %v3525_v1, %v3525_v1 }
0x226a   :  { %v3512_v51 = vpop.f32.mrf.mxu0 }
0x226b   :  { %v3513_v4 = vadd.f32 %v5461_v42, %v3512_v51 }
0x226d   :  { %v3524_v45 = vmax.f32 %v3513_v4, 0.0 }
0x226f   :  { %v3526_v56 = vpack.c.bf16 %v3524_v45, %v3523_v47 }
0x2271   :  { %6155 = vmatprep.mubr.msk.bf16.mxu0 %vm202_vm5, %v3526_v56  ;;  %v6425_v56 = vld [vmem:[%s7809_s25 + $0x108] sm:$0xff]  }
0x2272   :  { %6156 = vmatmul.mubr.msk.bf16.vlgmr.msra.gmra.mxu0 %vm202_vm5, %v3527_v57  ;;  %6167 = vmatprep.subr.bf16.mxu0 %v6425_v56 }
0x2273   :  { %6168 = vmatpush3.bf16.msra.mxu0 %v6425_v56 }
0x2332   :  { %v6157_v60 = vpop.f32.mrf.mxu0 }
0x2333   :  { %v3602_v63 = vadd.f32 %v6157_v60, %v5471_v61 }
0x2334   :  { %v3593_v62 = vpop.f32.mrf.mxu0 }
0x2335   :  { %v3594_v5 = vadd.f32 %v5471_v61, %v3593_v62  ;;  %v3609_v6 = vmax.f32 %v3602_v63, 0.0  ;;  %v5489_v63 = vld [vmem:[%s7767_s17 + $0x7] ss:$0 sm:$0xff] }
0x2336   :  { %v6158_v3 = vpop.f32.mrf.mxu0 }
0x2337   :  { %v3607_v7 = vmax.f32 %v3594_v5, 0.0  ;;  %v3611_v13 = vpack.c.bf16 %v3609_v6, %v3609_v6 }
0x2338   :  { %v3596_v55 = vpop.f32.mrf.mxu0 }
0x2339   :  { %v3597_v54 = vadd.f32 %v5471_v61, %v3596_v55  ;;  %v6426_v61 = vld [vmem:[%s7809_s25 + $0x100] sm:$0xff]  }
0x233a   :  { %6169 = vmatprep.subr.bf16.mxu0 %v6426_v61 }
0x233b   :  { %v3608_v9 = vmax.f32 %v3597_v54, 0.0  ;;  %6170 = vmatpush3.bf16.msra.mxu0 %v6426_v61 }
0x233d   :  { %v3610_v12 = vpack.c.bf16 %v3608_v9, %v3607_v7 }
0x233f   :  { %6163 = vmatprep.mubr.msk.bf16.mxu1 %vm202_vm5, %v3610_v12 }
0x2340   :  { %6164 = vmatmul.mubr.msk.bf16.vlgmr.msra.gmra.mxu1 %vm202_vm5, %v3611_v13 }
0x2400   :  { %v6165_v15 = vpop.f32.mrf.mxu1 }
0x2401   :  { %v3686_v21 = vadd.f32 %v6165_v15, %v5481_v16 }
0x2402   :  { %v3677_v17 = vpop.f32.mrf.mxu1 }
0x2403   :  { %v3678_v19 = vadd.f32 %v5481_v16, %v3677_v17  ;;  %v3701_v23 = vsel %vm875_vm14, %v3686_v21, 0.0 }
0x2404   :  { %v6166_v32 = vpop.f32.mrf.mxu1 }
0x2405   :  { %v3695_v34 = vsel %vm875_vm14, %v3678_v19, 0.0 }
0x2406   :  { %v3680_v26 = vpop.f32.mrf.mxu1  ;;  %3696 = vadd.xlane.f32.xlu0 %v3695_v34 }
0x2407   :  { %v3681_v49 = vadd.f32 %v5481_v16, %v3680_v26 }
0x2409   :  { %v3698_v22 = vsel %vm875_vm14, %v3681_v49, 0.0 }
0x240a   :  { %3699 = vadd.xlane.f32.xlu1 %v3698_v22  ;;  %3702 = vadd.xlane.f32.xlu0 %v3701_v23  ;;  %v6427_v22 = vld [vmem:[%s7758_s10 + $0x88] sm:$0xff]  }
0x240b   :  { %6175 = vmatprep.subr.bf16.mxu1 %v6427_v22 }
0x240c   :  { %6176 = vmatpush3.bf16.msra.mxu1 %v6427_v22 }
0x248f   :  { %v3697_v25 = vpop.xlane.xlu0 %3696 }
0x2490   :  { %v3704_v27 = vmul.f32 0.0625, %v3697_v25 }
0x2492   :  { %v3707_v28 = vsub.f32 %v3678_v19, %v3704_v27 }
0x2493   :  { %v3700_v29 = vpop.xlane.xlu1 %3699  ;;  %v3703_v30 = vpop.xlane.xlu0 %3702 }
0x2494   :  { %v3705_v18 = vmul.f32 0.0625, %v3700_v29  ;;  %v3706_v38 = vmul.f32 0.0625, %v3703_v30  ;;  %v3710_v35 = vmul.f32 %v3707_v28, %v3707_v28 }
0x2496   :  { %v3708_v37 = vsub.f32 %v3681_v49, %v3705_v18  ;;  %v3709_v24 = vsub.f32 %v3686_v21, %v3706_v38  ;;  %v3713_v39 = vsel %vm875_vm14, %v3710_v35, 0.0 }
0x2497   :  { %3714 = vadd.xlane.f32.xlu0 %v3713_v39  ;;  %v6429_v39 = vld [vmem:[%s7760_s12 + $0x88] sm:$0xff]  }
0x2498   :  { %v3711_v48 = vmul.f32 %v3708_v37, %v3708_v37  ;;  %v3712_v41 = vmul.f32 %v3709_v24, %v3709_v24  ;;  %6183 = vmatprep.subr.bf16.mxu0 %v6429_v39 }
0x249a   :  { %v3716_v50 = vsel %vm875_vm14, %v3711_v48, 0.0  ;;  %v3719_v42 = vsel %vm875_vm14, %v3712_v41, 0.0  ;;  %v6430_v48 = vld [vmem:[%s7760_s12 + $0x80] sm:$0xff]  }
0x249b   :  { %3717 = vadd.xlane.f32.xlu1 %v3716_v50  ;;  %3720 = vadd.xlane.f32.xlu0 %v3719_v42  ;;  %v5505_v50 = vld [vmem:[%s7761_s11 + $0x8] ss:$0 sm:$0xff] }
0x2520   :  { %v3715_v43 = vpop.xlane.xlu0 %3714 }
0x2521   :  { %v3722_v20 = vmul.f32 0.0625, %v3715_v43 }
0x2523   :  { %v3725_v46 = vadd.f32 1e-05, %v3722_v20 }
0x2524   :  { %v3718_v52 = vpop.xlane.xlu1 %3717  ;;  %v3721_v51 = vpop.xlane.xlu0 %3720 }
0x2525   :  { %6477 = vrsqrt.f32 %v3725_v46  ;;  %v3723_v4 = vmul.f32 0.0625, %v3718_v52  ;;  %v3724_v1 = vmul.f32 0.0625, %v3721_v51 }
0x2527   :  { %v3726_v47 = vadd.f32 1e-05, %v3723_v4  ;;  %v3727_v45 = vadd.f32 1e-05, %v3724_v1 }
0x2529   :  { %6479 = vrsqrt.f32 %v3726_v47 }
0x252a   :  { %6481 = vrsqrt.f32 %v3727_v45 }
0x2532   :  { %v6478_v57 = vpop.eup %6477 }
0x2533   :  { %v3731_v59 = vmul.f32 %v6478_v57, %v3707_v28  ;;  %v6431_v57 = vld [vmem:[%s7762_s14 + $0x88] sm:$0xff]  }
0x2535   :  { %v3740_v60 = vmul.f32 %v5488_v58, %v3731_v59 }
0x2536   :  { %v6480_v62 = vpop.eup %6479 }
0x2537   :  { %v6482_v3 = vpop.eup %6481  ;;  %v3732_v5 = vmul.f32 %v6480_v62, %v3708_v37  ;;  %v3749_v6 = vadd.f32 %v5489_v63, %v3740_v60  ;;  %v5515_v60 = vld [vmem:[%s7763_s13 + $0x8] ss:$0 sm:$0xff] }
0x2538   :  { %v3733_v55 = vmul.f32 %v6482_v3, %v3709_v24 }
0x2539   :  { %v3741_v54 = vmul.f32 %v5488_v58, %v3732_v5  ;;  %v3752_v13 = vadd.f32 %v3749_v6, %v7096_v36 }
0x253a   :  { %v3742_v7 = vmul.f32 %v5488_v58, %v3733_v55  ;;  %v6432_v58 = vld [vmem:[%s7762_s14 + $0x80] sm:$0xff]  }
0x253b   :  { %v3750_v9 = vadd.f32 %v5489_v63, %v3741_v54 }
0x253c   :  { %v3751_v12 = vadd.f32 %v5489_v63, %v3742_v7 }
0x253d   :  { %v3753_v15 = vadd.f32 %v3750_v9, %v7099_v0 }
0x253e   :  { %v3754_v16 = vadd.f32 %v3751_v12, %v7108_v40 }
0x253f   :  { %v6363_v17 = vpack.i.bf16 %v3753_v15, %v3752_v13  ;;  %v5525_v13 = vld [vmem:[%s7764_s15 + $0x8] ss:$0 sm:$0xff] }
0x2540   :  { %3762 = vrot.lane.b32.xlu0 %v3754_v16, %s6503_s18 }
0x2541   :  { %6364 = vrot.lane.b32.xlu1 %v6363_v17, %s6503_s18 }
0x25b2   :  { %v3763_v19 = vpop.permute.xlu0 %3762 }
0x25b3   :  { %v6365_v32 = vpop.permute.xlu1 %6364  ;;  %v3769_v26 = vsel %vm875_vm14, %v7343_v11, %v3763_v19  ;;  %v6428_v11 = vld [vmem:[%s7758_s10 + $0x80] sm:$0xff]  }
0x25b4   :  { %v6367_v21 = vunpack.i.h.bf16 %v6365_v32  ;;  %v6366_v34 = vunpack.i.l.bf16 %v6365_v32  ;;  %v3776_v40 = vpack.c.bf16 %v3769_v26, %v3769_v26  ;;  %6177 = vmatprep.subr.bf16.mxu1 %v6428_v11 }
0x25b5   :  { %6178 = vmatpush3.bf16.msra.mxu1 %v6428_v11 }
0x25b6   :  { %v3768_v49 = vsel %vm875_vm14, %v7386_v33, %v6367_v21  ;;  %v3767_v36 = vsel %vm875_vm14, %v7347_v31, %v6366_v34  ;;  %v5495_v31 = vld [vmem:[%s7759_s9 + $0x8] ss:$0 sm:$0xff]  ;;  %6191 = vmatprep.subr.bf16.mxu1 %v6431_v57 }
0x25b7   :  { %v3775_v0 = vpack.c.bf16 %v3768_v49, %v3767_v36 }
0x25b9   :  { %6171 = vmatprep.mubr.msk.bf16.mxu0 %vm202_vm5, %v3775_v0 }
0x25ba   :  { %6172 = vmatmul.mubr.msk.bf16.vlgmr.msra.gmra.mxu0 %vm202_vm5, %v3776_v40 }
0x25bb   :  { %6184 = vmatpush3.bf16.msra.mxu0 %v6429_v39 }
0x25bc   :  { %6185 = vmatprep.subr.bf16.mxu0 %v6430_v48 }
0x25bf   :  { %6186 = vmatpush3.bf16.msra.mxu0 %v6430_v48 }
0x25c0   :  { %6199 = vmatprep.subr.bf16.mxu0 %v6497_v2 }
0x267a   :  { %v6173_v33 = vpop.f32.mrf.mxu0 }
0x267b   :  { %v3846_v25 = vadd.f32 %v6173_v33, %v5495_v31 }
0x267c   :  { %v3837_v23 = vpop.f32.mrf.mxu0 }
0x267d   :  { %v3838_v28 = vadd.f32 %v5495_v31, %v3837_v23  ;;  %v3853_v18 = vmax.f32 %v3846_v25, 0.0 }
0x267e   :  { %v6174_v27 = vpop.f32.mrf.mxu0 }
0x267f   :  { %v3851_v38 = vmax.f32 %v3838_v28, 0.0  ;;  %v3855_v24 = vpack.c.bf16 %v3853_v18, %v3853_v18 }
0x2680   :  { %v3840_v29 = vpop.f32.mrf.mxu0 }
0x2681   :  { %v3841_v30 = vadd.f32 %v5495_v31, %v3840_v29 }
0x2683   :  { %v3852_v35 = vmax.f32 %v3841_v30, 0.0 }
0x2685   :  { %v3854_v37 = vpack.c.bf16 %v3852_v35, %v3851_v38 }
0x2687   :  { %6179 = vmatprep.mubr.msk.bf16.mxu1 %vm202_vm5, %v3854_v37 }
0x2688   :  { %6180 = vmatmul.mubr.msk.bf16.vlgmr.msra.gmra.mxu1 %vm202_vm5, %v3855_v24 }
0x2689   :  { %6192 = vmatpush3.bf16.msra.mxu1 %v6431_v57 }
0x268a   :  { %6193 = vmatprep.subr.bf16.mxu1 %v6432_v58 }
0x268d   :  { %6194 = vmatpush3.bf16.msra.mxu1 %v6432_v58 }
0x268e   :  { %6207 = vmatprep.subr.bf16.mxu1 %v6497_v2 }
0x2748   :  { %v6181_v41 = vpop.f32.mrf.mxu1 }
0x2749   :  { %v3930_v43 = vadd.f32 %v6181_v41, %v5505_v50 }
0x274a   :  { %v3921_v42 = vpop.f32.mrf.mxu1 }
0x274b   :  { %v3922_v46 = vadd.f32 %v5505_v50, %v3921_v42  ;;  %v3937_v4 = vmax.f32 %v3930_v43, 0.0 }
0x274c   :  { %v6182_v20 = vpop.f32.mrf.mxu1 }
0x274d   :  { %v3935_v1 = vmax.f32 %v3922_v46, 0.0  ;;  %v3939_v56 = vpack.c.bf16 %v3937_v4, %v3937_v4 }
0x274e   :  { %v3924_v52 = vpop.f32.mrf.mxu1 }
0x274f   :  { %v3925_v51 = vadd.f32 %v5505_v50, %v3924_v52  ;;  %v5532_v52 = vld [vmem:[%s7766_s16 + $0x8] ss:$0 sm:$0xff] }
0x2751   :  { %v3936_v47 = vmax.f32 %v3925_v51, 0.0 }
0x2753   :  { %v3938_v45 = vpack.c.bf16 %v3936_v47, %v3935_v1 }
0x2755   :  { %6187 = vmatprep.mubr.msk.bf16.mxu0 %vm202_vm5, %v3938_v45 }
0x2756   :  { %6188 = vmatmul.mubr.msk.bf16.vlgmr.msra.gmra.mxu0 %vm202_vm5, %v3939_v56 }
0x2757   :  { %6203 = vmatprep.mubr.msk.bf16.mxu0 %vm6498_vm1, %v6497_v2 }
0x2816   :  { %v6189_v59 = vpop.f32.mrf.mxu0 }
0x2817   :  { %v4014_v62 = vadd.f32 %v6189_v59, %v5515_v60 }
0x2818   :  { %v4005_v61 = vpop.f32.mrf.mxu0 }
0x2819   :  { %v4006_v3 = vadd.f32 %v5515_v60, %v4005_v61  ;;  %v4021_v54 = vmax.f32 %v4014_v62, 0.0 }
0x281a   :  { %v6190_v63 = vpop.f32.mrf.mxu0 }
0x281b   :  { %v4019_v6 = vmax.f32 %v4006_v3, 0.0  ;;  %v4023_v12 = vpack.c.bf16 %v4021_v54, %v4021_v54 }
0x281c   :  { %v4008_v5 = vpop.f32.mrf.mxu0 }
0x281d   :  { %v4009_v55 = vadd.f32 %v5515_v60, %v4008_v5  ;;  %v6433_v5 = vld [vmem:[%s7809_s25 + $0x130] sm:$0xff]  }
0x281f   :  { %v4020_v7 = vmax.f32 %v4009_v55, 0.0  ;;  %v6434_v55 = vld [vmem:[%s7809_s25 + $0x128] sm:$0xff]  }
0x2821   :  { %v4022_v9 = vpack.c.bf16 %v4020_v7, %v4019_v6 }
0x2823   :  { %6195 = vmatprep.mubr.msk.bf16.mxu1 %vm202_vm5, %v4022_v9 }
0x2824   :  { %6196 = vmatmul.mubr.msk.bf16.vlgmr.msra.gmra.mxu1 %vm202_vm5, %v4023_v12 }
0x2825   :  { %6213 = vmatprep.mubr.msk.bf16.mxu1 %vm6498_vm1, %v6497_v2  ;;  %6208 = vmatpush3.bf16.msra.mxu1 %v6433_v5 }
0x2826   :  { %6209 = vmatprep.subr.bf16.mxu1 %v6497_v2 }
0x2829   :  { %6210 = vmatpush3.bf16.msra.mxu1 %v6434_v55  ;;  %v5577_v55 = vld [vmem:[%s7767_s17 + $0x9] ss:$0 sm:$0xff] }
0x282a   :  { %6211 = vmatprep.subr.bf16.mxu1 %v6497_v2 }
0x28e4   :  { %v6197_v15 = vpop.f32.mrf.mxu1 }
0x28e5   :  { %v4098_v16 = vadd.f32 %v6197_v15, %v5525_v13 }
0x28e6   :  { %v4089_v17 = vpop.f32.mrf.mxu1 }
0x28e7   :  { %v4090_v19 = vadd.f32 %v5525_v13, %v4089_v17  ;;  %v4113_v32 = vsel %vm875_vm14, %v4098_v16, 0.0 }
0x28e8   :  { %4114 = vadd.xlane.f32.xlu1 %v4113_v32  ;;  %v6198_v21 = vpop.f32.mrf.mxu1  ;;  %v6437_v32 = vld [vmem:[%s7758_s10 + $0x90] sm:$0xff]  }
0x28e9   :  { %v4107_v34 = vsel %vm875_vm14, %v4090_v19, 0.0  ;;  %v5542_v21 = vld [vmem:[%s7759_s9 + $0x9] ss:$0 sm:$0xff] }
0x28ea   :  { %v4092_v26 = vpop.f32.mrf.mxu1  ;;  %4108 = vadd.xlane.f32.xlu0 %v4107_v34 }
0x28eb   :  { %v4093_v49 = vadd.f32 %v5525_v13, %v4092_v26 }
0x28ed   :  { %v4110_v36 = vsel %vm875_vm14, %v4093_v49, 0.0 }
0x28ee   :  { %4111 = vadd.xlane.f32.xlu1 %v4110_v36 }
0x2971   :  { %v4115_v0 = vpop.xlane.xlu1 %4114 }
0x2972   :  { %v4118_v40 = vmul.f32 0.0625, %v4115_v0 }
0x2973   :  { %v4109_v22 = vpop.xlane.xlu0 %4108 }
0x2974   :  { %v4121_v11 = vsub.f32 %v4098_v16, %v4118_v40  ;;  %v4116_v33 = vmul.f32 0.0625, %v4109_v22 }
0x2976   :  { %v4119_v31 = vsub.f32 %v4090_v19, %v4116_v33  ;;  %v4124_v23 = vmul.f32 %v4121_v11, %v4121_v11  ;;  %v6436_v19 = vld [vmem:[%s7758_s10 + $0x98] sm:$0xff]   ;;  %v6439_v33 = vld [vmem:[%s7760_s12 + $0x90] sm:$0xff]  }
0x2977   :  { %v4112_v25 = vpop.xlane.xlu1 %4111 }
0x2978   :  { %v4117_v27 = vmul.f32 0.0625, %v4112_v25  ;;  %v4131_v28 = vsel %vm875_vm14, %v4124_v23, 0.0  ;;  %v4122_v29 = vmul.f32 %v4119_v31, %v4119_v31 }
0x2979   :  { %4132 = vadd.xlane.f32.xlu0 %v4131_v28 }
0x297a   :  { %v4120_v30 = vsub.f32 %v4093_v49, %v4117_v27  ;;  %v4125_v18 = vsel %vm875_vm14, %v4122_v29, 0.0 }
0x297b   :  { %4126 = vadd.xlane.f32.xlu1 %v4125_v18 }
0x297c   :  { %v4123_v38 = vmul.f32 %v4120_v30, %v4120_v30 }
0x297e   :  { %v4128_v35 = vsel %vm875_vm14, %v4123_v38, 0.0  ;;  %v6440_v38 = vld [vmem:[%s7762_s14 + $0x98] sm:$0xff]  }
0x297f   :  { %4129 = vadd.xlane.f32.xlu0 %v4128_v35  ;;  %v6441_v35 = vld [vmem:[%s7762_s14 + $0x90] sm:$0xff]  }
0x2995   :  { %4214 = vrot.lane.b32.xlu0 %v7388_v44, %s6504_s30  ;;  %v5533_v44 = vld [vmem:[%s7767_s17 + $0x8] ss:$0 sm:$0xff]  ;;  %s7815_s17 = sld [smem:[#allocation15_spill]] }
0x2a02   :  { %v4133_v37 = vpop.xlane.xlu0 %4132 }
0x2a03   :  { %v4136_v24 = vmul.f32 0.0625, %v4133_v37  ;;  %v5561_v37 = vld [vmem:[%s7763_s13 + $0x9] ss:$0 sm:$0xff] }
0x2a04   :  { %v4127_v39 = vpop.xlane.xlu1 %4126 }
0x2a05   :  { %v4139_v48 = vadd.f32 1e-05, %v4136_v24  ;;  %v4134_v41 = vmul.f32 0.0625, %v4127_v39 }
0x2a07   :  { %6483 = vrsqrt.f32 %v4139_v48  ;;  %v4137_v50 = vadd.f32 1e-05, %v4134_v41 }
0x2a08   :  { %v4130_v42 = vpop.xlane.xlu0 %4129 }
0x2a09   :  { %6485 = vrsqrt.f32 %v4137_v50  ;;  %v4135_v43 = vmul.f32 0.0625, %v4130_v42 }
0x2a0b   :  { %v4138_v20 = vadd.f32 1e-05, %v4135_v43 }
0x2a0c   :  { %v4215_v13 = vpop.permute.xlu0 %4214 }
0x2a0d   :  { %6487 = vrsqrt.f32 %v4138_v20  ;;  %v5570_v20 = vld [vmem:[%s7764_s15 + $0x9] ss:$0 sm:$0xff] }
0x2a14   :  { %v6484_v46 = vpop.eup %6483 }
0x2a15   :  { %v4145_v51 = vmul.f32 %v6484_v46, %v4121_v11  ;;  %v6438_v11 = vld [vmem:[%s7760_s12 + $0x98] sm:$0xff]  }
0x2a16   :  { %v6486_v4 = vpop.eup %6485 }
0x2a17   :  { %v4154_v1 = vmul.f32 %v5532_v52, %v4145_v51  ;;  %v4143_v47 = vmul.f32 %v6486_v4, %v4119_v31  ;;  %v5552_v31 = vld [vmem:[%s7761_s11 + $0x9] ss:$0 sm:$0xff] }
0x2a19   :  { %v4163_v45 = vadd.f32 %v5533_v44, %v4154_v1  ;;  %v4152_v59 = vmul.f32 %v5532_v52, %v4143_v47 }
0x2a1a   :  { %v6488_v56 = vpop.eup %6487 }
0x2a1b   :  { %v4165_v57 = vpack.c.bf16 %v4163_v45, %v4163_v45  ;;  %v4144_v58 = vmul.f32 %v6488_v56, %v4120_v30  ;;  %v4161_v62 = vadd.f32 %v5533_v44, %v4152_v59  ;;  %v6442_v59 = vld [vmem:[%s7809_s25 + $0x40] sm:$0xff]  }
0x2a1d   :  { %v4167_v60 = vsel %vm557_vm6, %v4165_v57, 0  ;;  %v4153_v61 = vmul.f32 %v5532_v52, %v4144_v58 }
0x2a1e   :  { %6200 = vmatpush3.bf16.msra.mxu0 %v4167_v60 }
0x2a1f   :  { %6201 = vmatprep.subr.bf16.mxu0 %v6497_v2  ;;  %v4162_v63 = vadd.f32 %v5533_v44, %v4153_v61 }
0x2a21   :  { %v4164_v3 = vpack.c.bf16 %v4162_v63, %v4161_v62 }
0x2a23   :  { %6202 = vmatpush3.bf16.msra.mxu0 %v4164_v3  ;;  %v5576_v3 = vld [vmem:[%s7766_s16 + $0x9] ss:$0 sm:$0xff] }
0x2a24   :  { %6217 = vmatprep.subr.bf16.mxu0 %v6497_v2 }
0x2a26   :  { %6204 = vmatmul.mubr.msk.bf16.vlgmr.msra.gmra.mxu0 %vm2372_vm15, %v7186_v53  ;;  %v6435_v53 = vld [vmem:[%s7809_s25 + $0x120] sm:$0xff]   ;;  %s7813_s25 = sld [smem:[#allocation9_spill]] }
0x2a27   :  { %6221 = vmatprep.mubr.msk.bf16.mxu0 %vm6498_vm1, %v6497_v2  ;;  %6212 = vmatpush3.bf16.msra.mxu1 %v6435_v53 }
0x2a28   :  { %6225 = vmatprep.subr.bf16.mxu1 %v6497_v2  ;;  %6218 = vmatpush3.bf16.msra.mxu0 %v6436_v19 }
0x2a29   :  { %6219 = vmatprep.subr.bf16.mxu0 %v6497_v2 }
0x2a2c   :  { %6220 = vmatpush3.bf16.msra.mxu0 %v6437_v32 }
0x2a2d   :  { %6233 = vmatprep.subr.bf16.mxu0 %v6497_v2 }
0x2ae6   :  { %v4203_v54 = vpop.f32.mrf.mxu0 }
0x2ae7   :  { %4210 = vrot.lane.b32.xlu1 %v4203_v54, %s6503_s18 }
0x2ae8   :  { %v6205_v6 = vpop.f32.mrf.mxu0 }
0x2aea   :  { %v4206_v7 = vpop.f32.mrf.mxu0 }
0x2aec   :  { %v6206_v9 = vpop.f32.mrf.mxu0 }
0x2aed   :  { %v6443_v9 = vld [vmem:[%s7758_s10 + $0x28] sm:$0xff]  }
0x2b59   :  { %v4211_v12 = vpop.permute.xlu1 %4210 }
0x2b5a   :  { %v4217_v15 = vsel %vm875_vm14, %v7270_v14, %v4211_v12  ;;  %v6444_v12 = vld [vmem:[%s7758_s10 + $0x20] sm:$0xff]  }
0x2b5b   :  { %v4218_v16 = vsel %vm202_vm5, %v4217_v15, %v4215_v13 }
0x2b5c   :  { %v4226_v17 = vpack.c.bf16 %v4218_v16, %v4218_v16 }
0x2b5e   :  { %6214 = vmatmul.mubr.msk.bf16.vlgmr.msra.gmra.mxu1 %vm1543_vm11, %v4226_v17 }
0x2b5f   :  { %6229 = vmatprep.mubr.msk.bf16.mxu1 %vm6498_vm1, %v6497_v2  ;;  %6226 = vmatpush3.bf16.msra.mxu1 %v6438_v11 }
0x2b60   :  { %6227 = vmatprep.subr.bf16.mxu1 %v6497_v2 }
0x2b63   :  { %6228 = vmatpush3.bf16.msra.mxu1 %v6439_v33  ;;  %v4825_v33 = vld [vmem:[%s7799_s22] sm:$0x7] }
0x2b64   :  { %6241 = vmatprep.subr.bf16.mxu1 %v6497_v2 }
0x2c1e   :  { %v4290_v34 = vpop.f32.mrf.mxu1 }
0x2c1f   :  { %v4291_v26 = vadd.f32 %v5542_v21, %v4290_v34  ;;  %v6445_v34 = vld [vmem:[%s7760_s12 + $0x28] sm:$0xff]  }
0x2c20   :  { %v6215_v49 = vpop.f32.mrf.mxu1 }
0x2c21   :  { %v4296_v36 = vmax.f32 %v4291_v26, 0.0  ;;  %v6446_v26 = vld [vmem:[%s7760_s12 + $0x20] sm:$0xff]  }
0x2c22   :  { %v4293_v0 = vpop.f32.mrf.mxu1  ;;  %v5589_v49 = vld [vmem:[%s7761_s11 + $0x2] ss:$0 sm:$0xff] }
0x2c23   :  { %v4297_v40 = vpack.c.bf16 %v4296_v36, %v4296_v36 }
0x2c24   :  { %v6216_v22 = vpop.f32.mrf.mxu1 }
0x2c25   :  { %6222 = vmatmul.mubr.msk.bf16.vlgmr.msra.gmra.mxu0 %vm202_vm5, %v4297_v40 }
0x2c26   :  { %6237 = vmatprep.mubr.msk.bf16.mxu0 %vm6498_vm1, %v6497_v2  ;;  %6234 = vmatpush3.bf16.msra.mxu0 %v6440_v38 }
0x2c27   :  { %6235 = vmatprep.subr.bf16.mxu0 %v6497_v2 }
0x2c2a   :  { %6236 = vmatpush3.bf16.msra.mxu0 %v6441_v35 }
0x2c2b   :  { %6247 = vmatprep.subr.bf16.mxu0 %v6497_v2 }
0x2ce5   :  { %v4360_v23 = vpop.f32.mrf.mxu0 }
0x2ce6   :  { %v4361_v25 = vadd.f32 %v5552_v31, %v4360_v23 }
0x2ce7   :  { %v6223_v27 = vpop.f32.mrf.mxu0 }
0x2ce8   :  { %v4366_v28 = vmax.f32 %v4361_v25, 0.0  ;;  %v6447_v25 = vld [vmem:[%s7762_s14 + $0x28] sm:$0xff]   ;;  %v6448_v27 = vld [vmem:[%s7762_s14 + $0x20] sm:$0xff]  }
0x2ce9   :  { %v4363_v29 = vpop.f32.mrf.mxu0 }
0x2cea   :  { %v4367_v30 = vpack.c.bf16 %v4366_v28, %v4366_v28  ;;  %v5598_v28 = vld [vmem:[%s7763_s13 + $0x2] ss:$0 sm:$0xff] }
0x2ceb   :  { %v6224_v18 = vpop.f32.mrf.mxu0 }
0x2cec   :  { %6230 = vmatmul.mubr.msk.bf16.vlgmr.msra.gmra.mxu1 %vm202_vm5, %v4367_v30 }
0x2ced   :  { %6243 = vmatprep.mubr.msk.bf16.mxu1 %vm6498_vm1, %v6497_v2  ;;  %6242 = vmatpush3.bf16.msra.mxu1 %v6442_v59  ;;  %v4912_v59 = vld [vmem:[%s7800_s8 + $0x10] sm:$0xff] }
0x2cee   :  { %6255 = vmatprep.subr.bf16.mxu1 %v6497_v2 }
0x2dac   :  { %v4430_v24 = vpop.f32.mrf.mxu1 }
0x2dad   :  { %v4431_v39 = vadd.f32 %v5561_v37, %v4430_v24 }
0x2dae   :  { %v6231_v48 = vpop.f32.mrf.mxu1 }
0x2daf   :  { %v4436_v41 = vmax.f32 %v4431_v39, 0.0  ;;  %v5607_v39 = vld [vmem:[%s7764_s15 + $0x2] ss:$0 sm:$0xff]  ;;  %s6506_s15 = smov 1  }
0x2db0   :  { %v4433_v50 = vpop.f32.mrf.mxu1 }
0x2db1   :  { %v4437_v42 = vpack.c.bf16 %v4436_v41, %v4436_v41 }
0x2db2   :  { %v6232_v43 = vpop.f32.mrf.mxu1 }
0x2db3   :  { %6238 = vmatmul.mubr.msk.bf16.vlgmr.msra.gmra.mxu0 %vm202_vm5, %v4437_v42 }
0x2db4   :  { %6251 = vmatprep.mubr.msk.bf16.mxu0 %vm6498_vm1, %v6497_v2  ;;  %6248 = vmatpush3.bf16.msra.mxu0 %v6443_v9 }
0x2db5   :  { %6249 = vmatprep.subr.bf16.mxu0 %v6497_v2 }
0x2db8   :  { %6250 = vmatpush3.bf16.msra.mxu0 %v6444_v12 }
0x2db9   :  { %6263 = vmatprep.subr.bf16.mxu0 %v6497_v2 }
0x2e73   :  { %v4500_v46 = vpop.f32.mrf.mxu0 }
0x2e74   :  { %v4501_v52 = vadd.f32 %v5570_v20, %v4500_v46 }
0x2e75   :  { %v6239_v51 = vpop.f32.mrf.mxu0 }
0x2e76   :  { %v4510_v4 = vsel %vm875_vm14, %v4501_v52, 0.0 }
0x2e77   :  { %4511 = vadd.xlane.f32.xlu1 %v4510_v4  ;;  %v4503_v44 = vpop.f32.mrf.mxu0 }
0x2e78   :  { %v4913_v44 = vld [vmem:[%s7800_s8 + $0x18] sm:$0xff] }
0x2e79   :  { %v6240_v1 = vpop.f32.mrf.mxu0 }
0x2f00   :  { %v4512_v47 = vpop.xlane.xlu1 %4511 }
0x2f01   :  { %v4513_v45 = vmul.f32 0.0625, %v4512_v47 }
0x2f03   :  { %v4514_v56 = vsub.f32 %v4501_v52, %v4513_v45 }
0x2f05   :  { %v4515_v57 = vmul.f32 %v4514_v56, %v4514_v56 }
0x2f07   :  { %v4516_v58 = vsel %vm875_vm14, %v4515_v57, 0.0 }
0x2f08   :  { %4517 = vadd.xlane.f32.xlu0 %v4516_v58 }
0x2f91   :  { %v4518_v60 = vpop.xlane.xlu0 %4517 }
0x2f92   :  { %v4519_v61 = vmul.f32 0.0625, %v4518_v60  ;;  %v4911_v60 = vld [vmem:[%s7800_s8 + $0x8] sm:$0xff] }
0x2f94   :  { %v4520_v62 = vadd.f32 1e-05, %v4519_v61  ;;  %v5612_v61 = vld [vmem:[%s7802_s1] ss:$0 sm:$0xff] }
0x2f96   :  { %6489 = vrsqrt.f32 %v4520_v62 }
0x2fa3   :  { %v6490_v63 = vpop.eup %6489 }
0x2fa4   :  { %v4522_v5 = vmul.f32 %v6490_v63, %v4514_v56 }
0x2fa6   :  { %v4529_v53 = vmul.f32 %v5576_v3, %v4522_v5 }
0x2fa8   :  { %v4536_v54 = vadd.f32 %v5577_v55, %v4529_v53  ;;  %v4997_v55 = vld [vmem:[%s7801_s21 + $0x10] sm:$0xff]  ;;  %v4996_v53 = vld [vmem:[%s7801_s21 + $0x8] sm:$0xff] }
0x2faa   :  { %v4537_v6 = vadd.f32 %v4536_v54, %v7270_v14  ;;  %v5581_v14 = vld [vmem:[%s7759_s9 + $0x2] ss:$0 sm:$0xff] }
0x2fab   :  { %v4995_v54 = vld [vmem:[%s7801_s21] sm:$0xff] }
0x2fac   :  { %v4541_v7 = vpack.c.bf16 %v4537_v6, %v4537_v6  ;;  %v5083_v6 = vld [vmem:[%s7803_s27 + $0x18] sm:$0xff] }
0x2fae   :  { %6244 = vmatmul.mubr.msk.bf16.vlgmr.msra.gmra.mxu1 %vm875_vm14, %v4541_v7  ;;  %v5615_v7 = vld [vmem:[%s7812_s4] ss:$0 sm:$0xff] }
0x2faf   :  { %6259 = vmatprep.mubr.msk.bf16.mxu1 %vm6498_vm1, %v6497_v2  ;;  %6256 = vmatpush3.bf16.msra.mxu1 %v6445_v34 }
0x2fb0   :  { %6257 = vmatprep.subr.bf16.mxu1 %v6497_v2 }
0x2fb3   :  { %6258 = vmatpush3.bf16.msra.mxu1 %v6446_v26 }
0x2fb4   :  { %6271 = vmatprep.subr.mxu1 %v6497_v2 }
0x306e   :  { %v4593_v13 = vpop.f32.mrf.mxu1 }
0x306f   :  { %v4594_v15 = vadd.f32 %v5581_v14, %v4593_v13 }
0x3070   :  { %v6245_v16 = vpop.f32.mrf.mxu1 }
0x3071   :  { %v4599_v17 = vmax.f32 %v4594_v15, 0.0  ;;  %v5082_v15 = vld [vmem:[%s7803_s27 + $0x10] sm:$0xff]  ;;  %v5081_v16 = vld [vmem:[%s7803_s27 + $0x8] sm:$0xff] }
0x3072   :  { %v4596_v19 = vpop.f32.mrf.mxu1 }
0x3073   :  { %v4600_v32 = vpack.c.bf16 %v4599_v17, %v4599_v17  ;;  %v5080_v17 = vld [vmem:[%s7803_s27] sm:$0xff] }
0x3074   :  { %v6246_v21 = vpop.f32.mrf.mxu1  ;;  %v5617_v19 = vld [vmem:[%s7813_s25] ss:$0 sm:$0xff] }
0x3075   :  { %6252 = vmatmul.mubr.msk.bf16.vlgmr.msra.gmra.mxu0 %vm202_vm5, %v4600_v32 }
0x3076   :  { %6267 = vmatprep.mubr.msk.bf16.mxu0 %vm6498_vm1, %v6497_v2  ;;  %6264 = vmatpush3.bf16.msra.mxu0 %v6447_v25 }
0x3077   :  { %6265 = vmatprep.subr.bf16.mxu0 %v6497_v2 }
0x307a   :  { %6266 = vmatpush3.bf16.msra.mxu0 %v6448_v27 }
0x307b   :  { %6276 = vmatprep.subr.mxu0 %v6497_v2 }
0x3135   :  { %v4663_v36 = vpop.f32.mrf.mxu0 }
0x3136   :  { %v4664_v0 = vadd.f32 %v5589_v49, %v4663_v36 }
0x3137   :  { %v6253_v40 = vpop.f32.mrf.mxu0 }
0x3138   :  { %v4669_v22 = vmax.f32 %v4664_v0, 0.0 }
0x3139   :  { %v4666_v11 = vpop.f32.mrf.mxu0 }
0x313a   :  { %v4670_v31 = vpack.c.bf16 %v4669_v22, %v4669_v22 }
0x313b   :  { %v6254_v23 = vpop.f32.mrf.mxu0 }
0x313c   :  { %6260 = vmatmul.mubr.msk.bf16.vlgmr.msra.gmra.mxu1 %vm202_vm5, %v4670_v31 }
0x313d   :  { %6272 = vmatpush3.msk.msra.mxu1 %vm116_vm0, %v4825_v33  ;;  %6273 = vmatprep.mubr.msk.f32.mxu1 %vm6498_vm1, %v6497_v2 }
0x313e   :  { %6287 = vmatprep.subr.mxu1 %v6497_v2 }
0x31fc   :  { %v4733_v29 = vpop.f32.mrf.mxu1 }
0x31fd   :  { %v4734_v30 = vadd.f32 %v5598_v28, %v4733_v29 }
0x31fe   :  { %v6261_v18 = vpop.f32.mrf.mxu1 }
0x31ff   :  { %v4739_v38 = vmax.f32 %v4734_v30, 0.0 }
0x3200   :  { %v4736_v35 = vpop.f32.mrf.mxu1 }
0x3201   :  { %v4740_v37 = vpack.c.bf16 %v4739_v38, %v4739_v38 }
0x3202   :  { %v6262_v24 = vpop.f32.mrf.mxu1 }
0x3203   :  { %6268 = vmatmul.mubr.msk.bf16.vlgmr.msra.gmra.mxu0 %vm202_vm5, %v4740_v37 }
0x3204   :  { %6284 = vmatprep.mubr.msk.f32.mxu0 %vm6498_vm1, %v6497_v2  ;;  %6277 = vmatpush3.msra.mxu0 %v4913_v44 }
0x3205   :  { %6278 = vmatprep.subr.mxu0 %v6497_v2 }
0x3206   :  { %6279 = vmatpush3.msra.mxu0 %v4912_v59 }
0x3207   :  { %6280 = vmatprep.subr.mxu0 %v6497_v2 }
0x3208   :  { %6281 = vmatpush3.msra.mxu0 %v4911_v60 }
0x3209   :  { %6282 = vmatprep.subr.mxu0 %v6497_v2 }
0x32c3   :  { %v4803_v48 = vpop.f32.mrf.mxu0 }
0x32c4   :  { %v4804_v41 = vadd.f32 %v5607_v39, %v4803_v48 }
0x32c5   :  { %v6269_v50 = vpop.f32.mrf.mxu0 }
0x32c6   :  { %v4809_v42 = vsub.f32 3.0, %v4804_v41 }
0x32c7   :  { %v4806_v43 = vpop.f32.mrf.mxu0 }
0x32c8   :  { %v5611_v20 = vclamps-f32 %v4809_v42, 60.0 }
0x32c9   :  { %v6270_v46 = vpop.f32.mrf.mxu0 }
0x32ca   :  { %v4812_v52 = vmul.f32 1.442695, %v5611_v20 }
0x32cc   :  { %6491 = vpow2.f32 %v4812_v52 }
0x32d9   :  { %v6492_v51 = vpop.eup %6491 }
0x32da   :  { %v4814_v4 = vadd.f32 1.0, %v6492_v51 }
0x32dc   :  { %6493 = vrcp.f32 %v4814_v4 }
0x32e9   :  { %v6494_v1 = vpop.eup %6493 }
0x32ea   :  { %v4816_v47 = vmul.f32 59.0, %v6494_v1 }
0x32ec   :  { %v4817_v45 = vadd.f32 1.0, %v4816_v47 }
0x32ee   :  { %4820 = vrot.lane.b32.xlu1 %v4817_v45, %s6506_s15  ;;  %4818 = vst.msk [vmem:[%s7771_s26] sm:$0xff] %vm100_vm2, %v4817_v45  ;;  %s7814_s26 = sld [smem:[#allocation10_spill]] }
0x32f4   :  { %v5619_v49 = vld [vmem:[%s7814_s26] ss:$0 sm:$0xff] }
0x3360   :  { %v4821_v56 = vpop.permute.xlu1 %4820 }
0x3361   :  { %v4823_v57 = vsel %vm100_vm2, %v6675_v8, %v4821_v56  ;;  %v4910_v8 = vld [vmem:[%s7800_s8] sm:$0xff] }
0x3362   :  { %v4824_v58 = vsel %vm102_vm3, %v4823_v57, %v6679_v10  ;;  %6283 = vmatpush3.msra.mxu0 %v4910_v8  ;;  %v4998_v10 = vld [vmem:[%s7801_s21 + $0x18] sm:$0xff] }
0x3363   :  { %6274 = vmatmul.mubr.msk.f32.vlgmr.msra.gmra.mxu1 %vm112_vm4, %v4824_v58  ;;  %6298 = vmatprep.subr.mxu0 %v6497_v2 }
0x3364   :  { %6295 = vmatprep.mubr.msk.f32.mxu1 %vm6498_vm1, %v6497_v2  ;;  %6288 = vmatpush3.msra.mxu1 %v4998_v10 }
0x3365   :  { %6289 = vmatprep.subr.mxu1 %v6497_v2 }
0x3366   :  { %6290 = vmatpush3.msra.mxu1 %v4997_v55 }
0x3367   :  { %6291 = vmatprep.subr.mxu1 %v6497_v2 }
0x3368   :  { %6292 = vmatpush3.msra.mxu1 %v4996_v53 }
0x3369   :  { %6293 = vmatprep.subr.mxu1 %v6497_v2 }
0x336a   :  { %6294 = vmatpush3.msra.mxu1 %v4995_v54 }
0x3423   :  { %v4905_v62 = vpop.f32.mrf.mxu1 }
0x3424   :  { %v4906_v63 = vadd.f32 %v5612_v61, %v4905_v62 }
0x3425   :  { %v6275_v3 = vpop.f32.mrf.mxu1 }
0x3426   :  { %v4909_v5 = vmax.f32 %v4906_v63, 0.0 }
0x3428   :  { %6285 = vmatmul.mubr.msk.f32.vlgmr.msra.gmra.mxu0 %vm202_vm5, %v4909_v5 }
0x3429   :  { %6306 = vmatprep.mubr.msk.f32.mxu0 %vm6498_vm1, %v6497_v2  ;;  %6299 = vmatpush3.msra.mxu0 %v5083_v6 }
0x342a   :  { %6300 = vmatprep.subr.mxu0 %v6497_v2 }
0x342b   :  { %6301 = vmatpush3.msra.mxu0 %v5082_v15 }
0x342c   :  { %6302 = vmatprep.subr.mxu0 %v6497_v2 }
0x342d   :  { %6303 = vmatpush3.msra.mxu0 %v5081_v16 }
0x342e   :  { %6304 = vmatprep.subr.mxu0 %v6497_v2 }
0x342f   :  { %6305 = vmatpush3.msra.mxu0 %v5080_v17 }
0x34e8   :  { %v4990_v9 = vpop.f32.mrf.mxu0 }
0x34e9   :  { %v4991_v12 = vadd.f32 %v5615_v7, %v4990_v9 }
0x34ea   :  { %v6286_v14 = vpop.f32.mrf.mxu0 }
0x34eb   :  { %v4994_v13 = vmax.f32 %v4991_v12, 0.0 }
0x34ed   :  { %6296 = vmatmul.mubr.msk.f32.vlgmr.msra.gmra.mxu1 %vm202_vm5, %v4994_v13 }
0x35ad   :  { %v5075_v32 = vpop.f32.mrf.mxu1 }
0x35ae   :  { %v5076_v21 = vadd.f32 %v5617_v19, %v5075_v32 }
0x35af   :  { %v6297_v34 = vpop.f32.mrf.mxu1 }
0x35b0   :  { %v5079_v26 = vmax.f32 %v5076_v21, 0.0 }
0x35b2   :  { %6307 = vmatmul.mubr.msk.f32.vlgmr.msra.gmra.mxu0 %vm202_vm5, %v5079_v26 }
0x3672   :  { %v5160_v36 = vpop.f32.mrf.mxu0 }
0x3673   :  { %v5161_v0 = vadd.f32 %v5619_v49, %v5160_v36 }
0x3674   :  { %v6308_v40 = vpop.f32.mrf.mxu0 }
0x3675   :  { %v5164_v22 = vmul.f32 1.442695, %v5161_v0 }
0x3677   :  { %6495 = vpow2.f32 %v5164_v22 }
0x3684   :  { %v6496_v2 = vpop.eup %6495 }
0x3685   :  { %5166 = vst.msk [vmem:[%s7815_s17] sm:$0xff] %vm102_vm3, %v6496_v2 }

</bundles_post_ra>
